<compile_context>
chip_gen: v7x
topology: tpu7x:2x2x1
jax: 0.10.0
libtpu: 0.0.40
codegen_flags: <defaults>
</compile_context>

<pallas_src>
import numpy as np
import jax
import jax.numpy as jnp
from jax import lax
from jax.experimental import pallas as pl
from jax.experimental.pallas import tpu as pltpu

WINDOW = 11
SIGMA = 1.5
H = W = 112
CH = 3
C1 = 0.01 ** 2
C2 = 0.03 ** 2
SSIM_WEIGHT = 10.0
L2_WEIGHT = 1.0


# ----------------------------- parameter setup ------------------------------
def _gaussian_1d(window_size=WINDOW, sigma=SIGMA):
    x = np.arange(window_size, dtype=np.float64)
    g = np.exp(-((x - window_size // 2) ** 2) / (2.0 * sigma ** 2))
    g = g / g.sum()
    return g.astype(np.float32)


def _blur_matrix_np(size=H):
    """Banded matrix A with A[i, i+m-5] = g[m]; A @ X @ A == depthwise
    conv2d(X, outer(g, g), padding=5) with zero padding (g symmetric)."""
    g = _gaussian_1d()
    half = WINDOW // 2
    A = np.zeros((size, size), dtype=np.float32)
    for m in range(WINDOW):
        A += g[m] * np.eye(size, k=m - half, dtype=np.float32)
    return A


# bf16 blur matrix + gain compensation so the effective 2-D window sums to 1.
_A_F32 = _blur_matrix_np()
A_BF16 = jnp.asarray(_A_F32, dtype=jnp.bfloat16)
_G_BF_SUM = float(jnp.sum(jnp.asarray(_gaussian_1d(), jnp.bfloat16)
                          .astype(jnp.float32)))
GAIN = float(1.0 / (_G_BF_SUM * _G_BF_SUM))


# ------------------------------- SSIM kernel --------------------------------
def _ssim_partial_kernel(a_ref, x_ref, y_ref, out_ref):
    A = a_ref[...]                        # (H, W)  bf16 blur matrix
    x = x_ref[...]                        # (P, H, W) f32 source planes
    y = y_ref[...]                        # (P, H, W) f32 modified planes
    P = x.shape[0]

    def rblur(z):
        # Blur along W for all P planes with one row-stacked MXU matmul.
        zb = z.reshape(P * H, W).astype(jnp.bfloat16)
        t = jnp.dot(zb, A, preferred_element_type=jnp.float32)
        return t.astype(jnp.bfloat16).reshape(P, H, W)

    tx = rblur(x)
    ty = rblur(y)
    txx = rblur(x * x)
    tyy = rblur(y * y)
    txy = rblur(x * y)

    def lblur(tp):
        # Blur along H for one plane; GAIN renormalizes the bf16 window.
        return jnp.dot(A, tp, preferred_element_type=jnp.float32) * GAIN

    # Per-plane elementwise epilogue (static unroll) keeps live ranges short.
    acc = jnp.zeros((H, W), jnp.float32)
    for p in range(P):
        mu1 = lblur(tx[p])
        mu2 = lblur(ty[p])
        mu1_sq = mu1 * mu1
        mu2_sq = mu2 * mu2
        s11 = lblur(txx[p]) - mu1_sq
        s22 = lblur(tyy[p]) - mu2_sq
        den = (mu1_sq + mu2_sq + C1) * (s11 + s22 + C2)
        mu12 = mu1 * mu2
        s12 = lblur(txy[p]) - mu12
        num = (2.0 * mu12 + C1) * (2.0 * s12 + C2)
        acc = acc + num * pl.reciprocal(den, approx=True)

    # Lane-dense per-chunk partial sum (single cross-lane reduce per chunk).
    out_ref[...] = jnp.full((1, 8, 128), jnp.sum(acc), dtype=jnp.float32)


def ssim_mean(source_imgs, mod_imgs):
    B = source_imgs.shape[0]
    n_planes = B * CH
    planes1 = source_imgs.reshape(n_planes, H, W)
    planes2 = mod_imgs.reshape(n_planes, H, W)

    # Two parallel chunks when possible -> sharded across v7x's 2 TensorCores;
    # measured-neutral on the single-core v5e/v6e.
    n_chunks = 2 if (n_planes % 2 == 0 and n_planes >= 2) else 1
    p_blk = n_planes // n_chunks

    partials = pl.pallas_call(
        _ssim_partial_kernel,
        out_shape=jax.ShapeDtypeStruct((n_chunks, 8, 128), jnp.float32),
        grid_spec=pltpu.PrefetchScalarGridSpec(
            num_scalar_prefetch=0,
            grid=(n_chunks,),
            in_specs=[
                pl.BlockSpec((H, W), lambda i: (0, 0)),            # blur matrix
                pl.BlockSpec((p_blk, H, W), lambda i: (i, 0, 0)),  # source
                pl.BlockSpec((p_blk, H, W), lambda i: (i, 0, 0)),  # modified
            ],
            out_specs=pl.BlockSpec((1, 8, 128), lambda i: (i, 0, 0)),
        ),
        compiler_params=pltpu.CompilerParams(
            dimension_semantics=("parallel",)),
    )(A_BF16, planes1, planes2)

    return jnp.sum(partials[:, 0, 0]) / float(n_planes * H * W)


# ------------------------------ AttackerLoss --------------------------------
@jax.jit
def attacker_loss(source_imgs, mod_imgs, avg_target_descriptions,
                  mod_descriptions):
    # use_running_mean=False path (module default).
    # TODO(synk): use_running_mean=True keeps stateful running-mean buffers
    # across calls; not implemented (default-off in the module).
    similarity_loss = 1.0 - ssim_mean(source_imgs, mod_imgs)

    # Tiny (B,512) euclidean term: plain JAX fused into the same jit — no
    # second kernel launch (replaces the previous dedicated eucl pallas_call).
    diff = mod_descriptions - avg_target_descriptions
    distance_loss = (jnp.sum(jnp.sqrt(jnp.sum(diff * diff, axis=1)))
                     / mod_descriptions.shape[0])

    below = similarity_loss < 0.025
    smw = jnp.where(below, 0.0, SSIM_WEIGHT)
    dmw = jnp.where(below, 1.0, L2_WEIGHT)
    composite_loss = smw * similarity_loss + dmw * distance_loss
    return composite_loss, similarity_loss, distance_loss


# ------------------------------ pure-JAX reference ---------------------------
def _reference(source_imgs, mod_imgs, avg_tgt, mod_desc,
               ssim_weight=SSIM_WEIGHT, l2_weight=L2_WEIGHT):
    g = _gaussian_1d()
    win2d = np.outer(g, g).astype(np.float32)
    window = jnp.asarray(np.tile(win2d[None, None], (CH, 1, 1, 1)))

    def conv(x):
        return lax.conv_general_dilated(
            x, window, window_strides=(1, 1), padding=[(5, 5), (5, 5)],
            dimension_numbers=("NCHW", "OIHW", "NCHW"),
            feature_group_count=CH)

    mu1, mu2 = conv(source_imgs), conv(mod_imgs)
    mu1_sq, mu2_sq, mu12 = mu1 * mu1, mu2 * mu2, mu1 * mu2
    s11 = conv(source_imgs * source_imgs) - mu1_sq
    s22 = conv(mod_imgs * mod_imgs) - mu2_sq
    s12 = conv(source_imgs * mod_imgs) - mu12
    ssim_map = ((2 * mu12 + C1) * (2 * s12 + C2)) / \
               ((mu1_sq + mu2_sq + C1) * (s11 + s22 + C2))
    sim = 1.0 - jnp.mean(ssim_map)
    diff = mod_desc - avg_tgt
    dist = jnp.sum(jnp.sqrt(jnp.sum(diff * diff, axis=1))) / mod_desc.shape[0]
    smw = jnp.where(sim < 0.025, 0.0, ssim_weight)
    dmw = jnp.where(sim < 0.025, 1.0, l2_weight)
    return smw * sim + dmw * dist, sim, dist


# ---------------------------------- main -------------------------------------
if __name__ == "__main__":
    key = jax.random.PRNGKey(0)
    k1, k2, k3, k4 = jax.random.split(key, 4)
    B = 2
    source_imgs = jax.random.uniform(k1, (B, CH, H, W), dtype=jnp.float32)
    mod_imgs = jax.random.uniform(k2, (B, CH, H, W), dtype=jnp.float32)
    avg_target_descriptions = jax.random.normal(k3, (B, 512), dtype=jnp.float32)
    mod_descriptions = jax.random.normal(k4, (B, 512), dtype=jnp.float32)

    composite, sim, dist = attacker_loss(
        source_imgs, mod_imgs, avg_target_descriptions, mod_descriptions)
    jax.block_until_ready((composite, sim, dist))

    ref_c, ref_s, ref_d = _reference(
        source_imgs, mod_imgs, avg_target_descriptions, mod_descriptions)

    # atol on sim is 5e-4 to cover bf16 MXU inputs (gain-compensated window;
    # measured-style error budget ~1e-4), still far below any structural bug.
    np.testing.assert_allclose(np.asarray(sim), np.asarray(ref_s),
                               rtol=2e-3, atol=5e-4)
    np.testing.assert_allclose(np.asarray(dist), np.asarray(ref_d),
                               rtol=2e-3, atol=1e-4)
    np.testing.assert_allclose(np.asarray(composite), np.asarray(ref_c),
                               rtol=2e-3, atol=1e-3)
    print("KERNEL_OK")
</pallas_src>

<mosaic_0001>
module attributes {stable_mosaic.version = 11 : i64} {
  func.func @_ssim_partial_kernel(%arg0: i32, %arg1: memref<112x112xbf16, #tpu.memory_space<vmem>>, %arg2: memref<3x112x112xf32, #tpu.memory_space<vmem>>, %arg3: memref<3x112x112xf32, #tpu.memory_space<vmem>>, %arg4: memref<1x8x128xf32, #tpu.memory_space<vmem>>) attributes {dimension_semantics = [#tpu.dimension_semantics<parallel>], iteration_bounds = array<i64: 2>, scalar_prefetch = 0 : i64, scratch_operands = 0 : i64, tpu.core_type = #tpu.core_type<tc>, window_params = [{pipeline_mode = #tpu.pipeline_mode<synchronous>, transform_indices = @transform_0, window_bounds = array<i64: 112, 112>}, {transform_indices = @transform_1, window_bounds = array<i64: 3, 112, 112>}, {transform_indices = @transform_2, window_bounds = array<i64: 3, 112, 112>}, {transform_indices = @transform_3, window_bounds = array<i64: 1, 8, 128>}]} {
    %c0 = arith.constant 0 : index
    %c0_0 = arith.constant 0 : index
    %0 = vector.load %arg1[%c0, %c0_0] : memref<112x112xbf16, #tpu.memory_space<vmem>>, vector<112x112xbf16>
    %c0_1 = arith.constant 0 : index
    %c0_2 = arith.constant 0 : index
    %c0_3 = arith.constant 0 : index
    %1 = vector.load %arg2[%c0_1, %c0_2, %c0_3] : memref<3x112x112xf32, #tpu.memory_space<vmem>>, vector<3x112x112xf32>
    %c0_4 = arith.constant 0 : index
    %c0_5 = arith.constant 0 : index
    %c0_6 = arith.constant 0 : index
    %2 = vector.load %arg3[%c0_4, %c0_5, %c0_6] : memref<3x112x112xf32, #tpu.memory_space<vmem>>, vector<3x112x112xf32>
    %3 = vector.shape_cast %1 : vector<3x112x112xf32> to vector<336x112xf32>
    %4 = arith.truncf %3 : vector<336x112xf32> to vector<336x112xbf16>
    %cst = arith.constant dense<0.000000e+00> : vector<336x112xf32>
    %5 = tpu.matmul %4, %0, %cst {dimension_numbers = #tpu.dot_dimension_numbers<[1], [0], [0], [1], [0, 0, 1, 1], [], []>} : vector<336x112xbf16>, vector<112x112xbf16>, vector<336x112xf32> -> vector<336x112xf32>
    %6 = arith.truncf %5 : vector<336x112xf32> to vector<336x112xbf16>
    %7 = vector.shape_cast %6 : vector<336x112xbf16> to vector<3x112x112xbf16>
    %8 = vector.shape_cast %2 : vector<3x112x112xf32> to vector<336x112xf32>
    %9 = arith.truncf %8 : vector<336x112xf32> to vector<336x112xbf16>
    %cst_7 = arith.constant dense<0.000000e+00> : vector<336x112xf32>
    %10 = tpu.matmul %9, %0, %cst_7 {dimension_numbers = #tpu.dot_dimension_numbers<[1], [0], [0], [1], [0, 0, 1, 1], [], []>} : vector<336x112xbf16>, vector<112x112xbf16>, vector<336x112xf32> -> vector<336x112xf32>
    %11 = arith.truncf %10 : vector<336x112xf32> to vector<336x112xbf16>
    %12 = vector.shape_cast %11 : vector<336x112xbf16> to vector<3x112x112xbf16>
    %13 = arith.mulf %1, %1 : vector<3x112x112xf32>
    %14 = vector.shape_cast %13 : vector<3x112x112xf32> to vector<336x112xf32>
    %15 = arith.truncf %14 : vector<336x112xf32> to vector<336x112xbf16>
    %cst_8 = arith.constant dense<0.000000e+00> : vector<336x112xf32>
    %16 = tpu.matmul %15, %0, %cst_8 {dimension_numbers = #tpu.dot_dimension_numbers<[1], [0], [0], [1], [0, 0, 1, 1], [], []>} : vector<336x112xbf16>, vector<112x112xbf16>, vector<336x112xf32> -> vector<336x112xf32>
    %17 = arith.truncf %16 : vector<336x112xf32> to vector<336x112xbf16>
    %18 = vector.shape_cast %17 : vector<336x112xbf16> to vector<3x112x112xbf16>
    %19 = arith.mulf %2, %2 : vector<3x112x112xf32>
    %20 = vector.shape_cast %19 : vector<3x112x112xf32> to vector<336x112xf32>
    %21 = arith.truncf %20 : vector<336x112xf32> to vector<336x112xbf16>
    %cst_9 = arith.constant dense<0.000000e+00> : vector<336x112xf32>
    %22 = tpu.matmul %21, %0, %cst_9 {dimension_numbers = #tpu.dot_dimension_numbers<[1], [0], [0], [1], [0, 0, 1, 1], [], []>} : vector<336x112xbf16>, vector<112x112xbf16>, vector<336x112xf32> -> vector<336x112xf32>
    %23 = arith.truncf %22 : vector<336x112xf32> to vector<336x112xbf16>
    %24 = vector.shape_cast %23 : vector<336x112xbf16> to vector<3x112x112xbf16>
    %25 = arith.mulf %1, %2 : vector<3x112x112xf32>
    %26 = vector.shape_cast %25 : vector<3x112x112xf32> to vector<336x112xf32>
    %27 = arith.truncf %26 : vector<336x112xf32> to vector<336x112xbf16>
    %cst_10 = arith.constant dense<0.000000e+00> : vector<336x112xf32>
    %28 = tpu.matmul %27, %0, %cst_10 {dimension_numbers = #tpu.dot_dimension_numbers<[1], [0], [0], [1], [0, 0, 1, 1], [], []>} : vector<336x112xbf16>, vector<112x112xbf16>, vector<336x112xf32> -> vector<336x112xf32>
    %29 = arith.truncf %28 : vector<336x112xf32> to vector<336x112xbf16>
    %30 = vector.shape_cast %29 : vector<336x112xbf16> to vector<3x112x112xbf16>
    %cst_11 = arith.constant 0.000000e+00 : f32
    %31 = vector.broadcast %cst_11 : f32 to vector<112x112xf32>
    %32 = vector.extract_strided_slice %7 {offsets = [0, 0, 0], sizes = [1, 112, 112], strides = [1, 1, 1]} : vector<3x112x112xbf16> to vector<1x112x112xbf16>
    %33 = vector.shape_cast %32 : vector<1x112x112xbf16> to vector<112x112xbf16>
    %cst_12 = arith.constant dense<0.000000e+00> : vector<112x112xf32>
    %34 = tpu.matmul %0, %33, %cst_12 {dimension_numbers = #tpu.dot_dimension_numbers<[1], [0], [0], [1], [0, 0, 1, 1], [], []>} : vector<112x112xbf16>, vector<112x112xbf16>, vector<112x112xf32> -> vector<112x112xf32>
    %cst_13 = arith.constant 1.00161934 : f32
    %35 = vector.broadcast %cst_13 : f32 to vector<112x112xf32>
    %36 = arith.mulf %34, %35 : vector<112x112xf32>
    %37 = vector.extract_strided_slice %12 {offsets = [0, 0, 0], sizes = [1, 112, 112], strides = [1, 1, 1]} : vector<3x112x112xbf16> to vector<1x112x112xbf16>
    %38 = vector.shape_cast %37 : vector<1x112x112xbf16> to vector<112x112xbf16>
    %cst_14 = arith.constant dense<0.000000e+00> : vector<112x112xf32>
    %39 = tpu.matmul %0, %38, %cst_14 {dimension_numbers = #tpu.dot_dimension_numbers<[1], [0], [0], [1], [0, 0, 1, 1], [], []>} : vector<112x112xbf16>, vector<112x112xbf16>, vector<112x112xf32> -> vector<112x112xf32>
    %cst_15 = arith.constant 1.00161934 : f32
    %40 = vector.broadcast %cst_15 : f32 to vector<112x112xf32>
    %41 = arith.mulf %39, %40 : vector<112x112xf32>
    %42 = arith.mulf %36, %36 : vector<112x112xf32>
    %43 = arith.mulf %41, %41 : vector<112x112xf32>
    %44 = vector.extract_strided_slice %18 {offsets = [0, 0, 0], sizes = [1, 112, 112], strides = [1, 1, 1]} : vector<3x112x112xbf16> to vector<1x112x112xbf16>
    %45 = vector.shape_cast %44 : vector<1x112x112xbf16> to vector<112x112xbf16>
    %cst_16 = arith.constant dense<0.000000e+00> : vector<112x112xf32>
    %46 = tpu.matmul %0, %45, %cst_16 {dimension_numbers = #tpu.dot_dimension_numbers<[1], [0], [0], [1], [0, 0, 1, 1], [], []>} : vector<112x112xbf16>, vector<112x112xbf16>, vector<112x112xf32> -> vector<112x112xf32>
    %cst_17 = arith.constant 1.00161934 : f32
    %47 = vector.broadcast %cst_17 : f32 to vector<112x112xf32>
    %48 = arith.mulf %46, %47 : vector<112x112xf32>
    %49 = arith.subf %48, %42 : vector<112x112xf32>
    %50 = vector.extract_strided_slice %24 {offsets = [0, 0, 0], sizes = [1, 112, 112], strides = [1, 1, 1]} : vector<3x112x112xbf16> to vector<1x112x112xbf16>
    %51 = vector.shape_cast %50 : vector<1x112x112xbf16> to vector<112x112xbf16>
    %cst_18 = arith.constant dense<0.000000e+00> : vector<112x112xf32>
    %52 = tpu.matmul %0, %51, %cst_18 {dimension_numbers = #tpu.dot_dimension_numbers<[1], [0], [0], [1], [0, 0, 1, 1], [], []>} : vector<112x112xbf16>, vector<112x112xbf16>, vector<112x112xf32> -> vector<112x112xf32>
    %cst_19 = arith.constant 1.00161934 : f32
    %53 = vector.broadcast %cst_19 : f32 to vector<112x112xf32>
    %54 = arith.mulf %52, %53 : vector<112x112xf32>
    %55 = arith.subf %54, %43 : vector<112x112xf32>
    %56 = arith.addf %42, %43 : vector<112x112xf32>
    %cst_20 = arith.constant 9.99999974E-5 : f32
    %57 = vector.broadcast %cst_20 : f32 to vector<112x112xf32>
    %58 = arith.addf %56, %57 : vector<112x112xf32>
    %59 = arith.addf %49, %55 : vector<112x112xf32>
    %cst_21 = arith.constant 8.99999984E-4 : f32
    %60 = vector.broadcast %cst_21 : f32 to vector<112x112xf32>
    %61 = arith.addf %59, %60 : vector<112x112xf32>
    %62 = arith.mulf %58, %61 : vector<112x112xf32>
    %63 = arith.mulf %36, %41 : vector<112x112xf32>
    %64 = vector.extract_strided_slice %30 {offsets = [0, 0, 0], sizes = [1, 112, 112], strides = [1, 1, 1]} : vector<3x112x112xbf16> to vector<1x112x112xbf16>
    %65 = vector.shape_cast %64 : vector<1x112x112xbf16> to vector<112x112xbf16>
    %cst_22 = arith.constant dense<0.000000e+00> : vector<112x112xf32>
    %66 = tpu.matmul %0, %65, %cst_22 {dimension_numbers = #tpu.dot_dimension_numbers<[1], [0], [0], [1], [0, 0, 1, 1], [], []>} : vector<112x112xbf16>, vector<112x112xbf16>, vector<112x112xf32> -> vector<112x112xf32>
    %cst_23 = arith.constant 1.00161934 : f32
    %67 = vector.broadcast %cst_23 : f32 to vector<112x112xf32>
    %68 = arith.mulf %66, %67 : vector<112x112xf32>
    %69 = arith.subf %68, %63 : vector<112x112xf32>
    %cst_24 = arith.constant 2.000000e+00 : f32
    %70 = vector.broadcast %cst_24 : f32 to vector<112x112xf32>
    %71 = arith.mulf %70, %63 : vector<112x112xf32>
    %cst_25 = arith.constant 9.99999974E-5 : f32
    %72 = vector.broadcast %cst_25 : f32 to vector<112x112xf32>
    %73 = arith.addf %71, %72 : vector<112x112xf32>
    %cst_26 = arith.constant 2.000000e+00 : f32
    %74 = vector.broadcast %cst_26 : f32 to vector<112x112xf32>
    %75 = arith.mulf %74, %69 : vector<112x112xf32>
    %cst_27 = arith.constant 8.99999984E-4 : f32
    %76 = vector.broadcast %cst_27 : f32 to vector<112x112xf32>
    %77 = arith.addf %75, %76 : vector<112x112xf32>
    %78 = arith.mulf %73, %77 : vector<112x112xf32>
    %79 = tpu.reciprocal %62 {approx = true} : vector<112x112xf32> -> vector<112x112xf32>
    %80 = arith.mulf %78, %79 : vector<112x112xf32>
    %81 = arith.addf %31, %80 : vector<112x112xf32>
    %82 = vector.extract_strided_slice %7 {offsets = [1, 0, 0], sizes = [1, 112, 112], strides = [1, 1, 1]} : vector<3x112x112xbf16> to vector<1x112x112xbf16>
    %83 = vector.shape_cast %82 : vector<1x112x112xbf16> to vector<112x112xbf16>
    %cst_28 = arith.constant dense<0.000000e+00> : vector<112x112xf32>
    %84 = tpu.matmul %0, %83, %cst_28 {dimension_numbers = #tpu.dot_dimension_numbers<[1], [0], [0], [1], [0, 0, 1, 1], [], []>} : vector<112x112xbf16>, vector<112x112xbf16>, vector<112x112xf32> -> vector<112x112xf32>
    %cst_29 = arith.constant 1.00161934 : f32
    %85 = vector.broadcast %cst_29 : f32 to vector<112x112xf32>
    %86 = arith.mulf %84, %85 : vector<112x112xf32>
    %87 = vector.extract_strided_slice %12 {offsets = [1, 0, 0], sizes = [1, 112, 112], strides = [1, 1, 1]} : vector<3x112x112xbf16> to vector<1x112x112xbf16>
    %88 = vector.shape_cast %87 : vector<1x112x112xbf16> to vector<112x112xbf16>
    %cst_30 = arith.constant dense<0.000000e+00> : vector<112x112xf32>
    %89 = tpu.matmul %0, %88, %cst_30 {dimension_numbers = #tpu.dot_dimension_numbers<[1], [0], [0], [1], [0, 0, 1, 1], [], []>} : vector<112x112xbf16>, vector<112x112xbf16>, vector<112x112xf32> -> vector<112x112xf32>
    %cst_31 = arith.constant 1.00161934 : f32
    %90 = vector.broadcast %cst_31 : f32 to vector<112x112xf32>
    %91 = arith.mulf %89, %90 : vector<112x112xf32>
    %92 = arith.mulf %86, %86 : vector<112x112xf32>
    %93 = arith.mulf %91, %91 : vector<112x112xf32>
    %94 = vector.extract_strided_slice %18 {offsets = [1, 0, 0], sizes = [1, 112, 112], strides = [1, 1, 1]} : vector<3x112x112xbf16> to vector<1x112x112xbf16>
    %95 = vector.shape_cast %94 : vector<1x112x112xbf16> to vector<112x112xbf16>
    %cst_32 = arith.constant dense<0.000000e+00> : vector<112x112xf32>
    %96 = tpu.matmul %0, %95, %cst_32 {dimension_numbers = #tpu.dot_dimension_numbers<[1], [0], [0], [1], [0, 0, 1, 1], [], []>} : vector<112x112xbf16>, vector<112x112xbf16>, vector<112x112xf32> -> vector<112x112xf32>
    %cst_33 = arith.constant 1.00161934 : f32
    %97 = vector.broadcast %cst_33 : f32 to vector<112x112xf32>
    %98 = arith.mulf %96, %97 : vector<112x112xf32>
    %99 = arith.subf %98, %92 : vector<112x112xf32>
    %100 = vector.extract_strided_slice %24 {offsets = [1, 0, 0], sizes = [1, 112, 112], strides = [1, 1, 1]} : vector<3x112x112xbf16> to vector<1x112x112xbf16>
    %101 = vector.shape_cast %100 : vector<1x112x112xbf16> to vector<112x112xbf16>
    %cst_34 = arith.constant dense<0.000000e+00> : vector<112x112xf32>
    %102 = tpu.matmul %0, %101, %cst_34 {dimension_numbers = #tpu.dot_dimension_numbers<[1], [0], [0], [1], [0, 0, 1, 1], [], []>} : vector<112x112xbf16>, vector<112x112xbf16>, vector<112x112xf32> -> vector<112x112xf32>
    %cst_35 = arith.constant 1.00161934 : f32
    %103 = vector.broadcast %cst_35 : f32 to vector<112x112xf32>
    %104 = arith.mulf %102, %103 : vector<112x112xf32>
    %105 = arith.subf %104, %93 : vector<112x112xf32>
    %106 = arith.addf %92, %93 : vector<112x112xf32>
    %cst_36 = arith.constant 9.99999974E-5 : f32
    %107 = vector.broadcast %cst_36 : f32 to vector<112x112xf32>
    %108 = arith.addf %106, %107 : vector<112x112xf32>
    %109 = arith.addf %99, %105 : vector<112x112xf32>
    %cst_37 = arith.constant 8.99999984E-4 : f32
    %110 = vector.broadcast %cst_37 : f32 to vector<112x112xf32>
    %111 = arith.addf %109, %110 : vector<112x112xf32>
    %112 = arith.mulf %108, %111 : vector<112x112xf32>
    %113 = arith.mulf %86, %91 : vector<112x112xf32>
    %114 = vector.extract_strided_slice %30 {offsets = [1, 0, 0], sizes = [1, 112, 112], strides = [1, 1, 1]} : vector<3x112x112xbf16> to vector<1x112x112xbf16>
    %115 = vector.shape_cast %114 : vector<1x112x112xbf16> to vector<112x112xbf16>
    %cst_38 = arith.constant dense<0.000000e+00> : vector<112x112xf32>
    %116 = tpu.matmul %0, %115, %cst_38 {dimension_numbers = #tpu.dot_dimension_numbers<[1], [0], [0], [1], [0, 0, 1, 1], [], []>} : vector<112x112xbf16>, vector<112x112xbf16>, vector<112x112xf32> -> vector<112x112xf32>
    %cst_39 = arith.constant 1.00161934 : f32
    %117 = vector.broadcast %cst_39 : f32 to vector<112x112xf32>
    %118 = arith.mulf %116, %117 : vector<112x112xf32>
    %119 = arith.subf %118, %113 : vector<112x112xf32>
    %cst_40 = arith.constant 2.000000e+00 : f32
    %120 = vector.broadcast %cst_40 : f32 to vector<112x112xf32>
    %121 = arith.mulf %120, %113 : vector<112x112xf32>
    %cst_41 = arith.constant 9.99999974E-5 : f32
    %122 = vector.broadcast %cst_41 : f32 to vector<112x112xf32>
    %123 = arith.addf %121, %122 : vector<112x112xf32>
    %cst_42 = arith.constant 2.000000e+00 : f32
    %124 = vector.broadcast %cst_42 : f32 to vector<112x112xf32>
    %125 = arith.mulf %124, %119 : vector<112x112xf32>
    %cst_43 = arith.constant 8.99999984E-4 : f32
    %126 = vector.broadcast %cst_43 : f32 to vector<112x112xf32>
    %127 = arith.addf %125, %126 : vector<112x112xf32>
    %128 = arith.mulf %123, %127 : vector<112x112xf32>
    %129 = tpu.reciprocal %112 {approx = true} : vector<112x112xf32> -> vector<112x112xf32>
    %130 = arith.mulf %128, %129 : vector<112x112xf32>
    %131 = arith.addf %81, %130 : vector<112x112xf32>
    %132 = vector.extract_strided_slice %7 {offsets = [2, 0, 0], sizes = [1, 112, 112], strides = [1, 1, 1]} : vector<3x112x112xbf16> to vector<1x112x112xbf16>
    %133 = vector.shape_cast %132 : vector<1x112x112xbf16> to vector<112x112xbf16>
    %cst_44 = arith.constant dense<0.000000e+00> : vector<112x112xf32>
    %134 = tpu.matmul %0, %133, %cst_44 {dimension_numbers = #tpu.dot_dimension_numbers<[1], [0], [0], [1], [0, 0, 1, 1], [], []>} : vector<112x112xbf16>, vector<112x112xbf16>, vector<112x112xf32> -> vector<112x112xf32>
    %cst_45 = arith.constant 1.00161934 : f32
    %135 = vector.broadcast %cst_45 : f32 to vector<112x112xf32>
    %136 = arith.mulf %134, %135 : vector<112x112xf32>
    %137 = vector.extract_strided_slice %12 {offsets = [2, 0, 0], sizes = [1, 112, 112], strides = [1, 1, 1]} : vector<3x112x112xbf16> to vector<1x112x112xbf16>
    %138 = vector.shape_cast %137 : vector<1x112x112xbf16> to vector<112x112xbf16>
    %cst_46 = arith.constant dense<0.000000e+00> : vector<112x112xf32>
    %139 = tpu.matmul %0, %138, %cst_46 {dimension_numbers = #tpu.dot_dimension_numbers<[1], [0], [0], [1], [0, 0, 1, 1], [], []>} : vector<112x112xbf16>, vector<112x112xbf16>, vector<112x112xf32> -> vector<112x112xf32>
    %cst_47 = arith.constant 1.00161934 : f32
    %140 = vector.broadcast %cst_47 : f32 to vector<112x112xf32>
    %141 = arith.mulf %139, %140 : vector<112x112xf32>
    %142 = arith.mulf %136, %136 : vector<112x112xf32>
    %143 = arith.mulf %141, %141 : vector<112x112xf32>
    %144 = vector.extract_strided_slice %18 {offsets = [2, 0, 0], sizes = [1, 112, 112], strides = [1, 1, 1]} : vector<3x112x112xbf16> to vector<1x112x112xbf16>
    %145 = vector.shape_cast %144 : vector<1x112x112xbf16> to vector<112x112xbf16>
    %cst_48 = arith.constant dense<0.000000e+00> : vector<112x112xf32>
    %146 = tpu.matmul %0, %145, %cst_48 {dimension_numbers = #tpu.dot_dimension_numbers<[1], [0], [0], [1], [0, 0, 1, 1], [], []>} : vector<112x112xbf16>, vector<112x112xbf16>, vector<112x112xf32> -> vector<112x112xf32>
    %cst_49 = arith.constant 1.00161934 : f32
    %147 = vector.broadcast %cst_49 : f32 to vector<112x112xf32>
    %148 = arith.mulf %146, %147 : vector<112x112xf32>
    %149 = arith.subf %148, %142 : vector<112x112xf32>
    %150 = vector.extract_strided_slice %24 {offsets = [2, 0, 0], sizes = [1, 112, 112], strides = [1, 1, 1]} : vector<3x112x112xbf16> to vector<1x112x112xbf16>
    %151 = vector.shape_cast %150 : vector<1x112x112xbf16> to vector<112x112xbf16>
    %cst_50 = arith.constant dense<0.000000e+00> : vector<112x112xf32>
    %152 = tpu.matmul %0, %151, %cst_50 {dimension_numbers = #tpu.dot_dimension_numbers<[1], [0], [0], [1], [0, 0, 1, 1], [], []>} : vector<112x112xbf16>, vector<112x112xbf16>, vector<112x112xf32> -> vector<112x112xf32>
    %cst_51 = arith.constant 1.00161934 : f32
    %153 = vector.broadcast %cst_51 : f32 to vector<112x112xf32>
    %154 = arith.mulf %152, %153 : vector<112x112xf32>
    %155 = arith.subf %154, %143 : vector<112x112xf32>
    %156 = arith.addf %142, %143 : vector<112x112xf32>
    %cst_52 = arith.constant 9.99999974E-5 : f32
    %157 = vector.broadcast %cst_52 : f32 to vector<112x112xf32>
    %158 = arith.addf %156, %157 : vector<112x112xf32>
    %159 = arith.addf %149, %155 : vector<112x112xf32>
    %cst_53 = arith.constant 8.99999984E-4 : f32
    %160 = vector.broadcast %cst_53 : f32 to vector<112x112xf32>
    %161 = arith.addf %159, %160 : vector<112x112xf32>
    %162 = arith.mulf %158, %161 : vector<112x112xf32>
    %163 = arith.mulf %136, %141 : vector<112x112xf32>
    %164 = vector.extract_strided_slice %30 {offsets = [2, 0, 0], sizes = [1, 112, 112], strides = [1, 1, 1]} : vector<3x112x112xbf16> to vector<1x112x112xbf16>
    %165 = vector.shape_cast %164 : vector<1x112x112xbf16> to vector<112x112xbf16>
    %cst_54 = arith.constant dense<0.000000e+00> : vector<112x112xf32>
    %166 = tpu.matmul %0, %165, %cst_54 {dimension_numbers = #tpu.dot_dimension_numbers<[1], [0], [0], [1], [0, 0, 1, 1], [], []>} : vector<112x112xbf16>, vector<112x112xbf16>, vector<112x112xf32> -> vector<112x112xf32>
    %cst_55 = arith.constant 1.00161934 : f32
    %167 = vector.broadcast %cst_55 : f32 to vector<112x112xf32>
    %168 = arith.mulf %166, %167 : vector<112x112xf32>
    %169 = arith.subf %168, %163 : vector<112x112xf32>
    %cst_56 = arith.constant 2.000000e+00 : f32
    %170 = vector.broadcast %cst_56 : f32 to vector<112x112xf32>
    %171 = arith.mulf %170, %163 : vector<112x112xf32>
    %cst_57 = arith.constant 9.99999974E-5 : f32
    %172 = vector.broadcast %cst_57 : f32 to vector<112x112xf32>
    %173 = arith.addf %171, %172 : vector<112x112xf32>
    %cst_58 = arith.constant 2.000000e+00 : f32
    %174 = vector.broadcast %cst_58 : f32 to vector<112x112xf32>
    %175 = arith.mulf %174, %169 : vector<112x112xf32>
    %cst_59 = arith.constant 8.99999984E-4 : f32
    %176 = vector.broadcast %cst_59 : f32 to vector<112x112xf32>
    %177 = arith.addf %175, %176 : vector<112x112xf32>
    %178 = arith.mulf %173, %177 : vector<112x112xf32>
    %179 = tpu.reciprocal %162 {approx = true} : vector<112x112xf32> -> vector<112x112xf32>
    %180 = arith.mulf %178, %179 : vector<112x112xf32>
    %181 = arith.addf %131, %180 : vector<112x112xf32>
    %182 = vector.shape_cast %181 : vector<112x112xf32> to vector<1x112x112xf32>
    %cst_60 = arith.constant dense<0.000000e+00> : vector<1xf32>
    %183 = vector.multi_reduction <add>, %182, %cst_60 [1, 2] : vector<1x112x112xf32> to vector<1xf32>
    %184 = vector.shape_cast %183 : vector<1xf32> to vector<1x1x1xf32>
    %185 = vector.extract %184[0, 0, 0] : f32 from vector<1x1x1xf32>
    %186 = vector.broadcast %185 : f32 to vector<1x8x128xf32>
    %c0_61 = arith.constant 0 : index
    %c0_62 = arith.constant 0 : index
    %c0_63 = arith.constant 0 : index
    %187 = vector.load %arg4[%c0_61, %c0_62, %c0_63] : memref<1x8x128xf32, #tpu.memory_space<vmem>>, vector<1x8x128xf32>
    tpu.vector_store %arg4[%c0_61, %c0_62, %c0_63], %186 {strides = array<i32>} : memref<1x8x128xf32, #tpu.memory_space<vmem>>, vector<1x8x128xf32>,
    return
  }
  func.func @transform_0(%arg0: i32) -> (i32, i32) {
    %c0_i32 = arith.constant 0 : i32
    %c0_i32_0 = arith.constant 0 : i32
    %c0_i32_1 = arith.constant 0 : i32
    return %c0_i32, %c0_i32_0 : i32, i32
  }
  func.func @transform_1(%arg0: i32) -> (i32, i32, i32) {
    %c0_i32 = arith.constant 0 : i32
    %c0_i32_0 = arith.constant 0 : i32
    %c0_i32_1 = arith.constant 0 : i32
    return %arg0, %c0_i32, %c0_i32_0 : i32, i32, i32
  }
  func.func @transform_2(%arg0: i32) -> (i32, i32, i32) {
    %c0_i32 = arith.constant 0 : i32
    %c0_i32_0 = arith.constant 0 : i32
    %c0_i32_1 = arith.constant 0 : i32
    return %arg0, %c0_i32, %c0_i32_0 : i32, i32, i32
  }
  func.func @transform_3(%arg0: i32) -> (i32, i32, i32) {
    %c0_i32 = arith.constant 0 : i32
    %c0_i32_0 = arith.constant 0 : i32
    %c0_i32_1 = arith.constant 0 : i32
    return %arg0, %c0_i32, %c0_i32_0 : i32, i32, i32
  }
}

</mosaic_0001>

<bundles_post_ra>
// kernel: attacker_loss.1
= control target key start
LH: loop header
LB: loop body
LE: loop exit
PB: predicated region body
PF: predicated region fallthrough
CT: control target
= control target key end

     0   :  { %8 = vsyncpa [#allocation3], 0  ;;  %s10288_s0 = inlined_call_operand.hbm [shape: bf16[112,112], index: 0, kind: input, shape index: {}]   ;;  %s10289_s1 = inlined_call_operand.hbm [shape: f32[6,112,112], index: 1, kind: input, shape index: {}]   ;;  %s10290_s2 = inlined_call_operand.hbm [shape: f32[6,112,112], index: 2, kind: input, shape index: {}]   ;;  %s10291_s3 = inlined_call_operand.vmem [shape: f32[2,8,128], index: 3, kind: output, shape index: {}]  }
   0x1   :  { %9 = vsyncpa [#allocation5], 0 }
   0x2   :  { %11 = vsyncpa [#allocation5 + $0x1], 0  ;;  %s6659_s12 = smov 0   ;;  %s6661_s13 = smov 0  }
   0x3   :  { %s6663_s14 = smov 0   ;;  %s6665_s15 = smov 0  }
   0x4 LB: > { %s6680_s16 = sadd.s32 1, %s6628_s15   ;;  %s45_s17 = sadd.s32 1, %s6624_s14  ;;  %s6628_s15 = sphi %s6665_s15, %s11037_s15   ;;  %s6624_s14 = sphi %s6663_s14, %s11036_s14   ;;  %s6620_s13 = sphi %s6661_s13, %s11035_s13   ;;  %s6616_s12 = sphi %s6659_s12, %s11034_s12  }
   0x5   : > { %s42_s18 = ssub.s32 %s6628_s15, %s6680_s16  ;;  %p52_p0 = scmp.ne.s32.totalorder %s6624_s14, %s6620_s13 }
   0x6   : > { %p43_p1 = scmp.eq.s32.totalorder %s42_s18, 0  ;;  %p53_p2 = scmp.eq.s32.totalorder %s6628_s15, 0 }
   0x7   : > { %p6267_p3 = scmp.lt.s32.totalorder %s6628_s15, 2  ;;  %s147_s20 = sand.u32 1, %s6628_s15  }
   0x8   : > { %s6690_s19 = scalar_select %p43_p1, %s6624_s14, %s45_s17  }
   0x9   : > { %p54_p4 = por %p53_p2, %p52_p0  ;;  %s149_s21 = sand.u32 1, %s6624_s14  }
   0xa   : > { %s6694_s22 = smul.u32 336, %s149_s21  ;;  %s6711_s30 = scalar_lea.sflag [#allocation5], %s147_s20 }
   0xb   : > { %p6696_p5 = pnand %p6267_p3, %p54_p4  ;;  %s6268_s24 = smul.u32 5376, %s6628_s15 }
   0xc   : > { %s151_s25 = scalar_lea.vmem [#allocation4], %s6694_s22  ;;  %s6507_s7 = scalar_lea.hbm %s10289_s1, 10752 }
   0xd   : > { %s10470_s23 = scalar_select %p6696_p5, 1, 0 }
   0xe   : > { %s159_s26 = sshll.u32 %s151_s25, 4  ;;  %s6707_s29 = scalar_lea.hbm %s10289_s1, %s6268_s24  ;;  %s6709_s26 = int_to_ptr.vmem [resolvable:$true] %s159_s26 }
   0xf   : > { %s6502_s4 = scalar_lea.hbm %s6707_s29, 5376  ;;  %p10293_p7 = pneg %p6696_p5 }
  0x10   : > { %p6503_p6 = scmp.ne.s32.totalorder %s6707_s29, %s6502_s4  ;;  %p6508_p10 = scmp.lt.u32.totalorder %s6707_s29, %s10289_s1 }
  0x11   : > { %p6509_p11 = scmp.lt.u32.totalorder %s6507_s7, %s6502_s4  ;;  %p6511_p13 = scmp.lt.u32.totalorder %s6502_s4, %s6707_s29 }
  0x12   : > { %p6505_p8 = pnand %p10293_p7, %p6503_p6 }
  0x13   : > { %p6510_p12 = por %p6509_p11, %p6508_p10 }
  0x14   : > { %p6506_p9 = pneg %p6505_p8 }
  0x15   : > { %p6512_p0 = por %p6511_p13, %p6510_p12 }
  0x17   : > { %p6513_p1 = pnand %p6512_p0, %p6506_p9 }
  0x19   : > { %6516 = shalt.err (!%p6513_p1)
}
  0x1a   : > { %s6517_s10 = scalar_lea.vmem %s6709_s26, 5376  ;;  %s6630_s11 = smov [#allocation4]  }
  0x1b   : > { %p6518_p2 = scmp.ne.s32.totalorder %s6709_s26, %s6517_s10  ;;  %s6522_s17 = sshll.u32 %s6630_s11, 4  ;;  %s6523_s17 = int_to_ptr.vmem [resolvable:$false] %s6522_s17 }
  0x1c   : > { %s6524_s18 = scalar_lea.vmem %s6523_s17, 10752  ;;  %p6525_p6 = scmp.lt.s32.totalorder %s6709_s26, %s6523_s17 }
  0x1d   : > { %p6520_p3 = pnand %p6518_p2, %p10293_p7  ;;  %p6526_p8 = scmp.lt.s32.totalorder %s6524_s18, %s6517_s10 }
  0x1f   : > { %p6521_p4 = pneg %p6520_p3  ;;  %p6527_p10 = por %p6526_p8, %p6525_p6 }
  0x21   : > { %p6528_p11 = pnand %p6527_p10, %p6521_p4 }
  0x23   : > { %6531 = shalt.err (!%p6528_p11)
}
  0x24   : > { %s6631_s20 = smov 128   ;;  %s6632_s21 = smov 8  }
  0x25   : > { %6262 = dma.hbm_to_vmem [thread:$0]  (!%p6696_p5), %s6707_s29, 5376, %s6709_s26, %s6711_s30, %s6631_s20, %s6631_s20, %s6632_s21  }
  0x26   : > { %s6743_s25 = sadd.s32 4294967295, %s6628_s15   ;;  %p58_p9 = scmp.ne.s32.totalorder %s6620_s13, %s6616_s12 }
  0x27   : > { %p10292_p12 = scmp.eq.s32.totalorder %s6743_s25, 0  ;;  %p4543_p13 = scmp.ge.s32.totalorder %s6628_s15, 1 }
  0x28   : > { %p121_p0 = scmp.lt.s32.totalorder %s6628_s15, 3  ;;  %s6633_s26 = smov [#allocation2]  }
  0x29   : > { %p6752_p1 = por %p10292_p12, %p58_p9  ;;  %s133_s29 = sshll.u32 %s6633_s26, 4  ;;  %s134_s29 = int_to_ptr.vmem [resolvable:$true] %s133_s29 }
  0x2a   : > { %p6756_p2 = pnand %p4543_p13, %p121_p0  ;;  %s6773_s6 = scalar_lea.hbm %s10290_s2, %s6268_s24 }
  0x2b   : > { %s10471_s27 = scalar_select %p6752_p1, 1, 0 }
  0x2c   : > { %s10472_s28 = scalar_select %p6756_p2, 1, 0 }
  0x2d   : > { %p6255_p3 = pneg %p6756_p2  ;;  %s173_s7 = scalar_lea.vmem [#allocation6], %s6694_s22 }
  0x2e   : > { %s181_s8 = sshll.u32 %s173_s7, 4  ;;  %s6532_s11 = scalar_lea.hbm %s10288_s0, 896  ;;  %s6776_s8 = int_to_ptr.vmem [resolvable:$true] %s181_s8 }
  0x2f   : > { %p6764_p4 = pnand %p6255_p3, %p10292_p12  ;;  %p6533_p6 = scmp.ne.s32.totalorder %s10288_s0, %s6532_s11 }
  0x30   : > { %p6539_p9 = scmp.lt.u32.totalorder %s6532_s11, %s10288_s0 }
  0x31   : > { %p6534_p8 = pneg %p6764_p4 }
  0x33   : > { %p6535_p10 = pnand %p6534_p8, %p6533_p6 }
  0x35   : > { %p6536_p11 = pneg %p6535_p10 }
  0x37   : > { %p6541_p13 = pnand %p6539_p9, %p6536_p11 }
  0x39   : > { %6544 = shalt.err (!%p6541_p13)
}
  0x3a   : > { %s6545_s22 = scalar_lea.vmem %s134_s29, 896  ;;  %p6553_p7 = scmp.lt.s32.totalorder %s134_s29, %s134_s29 }
  0x3b   : > { %p6546_p0 = scmp.ne.s32.totalorder %s134_s29, %s6545_s22  ;;  %p6554_p1 = scmp.lt.s32.totalorder %s6545_s22, %s6545_s22 }
  0x3d   : > { %p6548_p3 = pnand %p6546_p0, %p6534_p8  ;;  %p6555_p2 = por %p6554_p1, %p6553_p7 }
  0x3f   : > { %p6549_p12 = pneg %p6548_p3 }
  0x41   : > { %p6556_p5 = pnand %p6555_p2, %p6549_p12 }
  0x43   : > { %6559 = shalt.err (!%p6556_p5)
}
  0x44   : > { %s6634_s24 = smov 64   ;;  %s6635_s4 = smov 4  }
  0x45   : > { %6258 = dma.hbm_to_vmem [thread:$0]  (!%p6764_p4), %s10288_s0, 896, %s134_s29, [#allocation3], %s6634_s24, %s6634_s24, %s6635_s4  }
  0x46   : > { %s6560_s9 = scalar_lea.hbm %s6773_s6, 5376  ;;  %p10474_p8 = scmp.ne.s32.totalorder %s10470_s23, 0 }
  0x47   : > { %p6561_p6 = scmp.ne.s32.totalorder %s6773_s6, %s6560_s9  ;;  %s6565_s17 = scalar_lea.hbm %s10290_s2, 10752 }
  0x48   : > { %p10475_p10 = pneg %p10474_p8  ;;  %p6566_p5 = scmp.lt.u32.totalorder %s6773_s6, %s10290_s2 }
  0x49   : > { %p6567_p1 = scmp.lt.u32.totalorder %s6565_s17, %s6560_s9  ;;  %p6569_p11 = scmp.lt.u32.totalorder %s6560_s9, %s6773_s6 }
  0x4a   : > { %p6563_p7 = pnand %p6561_p6, %p10475_p10 }
  0x4b   : > { %p6568_p2 = por %p6567_p1, %p6566_p5 }
  0x4c   : > { %p6564_p12 = pneg %p6563_p7 }
  0x4d   : > { %p6570_p9 = por %p6569_p11, %p6568_p2 }
  0x4f   : > { %p6571_p13 = pnand %p6570_p9, %p6564_p12 }
  0x51   : > { %6574 = shalt.err (!%p6571_p13)
}
  0x52   : > { %s6575_s29 = scalar_lea.vmem %s6776_s8, 5376  ;;  %p10476_p0 = pmov %p10475_p10 }
  0x53   : > { %p6576_p4 = scmp.ne.s32.totalorder %s6776_s8, %s6575_s29  ;;  %s6636_s12 = smov [#allocation6]  }
  0x54   : > { %s6580_s26 = sshll.u32 %s6636_s12, 4  ;;  %s6581_s26 = int_to_ptr.vmem [resolvable:$false] %s6580_s26 }
  0x55   : > { %p6578_p3 = pnand %p6576_p4, %p10476_p0  ;;  %s6582_s22 = scalar_lea.vmem %s6581_s26, 10752 }
  0x56   : > { %p6583_p10 = scmp.lt.s32.totalorder %s6776_s8, %s6581_s26  ;;  %p6584_p7 = scmp.lt.s32.totalorder %s6582_s22, %s6575_s29 }
  0x57   : > { %p6579_p6 = pneg %p6578_p3 }
  0x58   : > { %p6585_p5 = por %p6584_p7, %p6583_p10 }
  0x5a   : > { %p6586_p1 = pnand %p6585_p5, %p6579_p6 }
  0x5c   : > { %6589 = shalt.err (!%p6586_p1)
}
  0x5d   : > { %6265 = dma.hbm_to_vmem [thread:$0]  (!%p10474_p8), %s6773_s6, 5376, %s6776_s8, %s6711_s30, %s6631_s20, %s6631_s20, %s6632_s21  }
  0x5e   : > { %p10477_p12 = scmp.ne.s32.totalorder %s10472_s28, 0 }
  0x60   : > { %193 = sbr.rel (%p10477_p12) target bundleno = 1509 (0x5e5), region = 32 }
  0x67   : > { %p10478_p2 = scmp.eq.s32.totalorder %s6743_s25, 0 }
  0x69   : > { %6607 = dma.done.wait (%p10478_p2), [#allocation3], 896   ;;  %p10479_p11 = pmov %p10478_p2 }
  0x6a   : > { %s199_s23 = sand.u32 1, %s6743_s25   ;;  %s201_s24 = sand.u32 1, %s6620_s13  }
  0x6b   : > { %6609 = vsyncadd (%p10479_p11), [#allocation3], 4294966400  ;;  %s6244_s4 = smul.u32 336, %s201_s24  ;;  %s200_s5 = scalar_lea.sflag [#allocation5], %s199_s23 }
  0x6c   : > { %p10480_p9 = scmp.ne.s32.totalorder %s10471_s27, 0 }
  0x6d   : > { %s6829_s7 = scalar_lea.vmem [#allocation4], %s6244_s4 }
  0x6e   : > { %6611 = dma.done.wait (%p10480_p9), %s200_s5, 10752  }
  0x6f   : > { %6613 = vsyncadd (%p10480_p9), %s200_s5, 4294956544  ;;  %v10298_v0 = vmov 0.0   ;;  %vm6638_vm0 = vmmov 0   ;;  %v6841_v1 = vld [vmem:[#allocation2] sm:$0xff]   ;;  %v6845_v2 = vld [vmem:[#allocation2 + $0x8] sm:$0xff]   ;;  %s6857_s30 = scalar_lea.vmem [#allocation6], %s6244_s4 }
  0x70   : > { %5120 = vmatprep.subr.bf16.mxu0 %v10298_v0  ;;  %5218 = vmatprep.subr.bf16.mxu1 %v10298_v0  ;;  %v6851_v3 = vld [vmem:[#allocation2 + $0x10] sm:$0xff]   ;;  %v260_v4 = vld [vmem:[%s6829_s7] sm:$0xff]  ;;  %v6887_v18 = vld [vmem:[#allocation2 + $0x20] sm:$0xff]   ;;  %vm407_vm1 = vcmask 916480   ;;  %p241_p8 = scmp.lt.s32.totalorder %s6743_s25, 1 }
  0x71   : > { %5134 = vmatprep.mubr.msk.bf16.mxu0 %vm6638_vm0, %v10298_v0  ;;  %5232 = vmatprep.mubr.msk.bf16.mxu1 %vm6638_vm0, %v10298_v0  ;;  %v261_v5 = vld [vmem:[%s6829_s7 + $0x8] sm:$0xff]  ;;  %v302_v6 = vld [vmem:[%s6857_s30] sm:$0xff]  ;;  %v6860_v7 = vmul.f32 %v260_v4, %v260_v4  ;;  %v6910_v23 = vld [vmem:[%s6829_s7 + $0x10] sm:$0xff] }
  0x72   : > { %5121 = vmatpush3.bf16.msra.mxu0 %v6841_v1  ;;  %5219 = vmatpush3.bf16.msra.mxu1 %v6841_v1  ;;  %v6862_v8 = vmul.f32 %v261_v5, %v261_v5  ;;  %v303_v9 = vld [vmem:[%s6857_s30 + $0x8] sm:$0xff]  ;;  %v6865_v10 = vmul.f32 %v302_v6, %v302_v6  ;;  %v6869_v12 = vmul.f32 %v302_v6, %v260_v4  ;;  %v6875_v14 = vld [vmem:[#allocation2 + $0x18] sm:$0xff]   ;;  %v6893_v19 = vld [vmem:[#allocation2 + $0x28] sm:$0xff]   ;;  %s11039_s25 = smov (!%p241_p8, %s6743_s25), 1 }
  0x73   : > { %5122 = vmatprep.subr.bf16.mxu0 %v10298_v0  ;;  %5220 = vmatprep.subr.bf16.mxu1 %v10298_v0  ;;  %v6867_v11 = vmul.f32 %v303_v9, %v303_v9  ;;  %v6871_v13 = vmul.f32 %v303_v9, %v261_v5  ;;  %v6899_v20 = vld [vmem:[#allocation2 + $0x30] sm:$0xff]   ;;  %v344_v21 = vpack.c.bf16 %v261_v5, %v260_v4  ;;  %v6919_v25 = vld [vmem:[%s6857_s30 + $0x10] sm:$0xff]  ;;  %v6939_v29 = vld [vmem:[%s6829_s7 + $0x20] sm:$0xff]  ;;  %s4550_s20 = sshll.u32 %s11039_s25, 3 }
  0x74   : > { %10481 = vst [vmem:[#allocation9_spill] sm:$0xff] %v6869_v12  ;;  %v693_v22 = vpack.c.bf16 %v303_v9, %v302_v6  ;;  %v6916_v24 = vld [vmem:[%s6829_s7 + $0x18] sm:$0xff]  ;;  %v6946_v30 = vld [vmem:[%s6829_s7 + $0x28] sm:$0xff]  ;;  %v6949_v31 = vld [vmem:[%s6857_s30 + $0x20] sm:$0xff]  ;;  %v10489_v12 = vmov 0.0   ;;  %s244_s28 = scalar_lea.vmem %s10291_s3, %s4550_s20 }
  0x75   : > { %10482 = vst [vmem:[#allocation10_spill] sm:$0xff] %v6871_v13  ;;  %v6922_v26 = vld [vmem:[%s6857_s30 + $0x18] sm:$0xff]  ;;  %v345_v27 = vpack.c.bf16 %v6916_v24, %v6910_v23  ;;  %v6952_v32 = vld [vmem:[%s6857_s30 + $0x28] sm:$0xff]  ;;  %v346_v33 = vpack.c.bf16 %v6946_v30, %v6939_v29  ;;  %v6969_v35 = vld [vmem:[%s6829_s7 + $0x30] sm:$0xff] }
  0x76   : > { %5123 = vmatpush3.bf16.msra.mxu0 %v6845_v2  ;;  %5221 = vmatpush3.bf16.msra.mxu1 %v6845_v2  ;;  %v694_v28 = vpack.c.bf16 %v6922_v26, %v6919_v25  ;;  %v695_v34 = vpack.c.bf16 %v6952_v32, %v6949_v31  ;;  %v6976_v36 = vld [vmem:[%s6829_s7 + $0x38] sm:$0xff]  ;;  %v6979_v37 = vld [vmem:[%s6857_s30 + $0x30] sm:$0xff]  ;;  %v6999_v41 = vld [vmem:[%s6829_s7 + $0x40] sm:$0xff] }
  0x77   : > { %5124 = vmatprep.subr.bf16.mxu0 %v10298_v0  ;;  %5222 = vmatprep.subr.bf16.mxu1 %v10298_v0  ;;  %v6982_v38 = vld [vmem:[%s6857_s30 + $0x38] sm:$0xff]  ;;  %v347_v39 = vpack.c.bf16 %v6976_v36, %v6969_v35  ;;  %v7006_v42 = vld [vmem:[%s6829_s7 + $0x48] sm:$0xff]  ;;  %v7009_v43 = vld [vmem:[%s6857_s30 + $0x40] sm:$0xff] }
  0x78   : > { %v696_v40 = vpack.c.bf16 %v6982_v38, %v6979_v37  ;;  %v7012_v44 = vld [vmem:[%s6857_s30 + $0x48] sm:$0xff]  ;;  %v348_v45 = vpack.c.bf16 %v7006_v42, %v6999_v41  ;;  %v7026_v47 = vld [vmem:[%s6829_s7 + $0x50] sm:$0xff]  ;;  %v7033_v48 = vld [vmem:[%s6829_s7 + $0x58] sm:$0xff] }
  0x79   : > { %v697_v46 = vpack.c.bf16 %v7012_v44, %v7009_v43  ;;  %v7036_v49 = vld [vmem:[%s6857_s30 + $0x50] sm:$0xff]  ;;  %v7039_v50 = vld [vmem:[%s6857_s30 + $0x58] sm:$0xff]  ;;  %v349_v51 = vpack.c.bf16 %v7033_v48, %v7026_v47  ;;  %v7048_v53 = vld [vmem:[%s6829_s7 + $0x60] sm:$0xff] }
  0x7a   : > { %5125 = vmatpush3.bf16.msra.mxu0 %v6851_v3  ;;  %5223 = vmatpush3.bf16.msra.mxu1 %v6851_v3  ;;  %v698_v52 = vpack.c.bf16 %v7039_v50, %v7036_v49  ;;  %v7055_v54 = vld [vmem:[%s6829_s7 + $0x68] sm:$0xff]  ;;  %v7058_v55 = vld [vmem:[%s6857_s30 + $0x60] sm:$0xff]  ;;  %v7070_v59 = vld [vmem:[%s6829_s7 + $0x70] sm:$0xff] }
  0x7b   : > { %5126 = vmatprep.subr.bf16.mxu0 %v10298_v0  ;;  %5224 = vmatprep.subr.bf16.mxu1 %v10298_v0  ;;  %v7061_v56 = vld [vmem:[%s6857_s30 + $0x68] sm:$0xff]  ;;  %v350_v57 = vpack.c.bf16 %v7055_v54, %v7048_v53  ;;  %v7077_v60 = vld [vmem:[%s6829_s7 + $0x78] sm:$0xff]  ;;  %v7080_v61 = vld [vmem:[%s6857_s30 + $0x70] sm:$0xff] }
  0x7c   : > { %v699_v58 = vpack.c.bf16 %v7061_v56, %v7058_v55  ;;  %v7083_v62 = vld [vmem:[%s6857_s30 + $0x78] sm:$0xff]  ;;  %v351_v63 = vpack.c.bf16 %v7077_v60, %v7070_v59  ;;  %v7092_v5 = vld [vmem:[%s6829_s7 + $0x80] sm:$0xff]  ;;  %v7099_v6 = vld [vmem:[%s6829_s7 + $0x88] sm:$0xff] }
  0x7d   : > { %v700_v4 = vpack.c.bf16 %v7083_v62, %v7080_v61  ;;  %v7102_v9 = vld [vmem:[%s6857_s30 + $0x80] sm:$0xff]  ;;  %v7187_v17 = vld [vmem:[%s6829_s7 + $0xc8] sm:$0xff]  ;;  %v7209_v13 = vld [vmem:[%s6829_s7 + $0xd8] sm:$0xff] }
  0x7e   : > { %5127 = vmatpush3.bf16.msra.mxu0 %v6875_v14  ;;  %5225 = vmatpush3.bf16.msra.mxu1 %v6875_v14  ;;  %10485 = vst [vmem:[#allocation13_spill] sm:$0xff] %v7187_v17  ;;  %v7190_v16 = vld [vmem:[%s6857_s30 + $0xc0] sm:$0xff]  ;;  %v7193_v15 = vld [vmem:[%s6857_s30 + $0xc8] sm:$0xff]  ;;  %10490 = vst [vmem:[#allocation17_spill] sm:$0xff] %v7209_v13 }
  0x7f   : > { %5128 = vmatprep.subr.bf16.mxu0 %v10298_v0  ;;  %5226 = vmatprep.subr.bf16.mxu1 %v10298_v0  ;;  %10486 = vst [vmem:[#allocation14_spill] sm:$0xff] %v7190_v16  ;;  %10487 = vst [vmem:[#allocation15_spill] sm:$0xff] %v7193_v15 }
  0x82   : > { %5129 = vmatpush3.bf16.msra.mxu0 %v6887_v18  ;;  %5227 = vmatpush3.bf16.msra.mxu1 %v6887_v18 }
  0x83   : > { %5130 = vmatprep.subr.bf16.mxu0 %v10298_v0  ;;  %5228 = vmatprep.subr.bf16.mxu1 %v10298_v0 }
  0x86   : > { %5131 = vmatpush3.bf16.msra.mxu0 %v6893_v19  ;;  %5229 = vmatpush3.bf16.msra.mxu1 %v6893_v19 }
  0x87   : > { %5132 = vmatprep.subr.bf16.mxu0 %v10298_v0  ;;  %5230 = vmatprep.subr.bf16.mxu1 %v10298_v0 }
  0x8a   : > { %5133 = vmatpush3.bf16.msra.mxu0 %v6899_v20  ;;  %5231 = vmatpush3.bf16.msra.mxu1 %v6899_v20 }
  0x8b   : > { %5316 = vmatprep.subr.bf16.mxu0 %v10298_v0  ;;  %5414 = vmatprep.subr.bf16.mxu1 %v10298_v0 }
  0x8d   : > { %5135 = vmatmul.mubr.msk.bf16.vlgmr.msra.gmra.mrb[0].mxu0 %vm407_vm1, %v344_v21  ;;  %5233 = vmatmul.mubr.msk.bf16.vlgmr.msra.gmra.mrb[0].mxu1 %vm407_vm1, %v693_v22  ;;  %v7105_v21 = vld [vmem:[%s6857_s30 + $0x88] sm:$0xff]  ;;  %v352_v22 = vpack.c.bf16 %v7099_v6, %v7092_v5 }
  0x8e   : > { %5317 = vmatpush3.bf16.msra.mxu0 %v6841_v1  ;;  %5138 = vmatprep.mubr.msk.bf16.mxu0 %vm6638_vm0, %v10298_v0 }
  0x8f   : > { %5236 = vmatprep.mubr.msk.bf16.mxu1 %vm6638_vm0, %v10298_v0  ;;  %5318 = vmatprep.subr.bf16.mxu0 %v10298_v0 }
  0x90   : > { %5415 = vmatpush3.bf16.msra.mxu1 %v6841_v1 }
  0x91   : > { %5416 = vmatprep.subr.bf16.mxu1 %v10298_v0 }
  0x92   : > { %5319 = vmatpush3.bf16.msra.mxu0 %v6845_v2 }
  0x93   : > { %5320 = vmatprep.subr.bf16.mxu0 %v10298_v0 }
  0x94   : > { %5417 = vmatpush3.bf16.msra.mxu1 %v6845_v2 }
  0x95   : > { %5139 = vmatmul.mubr.msk.bf16.gmra.mrb[4].mxu0 %vm407_vm1, %v345_v27  ;;  %5237 = vmatmul.mubr.msk.bf16.gmra.mrb[4].mxu1 %vm407_vm1, %v694_v28  ;;  %v701_v27 = vpack.c.bf16 %v7105_v21, %v7102_v9  ;;  %v7114_v28 = vld [vmem:[%s6829_s7 + $0x90] sm:$0xff] }
  0x96   : > { %5142 = vmatprep.mubr.msk.bf16.mxu0 %vm6638_vm0, %v10298_v0  ;;  %5240 = vmatprep.mubr.msk.bf16.mxu1 %vm6638_vm0, %v10298_v0 }
  0x97   : > { %5321 = vmatpush3.bf16.msra.mxu0 %v6851_v3  ;;  %5418 = vmatprep.subr.bf16.mxu1 %v10298_v0 }
  0x98   : > { %5322 = vmatprep.subr.bf16.mxu0 %v10298_v0  ;;  %5419 = vmatpush3.bf16.msra.mxu1 %v6851_v3 }
  0x99   : > { %5420 = vmatprep.subr.bf16.mxu1 %v10298_v0 }
  0x9b   : > { %5323 = vmatpush3.bf16.msra.mxu0 %v6875_v14 }
  0x9c   : > { %5324 = vmatprep.subr.bf16.mxu0 %v10298_v0  ;;  %5421 = vmatpush3.bf16.msra.mxu1 %v6875_v14 }
  0x9d   : > { %5143 = vmatmul.mubr.msk.bf16.gmra.mrb[8].mxu0 %vm407_vm1, %v346_v33  ;;  %5241 = vmatmul.mubr.msk.bf16.gmra.mrb[8].mxu1 %vm407_vm1, %v695_v34  ;;  %v7121_v33 = vld [vmem:[%s6829_s7 + $0x98] sm:$0xff]  ;;  %v7124_v34 = vld [vmem:[%s6857_s30 + $0x90] sm:$0xff] }
  0x9e   : > { %5146 = vmatprep.mubr.msk.bf16.mxu0 %vm6638_vm0, %v10298_v0  ;;  %5244 = vmatprep.mubr.msk.bf16.mxu1 %vm6638_vm0, %v10298_v0 }
  0x9f   : > { %5325 = vmatpush3.bf16.msra.mxu0 %v6887_v18  ;;  %5422 = vmatprep.subr.bf16.mxu1 %v10298_v0 }
  0xa0   : > { %5326 = vmatprep.subr.bf16.mxu0 %v10298_v0  ;;  %5423 = vmatpush3.bf16.msra.mxu1 %v6887_v18 }
  0xa1   : > { %5424 = vmatprep.subr.bf16.mxu1 %v10298_v0 }
  0xa3   : > { %5327 = vmatpush3.bf16.msra.mxu0 %v6893_v19 }
  0xa4   : > { %5328 = vmatprep.subr.bf16.mxu0 %v10298_v0  ;;  %5425 = vmatpush3.bf16.msra.mxu1 %v6893_v19 }
  0xa5   : > { %5147 = vmatmul.mubr.msk.bf16.gmra.mrb[12].mxu0 %vm407_vm1, %v347_v39  ;;  %5245 = vmatmul.mubr.msk.bf16.gmra.mrb[12].mxu1 %vm407_vm1, %v696_v40  ;;  %v7127_v39 = vld [vmem:[%s6857_s30 + $0x98] sm:$0xff]  ;;  %v353_v40 = vpack.c.bf16 %v7121_v33, %v7114_v28 }
  0xa6   : > { %5150 = vmatprep.mubr.msk.bf16.mxu0 %vm6638_vm0, %v10298_v0  ;;  %5248 = vmatprep.mubr.msk.bf16.mxu1 %vm6638_vm0, %v10298_v0 }
  0xa7   : > { %5329 = vmatpush3.bf16.msra.mxu0 %v6899_v20  ;;  %5426 = vmatprep.subr.bf16.mxu1 %v10298_v0 }
  0xa8   : > { %5427 = vmatpush3.bf16.msra.mxu1 %v6899_v20  ;;  %5512 = vmatprep.subr.bf16.mxu0 %v10298_v0 }
  0xa9   : > { %5610 = vmatprep.subr.bf16.mxu1 %v10298_v0 }
  0xad   : > { %5151 = vmatmul.mubr.msk.bf16.gmra.mrb[16].mxu0 %vm407_vm1, %v348_v45  ;;  %5249 = vmatmul.mubr.msk.bf16.gmra.mrb[16].mxu1 %vm407_vm1, %v697_v46  ;;  %v702_v45 = vpack.c.bf16 %v7127_v39, %v7124_v34  ;;  %v7136_v46 = vld [vmem:[%s6829_s7 + $0xa0] sm:$0xff] }
  0xae   : > { %5154 = vmatprep.mubr.msk.bf16.mxu0 %vm6638_vm0, %v10298_v0  ;;  %5252 = vmatprep.mubr.msk.bf16.mxu1 %vm6638_vm0, %v10298_v0 }
  0xb5   : > { %5155 = vmatmul.mubr.msk.bf16.gmra.mrb[20].mxu0 %vm407_vm1, %v349_v51  ;;  %5253 = vmatmul.mubr.msk.bf16.gmra.mrb[20].mxu1 %vm407_vm1, %v698_v52  ;;  %v7143_v51 = vld [vmem:[%s6829_s7 + $0xa8] sm:$0xff]  ;;  %v7146_v52 = vld [vmem:[%s6857_s30 + $0xa0] sm:$0xff] }
  0xb6   : > { %5158 = vmatprep.mubr.msk.bf16.mxu0 %vm6638_vm0, %v10298_v0  ;;  %5256 = vmatprep.mubr.msk.bf16.mxu1 %vm6638_vm0, %v10298_v0 }
  0xbd   : > { %5159 = vmatmul.mubr.msk.bf16.gmra.mrb[24].mxu0 %vm407_vm1, %v350_v57  ;;  %5257 = vmatmul.mubr.msk.bf16.gmra.mrb[24].mxu1 %vm407_vm1, %v699_v58  ;;  %v7149_v57 = vld [vmem:[%s6857_s30 + $0xa8] sm:$0xff]  ;;  %v354_v58 = vpack.c.bf16 %v7143_v51, %v7136_v46 }
  0xbe   : > { %5162 = vmatprep.mubr.msk.bf16.mxu0 %vm6638_vm0, %v10298_v0  ;;  %5260 = vmatprep.mubr.msk.bf16.mxu1 %vm6638_vm0, %v10298_v0 }
  0xc5   : > { %5163 = vmatmul.mubr.msk.bf16.gmra.mrb[28].mxu0 %vm407_vm1, %v351_v63  ;;  %5261 = vmatmul.mubr.msk.bf16.gmra.mrb[28].mxu1 %vm407_vm1, %v700_v4  ;;  %v703_v63 = vpack.c.bf16 %v7149_v57, %v7146_v52  ;;  %v7158_v4 = vld [vmem:[%s6829_s7 + $0xb0] sm:$0xff] }
  0xc6   : > { %5166 = vmatprep.mubr.msk.bf16.mxu0 %vm6638_vm0, %v10298_v0  ;;  %5264 = vmatprep.mubr.msk.bf16.mxu1 %vm6638_vm0, %v10298_v0 }
  0xcd   : > { %5167 = vmatmul.mubr.msk.bf16.gmra.mrb[32].mxu0 %vm407_vm1, %v352_v22  ;;  %5265 = vmatmul.mubr.msk.bf16.gmra.mrb[32].mxu1 %vm407_vm1, %v701_v27  ;;  %v7165_v22 = vld [vmem:[%s6829_s7 + $0xb8] sm:$0xff]  ;;  %v7168_v27 = vld [vmem:[%s6857_s30 + $0xb0] sm:$0xff] }
  0xce   : > { %5170 = vmatprep.mubr.msk.bf16.mxu0 %vm6638_vm0, %v10298_v0  ;;  %5268 = vmatprep.mubr.msk.bf16.mxu1 %vm6638_vm0, %v10298_v0 }
  0xd5   : > { %5171 = vmatmul.mubr.msk.bf16.gmra.mrb[36].mxu0 %vm407_vm1, %v353_v40  ;;  %5269 = vmatmul.mubr.msk.bf16.gmra.mrb[36].mxu1 %vm407_vm1, %v702_v45  ;;  %v7171_v40 = vld [vmem:[%s6857_s30 + $0xb8] sm:$0xff]  ;;  %v355_v45 = vpack.c.bf16 %v7165_v22, %v7158_v4 }
  0xd6   : > { %5174 = vmatprep.mubr.msk.bf16.mxu0 %vm6638_vm0, %v10298_v0  ;;  %5272 = vmatprep.mubr.msk.bf16.mxu1 %vm6638_vm0, %v10298_v0  ;;  %10483 = vst [vmem:[#allocation11_spill] sm:$0xff] %v7171_v40 }
  0xdd   : > { %5175 = vmatmul.mubr.msk.bf16.gmra.mrb[40].mxu0 %vm407_vm1, %v354_v58  ;;  %5273 = vmatmul.mubr.msk.bf16.gmra.mrb[40].mxu1 %vm407_vm1, %v703_v63  ;;  %v704_v58 = vpack.c.bf16 %v7171_v40, %v7168_v27  ;;  %v7180_v63 = vld [vmem:[%s6829_s7 + $0xc0] sm:$0xff] }
  0xde   : > { %5178 = vmatprep.mubr.msk.bf16.mxu0 %vm6638_vm0, %v10298_v0  ;;  %5276 = vmatprep.mubr.msk.bf16.mxu1 %vm6638_vm0, %v10298_v0  ;;  %10484 = vst [vmem:[#allocation12_spill] sm:$0xff] %v7180_v63  ;;  %v7366_v40 = vld [vmem:[%s6857_s30 + $0x140] sm:$0xff] }
  0xdf   : > { %10516 = vst [vmem:[#allocation43_spill] sm:$0xff] %v7366_v40 }
  0xe5   : > { %5179 = vmatmul.mubr.msk.bf16.gmra.mrb[44].mxu0 %vm407_vm1, %v355_v45  ;;  %5277 = vmatmul.mubr.msk.bf16.gmra.mrb[44].mxu1 %vm407_vm1, %v704_v58  ;;  %v356_v45 = vpack.c.bf16 %v7187_v17, %v7180_v63  ;;  %v705_v58 = vpack.c.bf16 %v7193_v15, %v7190_v16  ;;  %v7212_v17 = vld [vmem:[%s6857_s30 + $0xd0] sm:$0xff]  ;;  %v7215_v15 = vld [vmem:[%s6857_s30 + $0xd8] sm:$0xff]  ;;  %v7224_v16 = vld [vmem:[%s6829_s7 + $0xe0] sm:$0xff] }
  0xe6   : > { %5182 = vmatprep.mubr.msk.bf16.mxu0 %vm6638_vm0, %v10298_v0  ;;  %5280 = vmatprep.mubr.msk.bf16.mxu1 %vm6638_vm0, %v10298_v0  ;;  %v7202_v0 = vld [vmem:[%s6829_s7 + $0xd0] sm:$0xff]  ;;  %10491 = vst [vmem:[#allocation18_spill] sm:$0xff] %v7212_v17  ;;  %10492 = vst [vmem:[#allocation19_spill] sm:$0xff] %v7215_v15  ;;  %v7231_v63 = vld [vmem:[%s6829_s7 + $0xe8] sm:$0xff] }
  0xe7   : > { %10488 = vst [vmem:[#allocation16_spill] sm:$0xff] %v7202_v0  ;;  %10493 = vst [vmem:[#allocation20_spill] sm:$0xff] %v7224_v16 }
  0xe8   : > { %10494 = vst [vmem:[#allocation21_spill] sm:$0xff] %v7231_v63 }
  0xed   : > { %5183 = vmatmul.mubr.msk.bf16.gmra.mrb[48].mxu0 %vm407_vm1, %v356_v45  ;;  %5281 = vmatmul.mubr.msk.bf16.gmra.mrb[48].mxu1 %vm407_vm1, %v705_v58  ;;  %v357_v45 = vpack.c.bf16 %v7209_v13, %v7202_v0  ;;  %v706_v58 = vpack.c.bf16 %v7215_v15, %v7212_v17  ;;  %v7234_v13 = vld [vmem:[%s6857_s30 + $0xe0] sm:$0xff]  ;;  %v7237_v15 = vld [vmem:[%s6857_s30 + $0xe8] sm:$0xff]  ;;  %v7246_v17 = vld [vmem:[%s6829_s7 + $0xf0] sm:$0xff] }
  0xee   : > { %5186 = vmatprep.mubr.msk.bf16.mxu0 %vm6638_vm0, %v10489_v12  ;;  %5284 = vmatprep.mubr.msk.bf16.mxu1 %vm6638_vm0, %v10489_v12  ;;  %10495 = vst [vmem:[#allocation22_spill] sm:$0xff] %v7234_v13  ;;  %10496 = vst [vmem:[#allocation23_spill] sm:$0xff] %v7237_v15  ;;  %v7253_v0 = vld [vmem:[%s6829_s7 + $0xf8] sm:$0xff] }
  0xef   : > { %10497 = vst [vmem:[#allocation24_spill] sm:$0xff] %v7246_v17  ;;  %10498 = vst [vmem:[#allocation25_spill] sm:$0xff] %v7253_v0 }
  0xf5   : > { %5187 = vmatmul.mubr.msk.bf16.gmra.mrb[52].mxu0 %vm407_vm1, %v357_v45  ;;  %5285 = vmatmul.mubr.msk.bf16.gmra.mrb[52].mxu1 %vm407_vm1, %v706_v58  ;;  %v358_v45 = vpack.c.bf16 %v7231_v63, %v7224_v16  ;;  %v707_v58 = vpack.c.bf16 %v7237_v15, %v7234_v13  ;;  %v7256_v63 = vld [vmem:[%s6857_s30 + $0xf0] sm:$0xff]  ;;  %v7259_v15 = vld [vmem:[%s6857_s30 + $0xf8] sm:$0xff]  ;;  %v7268_v13 = vld [vmem:[%s6829_s7 + $0x100] sm:$0xff] }
  0xf6   : > { %5190 = vmatprep.mubr.msk.bf16.mxu0 %vm6638_vm0, %v10489_v12  ;;  %5288 = vmatprep.mubr.msk.bf16.mxu1 %vm6638_vm0, %v10489_v12  ;;  %10499 = vst [vmem:[#allocation26_spill] sm:$0xff] %v7256_v63  ;;  %10500 = vst [vmem:[#allocation27_spill] sm:$0xff] %v7259_v15  ;;  %v7275_v16 = vld [vmem:[%s6829_s7 + $0x108] sm:$0xff] }
  0xf7   : > { %10501 = vst [vmem:[#allocation28_spill] sm:$0xff] %v7268_v13  ;;  %10502 = vst [vmem:[#allocation29_spill] sm:$0xff] %v7275_v16 }
  0xfd   : > { %5191 = vmatmul.mubr.msk.bf16.gmra.mrb[56].mxu0 %vm407_vm1, %v358_v45  ;;  %5289 = vmatmul.mubr.msk.bf16.gmra.mrb[56].mxu1 %vm407_vm1, %v707_v58  ;;  %v359_v45 = vpack.c.bf16 %v7253_v0, %v7246_v17  ;;  %v708_v58 = vpack.c.bf16 %v7259_v15, %v7256_v63  ;;  %v7278_v0 = vld [vmem:[%s6857_s30 + $0x100] sm:$0xff]  ;;  %v7281_v15 = vld [vmem:[%s6857_s30 + $0x108] sm:$0xff]  ;;  %v7290_v63 = vld [vmem:[%s6829_s7 + $0x110] sm:$0xff] }
  0xfe   : > { %5194 = vmatprep.mubr.msk.bf16.mxu0 %vm6638_vm0, %v10489_v12  ;;  %5292 = vmatprep.mubr.msk.bf16.mxu1 %vm6638_vm0, %v10489_v12  ;;  %10503 = vst [vmem:[#allocation30_spill] sm:$0xff] %v7278_v0  ;;  %10504 = vst [vmem:[#allocation31_spill] sm:$0xff] %v7281_v15  ;;  %v7297_v17 = vld [vmem:[%s6829_s7 + $0x118] sm:$0xff] }
  0xff   : > { %10505 = vst [vmem:[#allocation32_spill] sm:$0xff] %v7290_v63  ;;  %10506 = vst [vmem:[#allocation33_spill] sm:$0xff] %v7297_v17 }
 0x105   : > { %5195 = vmatmul.mubr.msk.bf16.gmra.mrb[60].mxu0 %vm407_vm1, %v359_v45  ;;  %5293 = vmatmul.mubr.msk.bf16.gmra.mrb[60].mxu1 %vm407_vm1, %v708_v58  ;;  %v360_v45 = vpack.c.bf16 %v7275_v16, %v7268_v13  ;;  %v709_v58 = vpack.c.bf16 %v7281_v15, %v7278_v0  ;;  %v7300_v16 = vld [vmem:[%s6857_s30 + $0x110] sm:$0xff]  ;;  %v7303_v15 = vld [vmem:[%s6857_s30 + $0x118] sm:$0xff]  ;;  %v7312_v0 = vld [vmem:[%s6829_s7 + $0x120] sm:$0xff] }
 0x106   : > { %5198 = vmatprep.mubr.msk.bf16.mxu0 %vm6638_vm0, %v10489_v12  ;;  %5296 = vmatprep.mubr.msk.bf16.mxu1 %vm6638_vm0, %v10489_v12  ;;  %10507 = vst [vmem:[#allocation34_spill] sm:$0xff] %v7300_v16  ;;  %10508 = vst [vmem:[#allocation35_spill] sm:$0xff] %v7303_v15  ;;  %v7319_v13 = vld [vmem:[%s6829_s7 + $0x128] sm:$0xff] }
 0x107   : > { %10509 = vst [vmem:[#allocation36_spill] sm:$0xff] %v7312_v0  ;;  %10510 = vst [vmem:[#allocation37_spill] sm:$0xff] %v7319_v13 }
 0x10d   : > { %5199 = vmatmul.mubr.msk.bf16.gmra.mrb[64].mxu0 %vm407_vm1, %v360_v45  ;;  %5297 = vmatmul.mubr.msk.bf16.gmra.mrb[64].mxu1 %vm407_vm1, %v709_v58  ;;  %v361_v45 = vpack.c.bf16 %v7297_v17, %v7290_v63  ;;  %v710_v58 = vpack.c.bf16 %v7303_v15, %v7300_v16  ;;  %v7322_v17 = vld [vmem:[%s6857_s30 + $0x120] sm:$0xff]  ;;  %v7325_v15 = vld [vmem:[%s6857_s30 + $0x128] sm:$0xff]  ;;  %v7334_v16 = vld [vmem:[%s6829_s7 + $0x130] sm:$0xff] }
 0x10e   : > { %5202 = vmatprep.mubr.msk.bf16.mxu0 %vm6638_vm0, %v10489_v12  ;;  %5300 = vmatprep.mubr.msk.bf16.mxu1 %vm6638_vm0, %v10489_v12  ;;  %10511 = vst [vmem:[#allocation38_spill] sm:$0xff] %v7322_v17  ;;  %10512 = vst [vmem:[#allocation39_spill] sm:$0xff] %v7325_v15  ;;  %v7341_v63 = vld [vmem:[%s6829_s7 + $0x138] sm:$0xff] }
 0x10f   : > { %10513 = vst [vmem:[#allocation40_spill] sm:$0xff] %v7341_v63 }
 0x115   : > { %5203 = vmatmul.mubr.msk.bf16.gmra.mrb[68].mxu0 %vm407_vm1, %v361_v45  ;;  %5301 = vmatmul.mubr.msk.bf16.gmra.mrb[68].mxu1 %vm407_vm1, %v710_v58  ;;  %v362_v45 = vpack.c.bf16 %v7319_v13, %v7312_v0  ;;  %v711_v58 = vpack.c.bf16 %v7325_v15, %v7322_v17  ;;  %v7344_v13 = vld [vmem:[%s6857_s30 + $0x130] sm:$0xff]  ;;  %v7347_v15 = vld [vmem:[%s6857_s30 + $0x138] sm:$0xff]  ;;  %v7356_v17 = vld [vmem:[%s6829_s7 + $0x140] sm:$0xff] }
 0x116   : > { %5206 = vmatprep.mubr.msk.bf16.mxu0 %vm6638_vm0, %v10489_v12  ;;  %5304 = vmatprep.mubr.msk.bf16.mxu1 %vm6638_vm0, %v10489_v12  ;;  %10514 = vst [vmem:[#allocation41_spill] sm:$0xff] %v7344_v13  ;;  %10515 = vst [vmem:[#allocation42_spill] sm:$0xff] %v7347_v15  ;;  %v7363_v0 = vld [vmem:[%s6829_s7 + $0x148] sm:$0xff] }
 0x11d   : > { %5207 = vmatmul.mubr.msk.bf16.gmra.mrb[72].mxu0 %vm407_vm1, %v362_v45  ;;  %5305 = vmatmul.mubr.msk.bf16.gmra.mrb[72].mxu1 %vm407_vm1, %v711_v58  ;;  %v363_v45 = vpack.c.bf16 %v7341_v63, %v7334_v16  ;;  %v712_v58 = vpack.c.bf16 %v7347_v15, %v7344_v13  ;;  %v7369_v63 = vld [vmem:[%s6857_s30 + $0x148] sm:$0xff]  ;;  %v364_v15 = vpack.c.bf16 %v7363_v0, %v7356_v17 }
 0x11e   : > { %5210 = vmatprep.mubr.msk.bf16.mxu0 %vm6638_vm0, %v10489_v12  ;;  %5308 = vmatprep.mubr.msk.bf16.mxu1 %vm6638_vm0, %v10489_v12  ;;  %10517 = vst [vmem:[#allocation44_spill] sm:$0xff] %v7369_v63  ;;  %v10518_v13 = vpack.c.bf16 %v6862_v8, %v6860_v7 }
 0x125   : > { %5211 = vmatmul.mubr.msk.bf16.gmra.mrb[76].mxu0 %vm407_vm1, %v363_v45  ;;  %5309 = vmatmul.mubr.msk.bf16.gmra.mrb[76].mxu1 %vm407_vm1, %v712_v58  ;;  %v713_v45 = vpack.c.bf16 %v7369_v63, %v7366_v40  ;;  %v1001_v58 = vmul.f32 %v6910_v23, %v6910_v23  ;;  %v10519_v63 = vpack.c.bf16 %v6867_v11, %v6865_v10 }
 0x126   : > { %5214 = vmatprep.mubr.msk.bf16.mxu0 %vm6638_vm0, %v10489_v12  ;;  %5312 = vmatprep.mubr.msk.bf16.mxu1 %vm6638_vm0, %v10489_v12  ;;  %v1350_v40 = vmul.f32 %v6922_v26, %v6922_v26  ;;  %v1003_v10 = vmul.f32 %v6939_v29, %v6939_v29  ;;  %v1351_v11 = vmul.f32 %v6949_v31, %v6949_v31 }
 0x127   : > { %v1354_v26 = vmul.f32 %v6982_v38, %v6982_v38  ;;  %v1008_v31 = vmul.f32 %v7006_v42, %v7006_v42  ;;  %v1357_v38 = vmul.f32 %v7036_v49, %v7036_v49 }
 0x12d   : > { %5215 = vmatmul.mubr.msk.bf16.gmra.mrb[80].mxu0 %vm407_vm1, %v364_v15  ;;  %5313 = vmatmul.mubr.msk.bf16.gmra.mrb[80].mxu1 %vm407_vm1, %v713_v45  ;;  %v1002_v15 = vmul.f32 %v6916_v24, %v6916_v24  ;;  %v1349_v45 = vmul.f32 %v6919_v25, %v6919_v25  ;;  %v1005_v24 = vmul.f32 %v6969_v35, %v6969_v35 }
 0x12e   : > { %5330 = vmatprep.mubr.msk.bf16.mxu0 %vm6638_vm0, %v10489_v12  ;;  %5428 = vmatprep.mubr.msk.bf16.mxu1 %vm6638_vm0, %v10489_v12  ;;  %v1006_v25 = vmul.f32 %v6976_v36, %v6976_v36  ;;  %v1009_v36 = vmul.f32 %v7026_v47, %v7026_v47  ;;  %v1359_v47 = vmul.f32 %v7058_v55, %v7058_v55 }
 0x12f   : > { %v1042_v7 = vpack.c.bf16 %v1002_v15, %v1001_v58  ;;  %v1390_v8 = vpack.c.bf16 %v1350_v40, %v1349_v45 }
 0x135   : > { %5331 = vmatmul.mubr.msk.bf16.vlgmr.msra.gmra.mrb[84].mxu0 %vm407_vm1, %v10518_v13  ;;  %5429 = vmatmul.mubr.msk.bf16.vlgmr.msra.gmra.mrb[84].mxu1 %vm407_vm1, %v10519_v63  ;;  %v1352_v13 = vmul.f32 %v6952_v32, %v6952_v32  ;;  %v1356_v32 = vmul.f32 %v7012_v44, %v7012_v44  ;;  %v1012_v44 = vmul.f32 %v7055_v54, %v7055_v54 }
 0x136   : > { %5513 = vmatpush3.bf16.msra.mxu0 %v6841_v1  ;;  %5334 = vmatprep.mubr.msk.bf16.mxu0 %vm6638_vm0, %v10489_v12  ;;  %v1004_v1 = vmul.f32 %v6946_v30, %v6946_v30  ;;  %v1007_v30 = vmul.f32 %v6999_v41, %v6999_v41 }
 0x137   : > { %5432 = vmatprep.mubr.msk.bf16.mxu1 %vm6638_vm0, %v10489_v12  ;;  %5514 = vmatprep.subr.bf16.mxu0 %v10489_v12  ;;  %v1391_v23 = vpack.c.bf16 %v1352_v13, %v1351_v11  ;;  %v1362_v11 = vmul.f32 %v7083_v62, %v7083_v62 }
 0x13a   : > { %5515 = vmatpush3.bf16.msra.mxu0 %v6845_v2  ;;  %v1043_v2 = vpack.c.bf16 %v1004_v1, %v1003_v10  ;;  %v1014_v10 = vmul.f32 %v7077_v60, %v7077_v60  ;;  %v1361_v1 = vmul.f32 %v7080_v61, %v7080_v61 }
 0x13b   : > { %5516 = vmatprep.subr.bf16.mxu0 %v10489_v12 }
 0x13d   : > { %5335 = vmatmul.mubr.msk.bf16.gmra.mrb[88].mxu0 %vm407_vm1, %v1042_v7  ;;  %5433 = vmatmul.mubr.msk.bf16.gmra.mrb[88].mxu1 %vm407_vm1, %v1390_v8  ;;  %v1013_v8 = vmul.f32 %v7070_v59, %v7070_v59 }
 0x13e   : > { %5338 = vmatprep.mubr.msk.bf16.mxu0 %vm6638_vm0, %v10489_v12  ;;  %5436 = vmatprep.mubr.msk.bf16.mxu1 %vm6638_vm0, %v10489_v12 }
 0x13f   : > { %5517 = vmatpush3.bf16.msra.mxu0 %v6851_v3  ;;  %v1353_v3 = vmul.f32 %v6979_v37, %v6979_v37  ;;  %v1010_v37 = vmul.f32 %v7033_v48, %v7033_v48  ;;  %v1360_v48 = vmul.f32 %v7061_v56, %v7061_v56  ;;  %v1048_v60 = vpack.c.bf16 %v1014_v10, %v1013_v8 }
 0x140   : > { %5518 = vmatprep.subr.bf16.mxu0 %v10489_v12  ;;  %v1367_v8 = vmul.f32 %v7146_v52, %v7146_v52  ;;  %v1368_v10 = vmul.f32 %v7149_v57, %v7149_v57 }
 0x141   : > { %v1392_v29 = vpack.c.bf16 %v1354_v26, %v1353_v3  ;;  %v1046_v41 = vpack.c.bf16 %v1010_v37, %v1009_v36  ;;  %v1395_v63 = vpack.c.bf16 %v1360_v48, %v1359_v47  ;;  %v1366_v47 = vmul.f32 %v7127_v39, %v7127_v39  ;;  %v6404_v26 = vld [vmem:[%s6829_s7 + $0x18] sm:$0xff] }
 0x143   : > { %5519 = vmatpush3.bf16.msra.mxu0 %v6875_v14  ;;  %v1044_v14 = vpack.c.bf16 %v1006_v25, %v1005_v24 }
 0x144   : > { %5520 = vmatprep.subr.bf16.mxu0 %v10489_v12 }
 0x145   : > { %5339 = vmatmul.mubr.msk.bf16.gmra.mrb[92].mxu0 %vm407_vm1, %v1043_v2  ;;  %5437 = vmatmul.mubr.msk.bf16.gmra.mrb[92].mxu1 %vm407_vm1, %v1391_v23  ;;  %v1396_v23 = vpack.c.bf16 %v1362_v11, %v1361_v1 }
 0x146   : > { %5342 = vmatprep.mubr.msk.bf16.mxu0 %vm6638_vm0, %v10489_v12  ;;  %5440 = vmatprep.mubr.msk.bf16.mxu1 %vm6638_vm0, %v10489_v12 }
 0x147   : > { %5521 = vmatpush3.bf16.msra.mxu0 %v6887_v18  ;;  %v1355_v18 = vmul.f32 %v7009_v43, %v7009_v43  ;;  %v1011_v43 = vmul.f32 %v7048_v53, %v7048_v53 }
 0x148   : > { %5522 = vmatprep.subr.bf16.mxu0 %v10489_v12 }
 0x149   : > { %v1393_v35 = vpack.c.bf16 %v1356_v32, %v1355_v18  ;;  %v1047_v40 = vpack.c.bf16 %v1012_v44, %v1011_v43  ;;  %v1364_v18 = vmul.f32 %v7105_v21, %v7105_v21  ;;  %v1018_v43 = vmul.f32 %v7121_v33, %v7121_v33 }
 0x14a   : > { %v1365_v44 = vmul.f32 %v7124_v34, %v7124_v34 }
 0x14b   : > { %5523 = vmatpush3.bf16.msra.mxu0 %v6893_v19  ;;  %v1045_v19 = vpack.c.bf16 %v1008_v31, %v1007_v30  ;;  %v1016_v30 = vmul.f32 %v7099_v6, %v7099_v6  ;;  %v1363_v31 = vmul.f32 %v7102_v9, %v7102_v9 }
 0x14c   : > { %5524 = vmatprep.subr.bf16.mxu0 %v10489_v12 }
 0x14d   : > { %5343 = vmatmul.mubr.msk.bf16.gmra.mrb[96].mxu0 %vm407_vm1, %v1044_v14  ;;  %5441 = vmatmul.mubr.msk.bf16.gmra.mrb[96].mxu1 %vm407_vm1, %v1392_v29  ;;  %v1015_v29 = vmul.f32 %v7092_v5, %v7092_v5 }
 0x14e   : > { %5346 = vmatprep.mubr.msk.bf16.mxu0 %vm6638_vm0, %v10489_v12  ;;  %5444 = vmatprep.mubr.msk.bf16.mxu1 %vm6638_vm0, %v10489_v12 }
 0x14f   : > { %5525 = vmatpush3.bf16.msra.mxu0 %v6899_v20  ;;  %v1358_v20 = vmul.f32 %v7039_v50, %v7039_v50  ;;  %v1049_v6 = vpack.c.bf16 %v1016_v30, %v1015_v29  ;;  %v10520_v29 = vld [vmem:[#allocation11_spill] sm:$0xff] }
 0x150   : > { %5736 = vmatprep.subr.bf16.mxu0 %v10489_v12  ;;  %v1370_v30 = vmul.f32 %v10520_v29, %v10520_v29 }
 0x151   : > { %v1394_v42 = vpack.c.bf16 %v1358_v20, %v1357_v38 }
 0x155   : > { %5347 = vmatmul.mubr.msk.bf16.gmra.mrb[100].mxu0 %vm407_vm1, %v1045_v19  ;;  %5445 = vmatmul.mubr.msk.bf16.gmra.mrb[100].mxu1 %vm407_vm1, %v1393_v35  ;;  %v1397_v35 = vpack.c.bf16 %v1364_v18, %v1363_v31 }
 0x156   : > { %5350 = vmatprep.mubr.msk.bf16.mxu0 %vm6638_vm0, %v10489_v12  ;;  %5448 = vmatprep.mubr.msk.bf16.mxu1 %vm6638_vm0, %v10489_v12 }
 0x15d   : > { %5351 = vmatmul.mubr.msk.bf16.gmra.mrb[104].mxu0 %vm407_vm1, %v1046_v41  ;;  %5449 = vmatmul.mubr.msk.bf16.gmra.mrb[104].mxu1 %vm407_vm1, %v1394_v42  ;;  %v1017_v42 = vmul.f32 %v7114_v28, %v7114_v28 }
 0x15e   : > { %5354 = vmatprep.mubr.msk.bf16.mxu0 %vm6638_vm0, %v10489_v12  ;;  %5452 = vmatprep.mubr.msk.bf16.mxu1 %vm6638_vm0, %v10489_v12 }
 0x15f   : > { %v1050_v33 = vpack.c.bf16 %v1018_v43, %v1017_v42  ;;  %v10522_v42 = vld [vmem:[#allocation13_spill] sm:$0xff] }
 0x160   : > { %v505_v49 = vpop.f32.mrb[0].mxu0  ;;  %v7485_v50 = vpop.f32.mrb[0].mxu1  ;;  %v1024_v43 = vmul.f32 %v10522_v42, %v10522_v42  ;;  %v10531_v42 = vld [vmem:[#allocation22_spill] sm:$0xff] }
 0x161   : > { %v5136_v53 = vpop.f32.mrb[1].mxu0  ;;  %v5234_v58 = vpop.f32.mrb[1].mxu1 }
 0x162   : > { %v508_v54 = vpop.f32.mrb[2].mxu0  ;;  %v7487_v15 = vpop.f32.mrb[2].mxu1  ;;  %v1398_v53 = vpack.c.bf16 %v1366_v47, %v1365_v44  ;;  %v10523_v44 = vld [vmem:[#allocation14_spill] sm:$0xff] }
 0x163   : > { %v672_v55 = vpack.c.bf16 %v508_v54, %v505_v49  ;;  %v5137_v45 = vpop.f32.mrb[3].mxu0  ;;  %v978_v56 = vpack.c.bf16 %v7487_v15, %v7485_v50  ;;  %v5235_v7 = vpop.f32.mrb[3].mxu1  ;;  %v1371_v47 = vmul.f32 %v10523_v44, %v10523_v44  ;;  %v10532_v44 = vld [vmem:[#allocation23_spill] sm:$0xff]  ;;  %v7848_v54 = vld [vmem:[#allocation2] sm:$0xff]  }
 0x164   : > { %v1019_v45 = vmul.f32 %v7136_v46, %v7136_v46  ;;  %v1020_v7 = vmul.f32 %v7143_v51, %v7143_v51 }
 0x165   : > { %5355 = vmatmul.mubr.msk.bf16.gmra.mrb[108].mxu0 %vm407_vm1, %v1047_v40  ;;  %5453 = vmatmul.mubr.msk.bf16.gmra.mrb[108].mxu1 %vm407_vm1, %v1395_v63 }
 0x166   : > { %5611 = vmatpush3.bf16.msra.mxu1 %v672_v55  ;;  %5358 = vmatprep.mubr.msk.bf16.mxu0 %vm6638_vm0, %v10489_v12  ;;  %v1051_v51 = vpack.c.bf16 %v1020_v7, %v1019_v45 }
 0x167   : > { %5456 = vmatprep.mubr.msk.bf16.mxu1 %vm6638_vm0, %v10489_v12  ;;  %5612 = vmatprep.subr.bf16.mxu1 %v10489_v12 }
 0x168   : > { %v513_v59 = vpop.f32.mrb[4].mxu0  ;;  %v7506_v13 = vpop.f32.mrb[4].mxu1 }
 0x169   : > { %v5140_v2 = vpop.f32.mrb[5].mxu0  ;;  %v5238_v24 = vpop.f32.mrb[5].mxu1 }
 0x16a   : > { %v516_v61 = vpop.f32.mrb[6].mxu0  ;;  %v7508_v25 = vpop.f32.mrb[6].mxu1 }
 0x16b   : > { %v673_v62 = vpack.c.bf16 %v516_v61, %v513_v59  ;;  %v5141_v3 = vpop.f32.mrb[7].mxu0  ;;  %v5239_v14 = vpop.f32.mrb[7].mxu1  ;;  %v1399_v59 = vpack.c.bf16 %v1368_v10, %v1367_v8  ;;  %v1039_v10 = vmul.f32 %v7356_v17, %v7356_v17  ;;  %v10567_v50 = vpack.c.bf16 %v7508_v25, %v7506_v13  ;;  %v6407_v13 = vld [vmem:[%s6829_s7 + $0x20] sm:$0xff] }
 0x16c   : > { %v1022_v3 = vmul.f32 %v7165_v22, %v7165_v22  ;;  %v1369_v14 = vmul.f32 %v7168_v27, %v7168_v27  ;;  %v6408_v25 = vld [vmem:[%s6857_s30 + $0x20] sm:$0xff] }
 0x16d   : > { %5359 = vmatmul.mubr.msk.bf16.gmra.mrb[112].mxu0 %vm407_vm1, %v1048_v60  ;;  %5457 = vmatmul.mubr.msk.bf16.gmra.mrb[112].mxu1 %vm407_vm1, %v1396_v23 }
 0x16e   : > { %5613 = vmatpush3.bf16.msra.mxu1 %v673_v62  ;;  %5362 = vmatprep.mubr.msk.bf16.mxu0 %vm6638_vm0, %v10489_v12  ;;  %v1021_v62 = vmul.f32 %v7158_v4, %v7158_v4 }
 0x16f   : > { %5460 = vmatprep.mubr.msk.bf16.mxu1 %vm6638_vm0, %v10489_v12  ;;  %5614 = vmatprep.subr.bf16.mxu1 %v10489_v12 }
 0x170   : > { %v521_v5 = vpop.f32.mrb[8].mxu0  ;;  %v7527_v32 = vpop.f32.mrb[8].mxu1  ;;  %v1052_v22 = vpack.c.bf16 %v1022_v3, %v1021_v62 }
 0x171   : > { %v5144_v19 = vpop.f32.mrb[9].mxu0  ;;  %v5242_v36 = vpop.f32.mrb[9].mxu1 }
 0x172   : > { %v524_v9 = vpop.f32.mrb[10].mxu0  ;;  %v7529_v37 = vpop.f32.mrb[10].mxu1 }
 0x173   : > { %v674_v21 = vpack.c.bf16 %v524_v9, %v521_v5  ;;  %v5145_v38 = vpop.f32.mrb[11].mxu0  ;;  %v5243_v41 = vpop.f32.mrb[11].mxu1  ;;  %v1400_v5 = vpack.c.bf16 %v1370_v30, %v1369_v14 }
 0x174   : > { %v10521_v38 = vld [vmem:[#allocation12_spill] sm:$0xff] }
 0x175   : > { %5363 = vmatmul.mubr.msk.bf16.gmra.mrb[116].mxu0 %vm407_vm1, %v1049_v6  ;;  %5461 = vmatmul.mubr.msk.bf16.gmra.mrb[116].mxu1 %vm407_vm1, %v1397_v35  ;;  %v1023_v41 = vmul.f32 %v10521_v38, %v10521_v38  ;;  %v10530_v38 = vld [vmem:[#allocation21_spill] sm:$0xff] }
 0x176   : > { %5615 = vmatpush3.bf16.msra.mxu1 %v674_v21  ;;  %5366 = vmatprep.mubr.msk.bf16.mxu0 %vm6638_vm0, %v10489_v12 }
 0x177   : > { %5464 = vmatprep.mubr.msk.bf16.mxu1 %vm6638_vm0, %v10489_v12  ;;  %5616 = vmatprep.subr.bf16.mxu1 %v10489_v12 }
 0x178   : > { %v529_v28 = vpop.f32.mrb[12].mxu0  ;;  %v7548_v48 = vpop.f32.mrb[12].mxu1 }
 0x179   : > { %v5148_v49 = vpop.f32.mrb[13].mxu0  ;;  %v5246_v40 = vpop.f32.mrb[13].mxu1 }
 0x17a   : > { %v532_v34 = vpop.f32.mrb[14].mxu0  ;;  %v7550_v63 = vpop.f32.mrb[14].mxu1 }
 0x17b   : > { %v675_v39 = vpack.c.bf16 %v532_v34, %v529_v28  ;;  %v5149_v58 = vpop.f32.mrb[15].mxu0  ;;  %v5247_v55 = vpop.f32.mrb[15].mxu1  ;;  %v10524_v28 = vld [vmem:[#allocation15_spill] sm:$0xff]  ;;  %v1053_v34 = vpack.c.bf16 %v1024_v43, %v1023_v41  ;;  %v1028_v41 = vmul.f32 %v10530_v38, %v10530_v38  ;;  %v1375_v43 = vmul.f32 %v10531_v42, %v10531_v42 }
 0x17c   : > { %v1372_v49 = vmul.f32 %v10524_v28, %v10524_v28 }
 0x17d   : > { %5367 = vmatmul.mubr.msk.bf16.gmra.mrb[120].mxu0 %vm407_vm1, %v1050_v33  ;;  %5465 = vmatmul.mubr.msk.bf16.gmra.mrb[120].mxu1 %vm407_vm1, %v1398_v53 }
 0x17e   : > { %5617 = vmatpush3.bf16.msra.mxu1 %v675_v39  ;;  %5370 = vmatprep.mubr.msk.bf16.mxu0 %vm6638_vm0, %v10489_v12  ;;  %v1401_v39 = vpack.c.bf16 %v1372_v49, %v1371_v47  ;;  %v1376_v47 = vmul.f32 %v10532_v44, %v10532_v44 }
 0x17f   : > { %5468 = vmatprep.mubr.msk.bf16.mxu1 %vm6638_vm0, %v10489_v12  ;;  %5618 = vmatprep.subr.bf16.mxu1 %v10489_v12 }
 0x180   : > { %v537_v46 = vpop.f32.mrb[16].mxu0  ;;  %v7569_v1 = vpop.f32.mrb[16].mxu1 }
 0x181   : > { %v5152_v11 = vpop.f32.mrb[17].mxu0  ;;  %v5250_v2 = vpop.f32.mrb[17].mxu1 }
 0x182   : > { %v540_v52 = vpop.f32.mrb[18].mxu0  ;;  %v7571_v60 = vpop.f32.mrb[18].mxu1  ;;  %v10525_v11 = vld [vmem:[#allocation16_spill] sm:$0xff] }
 0x183   : > { %v676_v57 = vpack.c.bf16 %v540_v52, %v537_v46  ;;  %v5153_v23 = vpop.f32.mrb[19].mxu0  ;;  %v5251_v61 = vpop.f32.mrb[19].mxu1  ;;  %v10527_v52 = vld [vmem:[#allocation18_spill] sm:$0xff] }
 0x184   : > { %v10528_v23 = vld [vmem:[#allocation19_spill] sm:$0xff] }
 0x185   : > { %5371 = vmatmul.mubr.msk.bf16.gmra.mrb[124].mxu0 %vm407_vm1, %v1051_v51  ;;  %5469 = vmatmul.mubr.msk.bf16.gmra.mrb[124].mxu1 %vm407_vm1, %v1399_v59  ;;  %v1025_v51 = vmul.f32 %v10525_v11, %v10525_v11  ;;  %v10526_v59 = vld [vmem:[#allocation17_spill] sm:$0xff]  ;;  %v1374_v61 = vmul.f32 %v10528_v23, %v10528_v23 }
 0x186   : > { %5619 = vmatpush3.bf16.msra.mxu1 %v676_v57  ;;  %5374 = vmatprep.mubr.msk.bf16.mxu0 %vm6638_vm0, %v10489_v12  ;;  %v1026_v2 = vmul.f32 %v10526_v59, %v10526_v59  ;;  %v1373_v57 = vmul.f32 %v10527_v52, %v10527_v52 }
 0x187   : > { %5472 = vmatprep.mubr.msk.bf16.mxu1 %vm6638_vm0, %v10489_v12  ;;  %5620 = vmatprep.subr.bf16.mxu1 %v10489_v12 }
 0x188   : > { %v545_v4 = vpop.f32.mrb[20].mxu0  ;;  %v7590_v31 = vpop.f32.mrb[20].mxu1  ;;  %v1054_v29 = vpack.c.bf16 %v1026_v2, %v1025_v51  ;;  %v1402_v30 = vpack.c.bf16 %v1374_v61, %v1373_v57  ;;  %v10533_v51 = vld [vmem:[#allocation24_spill] sm:$0xff]  ;;  %v10534_v2 = vld [vmem:[#allocation25_spill] sm:$0xff]  ;;  %v10535_v57 = vld [vmem:[#allocation26_spill] sm:$0xff] }
 0x189   : > { %v5156_v18 = vpop.f32.mrb[21].mxu0  ;;  %v5254_v19 = vpop.f32.mrb[21].mxu1  ;;  %v1029_v59 = vmul.f32 %v10533_v51, %v10533_v51  ;;  %v1030_v52 = vmul.f32 %v10534_v2, %v10534_v2  ;;  %v1377_v23 = vmul.f32 %v10535_v57, %v10535_v57  ;;  %v10536_v61 = vld [vmem:[#allocation27_spill] sm:$0xff] }
 0x18a   : > { %v548_v27 = vpop.f32.mrb[22].mxu0  ;;  %v7592_v6 = vpop.f32.mrb[22].mxu1 }
 0x18b   : > { %v677_v35 = vpack.c.bf16 %v548_v27, %v545_v4  ;;  %v5157_v36 = vpop.f32.mrb[23].mxu0  ;;  %v5255_v21 = vpop.f32.mrb[23].mxu1 }
 0x18c   : > { %v10529_v36 = vld [vmem:[#allocation20_spill] sm:$0xff] }
 0x18d   : > { %5375 = vmatmul.mubr.msk.bf16.gmra.mrb[128].mxu0 %vm407_vm1, %v1052_v22  ;;  %5473 = vmatmul.mubr.msk.bf16.gmra.mrb[128].mxu1 %vm407_vm1, %v1400_v5  ;;  %v1027_v21 = vmul.f32 %v10529_v36, %v10529_v36 }
 0x18e   : > { %5621 = vmatpush3.bf16.msra.mxu1 %v677_v35  ;;  %5378 = vmatprep.mubr.msk.bf16.mxu0 %vm6638_vm0, %v10489_v12 }
 0x18f   : > { %5476 = vmatprep.mubr.msk.bf16.mxu1 %vm6638_vm0, %v10489_v12  ;;  %5622 = vmatprep.subr.bf16.mxu1 %v10489_v12 }
 0x190   : > { %v553_v33 = vpop.f32.mrb[24].mxu0  ;;  %v7611_v53 = vpop.f32.mrb[24].mxu1 }
 0x191   : > { %v5160_v40 = vpop.f32.mrb[25].mxu0  ;;  %v5258_v58 = vpop.f32.mrb[25].mxu1 }
 0x192   : > { %v556_v55 = vpop.f32.mrb[26].mxu0  ;;  %v7613_v45 = vpop.f32.mrb[26].mxu1  ;;  %v1055_v40 = vpack.c.bf16 %v1028_v41, %v1027_v21  ;;  %v1037_v41 = vmul.f32 %v7334_v16, %v7334_v16 }
 0x193   : > { %v678_v7 = vpack.c.bf16 %v556_v55, %v553_v33  ;;  %v5161_v8 = vpop.f32.mrb[27].mxu0  ;;  %v5259_v46 = vpop.f32.mrb[27].mxu1 }
 0x195   : > { %5379 = vmatmul.mubr.msk.bf16.gmra.mrb[132].mxu0 %vm407_vm1, %v1053_v34  ;;  %5477 = vmatmul.mubr.msk.bf16.gmra.mrb[132].mxu1 %vm407_vm1, %v1401_v39  ;;  %v1403_v34 = vpack.c.bf16 %v1376_v47, %v1375_v43  ;;  %v10537_v47 = vld [vmem:[#allocation28_spill] sm:$0xff] }
 0x196   : > { %5623 = vmatpush3.bf16.msra.mxu1 %v678_v7  ;;  %5382 = vmatprep.mubr.msk.bf16.mxu0 %vm6638_vm0, %v10489_v12  ;;  %v10545_v43 = vld [vmem:[#allocation36_spill] sm:$0xff] }
 0x197   : > { %5480 = vmatprep.mubr.msk.bf16.mxu1 %vm6638_vm0, %v10489_v12  ;;  %5652 = vmatprep.subr.bf16.mxu1 %v10489_v12  ;;  %v1035_v46 = vmul.f32 %v10545_v43, %v10545_v43 }
 0x198   : > { %v7632_v62 = vpop.f32.mrb[28].mxu0  ;;  %v7634_v3 = vpop.f32.mrb[28].mxu1 }
 0x199   : > { %v5164_v14 = vpop.f32.mrb[29].mxu0  ;;  %v5262_v4 = vpop.f32.mrb[29].mxu1 }
 0x19a   : > { %v7636_v18 = vpop.f32.mrb[30].mxu0  ;;  %v7638_v22 = vpop.f32.mrb[30].mxu1  ;;  %v1378_v14 = vmul.f32 %v10536_v61, %v10536_v61 }
 0x19b   : > { %v5165_v19 = vpop.f32.mrb[31].mxu0  ;;  %v5263_v35 = vpop.f32.mrb[31].mxu1 }
 0x19c   : > { %v1056_v19 = vpack.c.bf16 %v1030_v52, %v1029_v59  ;;  %v1404_v35 = vpack.c.bf16 %v1378_v14, %v1377_v23 }
 0x19d   : > { %5383 = vmatmul.mubr.msk.bf16.gmra.mrb[136].mxu0 %vm407_vm1, %v1054_v29  ;;  %5481 = vmatmul.mubr.msk.bf16.gmra.mrb[136].mxu1 %vm407_vm1, %v1402_v30 }
 0x19e   : > { %5386 = vmatprep.mubr.msk.bf16.mxu0 %vm6638_vm0, %v10489_v12  ;;  %5484 = vmatprep.mubr.msk.bf16.mxu1 %vm6638_vm0, %v10489_v12 }
 0x1a0   : > { %v7658_v28 = vpop.f32.mrb[32].mxu0  ;;  %v7660_v49 = vpop.f32.mrb[32].mxu1 }
 0x1a1   : > { %v5168_v33 = vpop.f32.mrb[33].mxu0  ;;  %v5266_v39 = vpop.f32.mrb[33].mxu1 }
 0x1a2   : > { %v7662_v58 = vpop.f32.mrb[34].mxu0  ;;  %v7664_v55 = vpop.f32.mrb[34].mxu1  ;;  %v1031_v33 = vmul.f32 %v10537_v47, %v10537_v47  ;;  %v10539_v39 = vld [vmem:[#allocation30_spill] sm:$0xff] }
 0x1a3   : > { %v5169_v8 = vpop.f32.mrb[35].mxu0  ;;  %v5267_v11 = vpop.f32.mrb[35].mxu1 }
 0x1a4   : > { %v1379_v8 = vmul.f32 %v10539_v39, %v10539_v39  ;;  %v10540_v11 = vld [vmem:[#allocation31_spill] sm:$0xff] }
 0x1a5   : > { %5387 = vmatmul.mubr.msk.bf16.gmra.mrb[140].mxu0 %vm407_vm1, %v1055_v40  ;;  %5485 = vmatmul.mubr.msk.bf16.gmra.mrb[140].mxu1 %vm407_vm1, %v1403_v34  ;;  %v10538_v40 = vld [vmem:[#allocation29_spill] sm:$0xff]  ;;  %v1380_v51 = vmul.f32 %v10540_v11, %v10540_v11 }
 0x1a6   : > { %5390 = vmatprep.mubr.msk.bf16.mxu0 %vm6638_vm0, %v10489_v12  ;;  %5488 = vmatprep.mubr.msk.bf16.mxu1 %vm6638_vm0, %v10489_v12  ;;  %v1032_v34 = vmul.f32 %v10538_v40, %v10538_v40 }
 0x1a7   : > { %v1405_v23 = vpack.c.bf16 %v1380_v51, %v1379_v8  ;;  %v10544_v8 = vld [vmem:[#allocation35_spill] sm:$0xff] }
 0x1a8   : > { %v7684_v29 = vpop.f32.mrb[36].mxu0  ;;  %v7686_v30 = vpop.f32.mrb[36].mxu1  ;;  %v1057_v57 = vpack.c.bf16 %v1032_v34, %v1031_v33  ;;  %v10542_v33 = vld [vmem:[#allocation33_spill] sm:$0xff]  ;;  %v10543_v34 = vld [vmem:[#allocation34_spill] sm:$0xff]  ;;  %v1382_v11 = vmul.f32 %v10544_v8, %v10544_v8 }
 0x1a9   : > { %v5172_v4 = vpop.f32.mrb[37].mxu0  ;;  %v5270_v36 = vpop.f32.mrb[37].mxu1  ;;  %v1034_v40 = vmul.f32 %v10542_v33, %v10542_v33  ;;  %v1381_v39 = vmul.f32 %v10543_v34, %v10543_v34 }
 0x1aa   : > { %v7688_v21 = vpop.f32.mrb[38].mxu0  ;;  %v7690_v38 = vpop.f32.mrb[38].mxu1 }
 0x1ab   : > { %v5173_v42 = vpop.f32.mrb[39].mxu0  ;;  %v5271_v44 = vpop.f32.mrb[39].mxu1 }
 0x1ac   : > { %v10541_v44 = vld [vmem:[#allocation32_spill] sm:$0xff] }
 0x1ad   : > { %5391 = vmatmul.mubr.msk.bf16.gmra.mrb[144].mxu0 %vm407_vm1, %v1056_v19  ;;  %5489 = vmatmul.mubr.msk.bf16.gmra.mrb[144].mxu1 %vm407_vm1, %v1404_v35  ;;  %v1033_v47 = vmul.f32 %v10541_v44, %v10541_v44 }
 0x1ae   : > { %5394 = vmatprep.mubr.msk.bf16.mxu0 %vm6638_vm0, %v10489_v12  ;;  %5492 = vmatprep.mubr.msk.bf16.mxu1 %vm6638_vm0, %v10489_v12 }
 0x1b0   : > { %v7710_v59 = vpop.f32.mrb[40].mxu0  ;;  %v7712_v2 = vpop.f32.mrb[40].mxu1 }
 0x1b1   : > { %v5176_v52 = vpop.f32.mrb[41].mxu0  ;;  %v5274_v61 = vpop.f32.mrb[41].mxu1 }
 0x1b2   : > { %v7714_v14 = vpop.f32.mrb[42].mxu0  ;;  %v7716_v4 = vpop.f32.mrb[42].mxu1  ;;  %v1406_v61 = vpack.c.bf16 %v1382_v11, %v1381_v39  ;;  %v10547_v39 = vld [vmem:[#allocation38_spill] sm:$0xff] }
 0x1b3   : > { %v5177_v35 = vpop.f32.mrb[43].mxu0  ;;  %v5275_v42 = vpop.f32.mrb[43].mxu1  ;;  %v1383_v11 = vmul.f32 %v10547_v39, %v10547_v39 }
 0x1b5   : > { %5395 = vmatmul.mubr.msk.bf16.gmra.mrb[148].mxu0 %vm407_vm1, %v1057_v57  ;;  %5493 = vmatmul.mubr.msk.bf16.gmra.mrb[148].mxu1 %vm407_vm1, %v1405_v23  ;;  %v1058_v23 = vpack.c.bf16 %v1034_v40, %v1033_v47  ;;  %v10546_v47 = vld [vmem:[#allocation37_spill] sm:$0xff] }
 0x1b6   : > { %5398 = vmatprep.mubr.msk.bf16.mxu0 %vm6638_vm0, %v10489_v12  ;;  %5496 = vmatprep.mubr.msk.bf16.mxu1 %vm6638_vm0, %v10489_v12  ;;  %v1036_v40 = vmul.f32 %v10546_v47, %v10546_v47 }
 0x1b8   : > { %v7736_v51 = vpop.f32.mrb[44].mxu0  ;;  %v7738_v52 = vpop.f32.mrb[44].mxu1 }
 0x1b9   : > { %v5180_v57 = vpop.f32.mrb[45].mxu0  ;;  %v5278_v35 = vpop.f32.mrb[45].mxu1 }
 0x1ba   : > { %v7740_v42 = vpop.f32.mrb[46].mxu0  ;;  %v7742_v44 = vpop.f32.mrb[46].mxu1  ;;  %v10548_v57 = vld [vmem:[#allocation39_spill] sm:$0xff] }
 0x1bb   : > { %v5181_v34 = vpop.f32.mrb[47].mxu0  ;;  %v5279_v36 = vpop.f32.mrb[47].mxu1  ;;  %v1384_v35 = vmul.f32 %v10548_v57, %v10548_v57 }
 0x1bd   : > { %5399 = vmatmul.mubr.msk.bf16.gmra.mrb[152].mxu0 %vm407_vm1, %v1058_v23  ;;  %5497 = vmatmul.mubr.msk.bf16.gmra.mrb[152].mxu1 %vm407_vm1, %v1406_v61  ;;  %v1059_v61 = vpack.c.bf16 %v1036_v40, %v1035_v46  ;;  %v1407_v34 = vpack.c.bf16 %v1384_v35, %v1383_v11  ;;  %v10549_v46 = vld [vmem:[#allocation40_spill] sm:$0xff]  ;;  %v10550_v11 = vld [vmem:[#allocation41_spill] sm:$0xff] }
 0x1be   : > { %5402 = vmatprep.mubr.msk.bf16.mxu0 %vm6638_vm0, %v10489_v12  ;;  %5500 = vmatprep.mubr.msk.bf16.mxu1 %vm6638_vm0, %v10489_v12  ;;  %v1038_v40 = vmul.f32 %v10549_v46, %v10549_v46  ;;  %v1385_v35 = vmul.f32 %v10550_v11, %v10550_v11 }
 0x1c0   : > { %v7762_v43 = vpop.f32.mrb[48].mxu0  ;;  %v7764_v36 = vpop.f32.mrb[48].mxu1 }
 0x1c1   : > { %v5184_v23 = vpop.f32.mrb[49].mxu0  ;;  %v5282_v47 = vpop.f32.mrb[49].mxu1 }
 0x1c2   : > { %v7766_v8 = vpop.f32.mrb[50].mxu0  ;;  %v7768_v39 = vpop.f32.mrb[50].mxu1  ;;  %v10551_v23 = vld [vmem:[#allocation42_spill] sm:$0xff] }
 0x1c3   : > { %v5185_v27 = vpop.f32.mrb[51].mxu0  ;;  %v5283_v19 = vpop.f32.mrb[51].mxu1 }
 0x1c4   : > { %v1386_v27 = vmul.f32 %v10551_v23, %v10551_v23  ;;  %v10563_v23 = vld [vmem:[#allocation9_spill] sm:$0xff] }
 0x1c5   : > { %5403 = vmatmul.mubr.msk.bf16.gmra.mrb[156].mxu0 %vm407_vm1, %v1059_v61  ;;  %5501 = vmatmul.mubr.msk.bf16.gmra.mrb[156].mxu1 %vm407_vm1, %v1407_v34  ;;  %v1060_v34 = vpack.c.bf16 %v1038_v40, %v1037_v41  ;;  %v1040_v41 = vmul.f32 %v7363_v0, %v7363_v0  ;;  %v10552_v40 = vld [vmem:[#allocation43_spill] sm:$0xff] }
 0x1c6   : > { %5406 = vmatprep.mubr.msk.bf16.mxu0 %vm6638_vm0, %v10489_v12  ;;  %5504 = vmatprep.mubr.msk.bf16.mxu1 %vm6638_vm0, %v10489_v12  ;;  %v1408_v47 = vpack.c.bf16 %v1386_v27, %v1385_v35  ;;  %v1387_v35 = vmul.f32 %v10552_v40, %v10552_v40  ;;  %v10553_v27 = vld [vmem:[#allocation44_spill] sm:$0xff] }
 0x1c8   : > { %v7788_v16 = vpop.f32.mrb[52].mxu0  ;;  %v7790_v19 = vpop.f32.mrb[52].mxu1 }
 0x1c9   : > { %v5188_v61 = vpop.f32.mrb[53].mxu0  ;;  %v5286_v46 = vpop.f32.mrb[53].mxu1 }
 0x1ca   : > { %v7792_v33 = vpop.f32.mrb[54].mxu0  ;;  %v7794_v11 = vpop.f32.mrb[54].mxu1 }
 0x1cb   : > { %v5189_v57 = vpop.f32.mrb[55].mxu0  ;;  %v5287_v5 = vpop.f32.mrb[55].mxu1 }
 0x1cc   : > { %v1388_v57 = vmul.f32 %v10553_v27, %v10553_v27  ;;  %v10562_v27 = vld [vmem:[#allocation10_spill] sm:$0xff] }
 0x1cd   : > { %5407 = vmatmul.mubr.msk.bf16.gmra.mrb[160].mxu0 %vm407_vm1, %v1060_v34  ;;  %5505 = vmatmul.mubr.msk.bf16.gmra.mrb[160].mxu1 %vm407_vm1, %v1408_v47  ;;  %v1061_v34 = vpack.c.bf16 %v1040_v41, %v1039_v10  ;;  %v10564_v24 = vpack.c.bf16 %v10562_v27, %v10563_v23 }
 0x1ce   : > { %5410 = vmatprep.mubr.msk.bf16.mxu0 %vm6638_vm0, %v10489_v12  ;;  %5508 = vmatprep.mubr.msk.bf16.mxu1 %vm6638_vm0, %v10489_v12  ;;  %v1409_v47 = vpack.c.bf16 %v1388_v57, %v1387_v35 }
 0x1d0   : > { %v7814_v17 = vpop.f32.mrb[56].mxu0  ;;  %v7816_v5 = vpop.f32.mrb[56].mxu1 }
 0x1d1   : > { %10554 = vst [vmem:[#allocation11_spill] sm:$0xff] %v7814_v17  ;;  %10555 = vst [vmem:[#allocation12_spill] sm:$0xff] %v7816_v5  ;;  %v5192_v61 = vpop.f32.mrb[57].mxu0  ;;  %v5290_v0 = vpop.f32.mrb[57].mxu1  ;;  %v8014_v17 = vld [vmem:[#allocation2 + $0x30] sm:$0xff]  }
 0x1d2   : > { %v7818_v46 = vpop.f32.mrb[58].mxu0  ;;  %v7820_v40 = vpop.f32.mrb[58].mxu1  ;;  %v6405_v61 = vld [vmem:[%s6857_s30 + $0x18] sm:$0xff] }
 0x1d3   : > { %10556 = vst [vmem:[#allocation13_spill] sm:$0xff] %v7818_v46  ;;  %10557 = vst [vmem:[#allocation14_spill] sm:$0xff] %v7820_v40  ;;  %v5193_v7 = vpop.f32.mrb[59].mxu0  ;;  %v5291_v9 = vpop.f32.mrb[59].mxu1  ;;  %v6432_v46 = vld [vmem:[%s6829_s7 + $0x70] sm:$0xff] }
 0x1d5   : > { %5411 = vmatmul.mubr.msk.bf16.gmra.mrb[164].mxu0 %vm407_vm1, %v1061_v34  ;;  %5509 = vmatmul.mubr.msk.bf16.gmra.mrb[164].mxu1 %vm407_vm1, %v1409_v47  ;;  %v6415_v47 = vld [vmem:[%s6857_s30 + $0x38] sm:$0xff] }
 0x1d6   : > { %5526 = vmatprep.mubr.msk.bf16.mxu0 %vm6638_vm0, %v10489_v12  ;;  %5624 = vmatprep.mubr.msk.bf16.mxu1 %vm6638_vm0, %v10489_v12 }
 0x1d8   : > { %v7832_v10 = vpop.f32.mrb[60].mxu0  ;;  %v7834_v7 = vpop.f32.mrb[60].mxu1 }
 0x1d9   : > { %10558 = vst [vmem:[#allocation15_spill] sm:$0xff] %v7832_v10  ;;  %10559 = vst [vmem:[#allocation16_spill] sm:$0xff] %v7834_v7  ;;  %v5196_v41 = vpop.f32.mrb[61].mxu0  ;;  %v5294_v9 = vpop.f32.mrb[61].mxu1  ;;  %v6430_v10 = vld [vmem:[%s6857_s30 + $0x68] sm:$0xff] }
 0x1da   : > { %v7836_v35 = vpop.f32.mrb[62].mxu0  ;;  %v7838_v57 = vpop.f32.mrb[62].mxu1  ;;  %v6402_v41 = vld [vmem:[%s6829_s7 + $0x10] sm:$0xff] }
 0x1db   : > { %10560 = vst [vmem:[#allocation17_spill] sm:$0xff] %v7836_v35  ;;  %10561 = vst [vmem:[#allocation18_spill] sm:$0xff] %v7838_v57  ;;  %v5197_v34 = vpop.f32.mrb[63].mxu0  ;;  %v5295_v0 = vpop.f32.mrb[63].mxu1  ;;  %v6403_v9 = vld [vmem:[%s6857_s30 + $0x10] sm:$0xff]  ;;  %v6475_v57 = vld [vmem:[%s6857_s30 + $0x118] sm:$0xff] }
 0x1dc   : > { %v1697_v20 = vmul.f32 %v6403_v9, %v6402_v41  ;;  %v1698_v34 = vmul.f32 %v6405_v61, %v6404_v26 }
 0x1dd   : > { %5527 = vmatmul.mubr.msk.bf16.vlgmr.msra.gmra.mrb[168].mxu0 %vm407_vm1, %v10564_v24  ;;  %5625 = vmatmul.mubr.msk.bf16.vlgmr.msra.gmra.mrb[168].mxu1 %vm407_vm1, %v7848_v54 }
 0x1de   : > { %5653 = vmatpush3.bf16.msra.mxu1 %v978_v56  ;;  %5530 = vmatprep.mubr.msk.bf16.mxu0 %vm6638_vm0, %v10489_v12  ;;  %v1738_v26 = vpack.c.bf16 %v1698_v34, %v1697_v20  ;;  %v7881_v34 = vld [vmem:[#allocation2 + $0x8] sm:$0xff]  }
 0x1df   : > { %5654 = vmatprep.subr.bf16.mxu1 %v10489_v12  ;;  %5628 = vmatprep.mubr.msk.bf16.mxu1 %vm6638_vm0, %v10489_v12 }
 0x1e0   : > { %v7864_v24 = vpop.f32.mrb[64].mxu0  ;;  %v7866_v23 = vpop.f32.mrb[64].mxu1 }
 0x1e1   : > { %10565 = vst [vmem:[#allocation19_spill] sm:$0xff] %v7864_v24  ;;  %10566 = vst [vmem:[#allocation20_spill] sm:$0xff] %v7866_v23  ;;  %v5200_v27 = vpop.f32.mrb[65].mxu0  ;;  %v5298_v61 = vpop.f32.mrb[65].mxu1 }
 0x1e2   : > { %5655 = vmatpush3.bf16.msra.mxu1 %v10567_v50  ;;  %v7871_v15 = vpop.f32.mrb[66].mxu0  ;;  %v7873_v56 = vpop.f32.mrb[66].mxu1  ;;  %v1699_v27 = vmul.f32 %v6408_v25, %v6407_v13  ;;  %v6409_v61 = vld [vmem:[%s6829_s7 + $0x28] sm:$0xff] }
 0x1e3   : > { %10568 = vst [vmem:[#allocation21_spill] sm:$0xff] %v7871_v15  ;;  %10569 = vst [vmem:[#allocation22_spill] sm:$0xff] %v7873_v56  ;;  %v5201_v41 = vpop.f32.mrb[67].mxu0  ;;  %5656 = vmatprep.subr.bf16.mxu1 %v10489_v12  ;;  %v5299_v9 = vpop.f32.mrb[67].mxu1  ;;  %v6410_v50 = vld [vmem:[%s6857_s30 + $0x28] sm:$0xff]  ;;  %v8001_v15 = vld [vmem:[#allocation2 + $0x28] sm:$0xff]  }
 0x1e4   : > { %v1700_v0 = vmul.f32 %v6410_v50, %v6409_v61  ;;  %v10570_v41 = vpack.c.bf16 %v7529_v37, %v7527_v32  ;;  %v10573_v32 = vpack.c.bf16 %v7550_v63, %v7548_v48  ;;  %v6412_v48 = vld [vmem:[%s6829_s7 + $0x30] sm:$0xff] }
 0x1e5   : > { %5531 = vmatmul.mubr.msk.bf16.gmra.mrb[172].mxu0 %vm407_vm1, %v1738_v26  ;;  %5629 = vmatmul.mubr.msk.bf16.gmra.mrb[172].mxu1 %vm407_vm1, %v7881_v34  ;;  %v6413_v63 = vld [vmem:[%s6857_s30 + $0x30] sm:$0xff] }
 0x1e6   : > { %5657 = vmatpush3.bf16.msra.mxu1 %v10570_v41  ;;  %5534 = vmatprep.mubr.msk.bf16.mxu0 %vm6638_vm0, %v10489_v12  ;;  %v1739_v25 = vpack.c.bf16 %v1700_v0, %v1699_v27 }
 0x1e7   : > { %5658 = vmatprep.subr.bf16.mxu1 %v10489_v12  ;;  %5632 = vmatprep.mubr.msk.bf16.mxu1 %vm6638_vm0, %v10489_v12 }
 0x1e8   : > { %v7897_v26 = vpop.f32.mrb[68].mxu0  ;;  %v7899_v9 = vpop.f32.mrb[68].mxu1 }
 0x1e9   : > { %10571 = vst [vmem:[#allocation23_spill] sm:$0xff] %v7897_v26  ;;  %10572 = vst [vmem:[#allocation24_spill] sm:$0xff] %v7899_v9  ;;  %v5204_v13 = vpop.f32.mrb[69].mxu0  ;;  %v5302_v61 = vpop.f32.mrb[69].mxu1  ;;  %v6420_v26 = vld [vmem:[%s6857_s30 + $0x48] sm:$0xff] }
 0x1ea   : > { %5659 = vmatpush3.bf16.msra.mxu1 %v10573_v32  ;;  %v7904_v37 = vpop.f32.mrb[70].mxu0  ;;  %v7906_v50 = vpop.f32.mrb[70].mxu1  ;;  %v7914_v13 = vld [vmem:[#allocation2 + $0x10] sm:$0xff]   ;;  %v1701_v61 = vmul.f32 %v6413_v63, %v6412_v48 }
 0x1eb   : > { %10574 = vst [vmem:[#allocation25_spill] sm:$0xff] %v7904_v37  ;;  %10575 = vst [vmem:[#allocation26_spill] sm:$0xff] %v7906_v50  ;;  %v5205_v20 = vpop.f32.mrb[71].mxu0  ;;  %5660 = vmatprep.subr.bf16.mxu1 %v10489_v12  ;;  %v5303_v27 = vpop.f32.mrb[71].mxu1  ;;  %v6414_v32 = vld [vmem:[%s6829_s7 + $0x38] sm:$0xff]  ;;  %v6471_v50 = vld [vmem:[%s6857_s30 + $0x108] sm:$0xff] }
 0x1ec   : > { %v1702_v41 = vmul.f32 %v6415_v47, %v6414_v32  ;;  %v10576_v20 = vpack.c.bf16 %v7571_v60, %v7569_v1  ;;  %v10579_v1 = vpack.c.bf16 %v7592_v6, %v7590_v31  ;;  %v6417_v31 = vld [vmem:[%s6829_s7 + $0x40] sm:$0xff]  ;;  %v6425_v37 = vld [vmem:[%s6857_s30 + $0x58] sm:$0xff] }
 0x1ed   : > { %5535 = vmatmul.mubr.msk.bf16.gmra.mrb[176].mxu0 %vm407_vm1, %v1739_v25  ;;  %5633 = vmatmul.mubr.msk.bf16.gmra.mrb[176].mxu1 %vm407_vm1, %v7914_v13  ;;  %v6418_v6 = vld [vmem:[%s6857_s30 + $0x40] sm:$0xff] }
 0x1ee   : > { %5661 = vmatpush3.bf16.msra.mxu1 %v10576_v20  ;;  %5538 = vmatprep.mubr.msk.bf16.mxu0 %vm6638_vm0, %v10489_v12  ;;  %v1740_v47 = vpack.c.bf16 %v1702_v41, %v1701_v61 }
 0x1ef   : > { %5662 = vmatprep.subr.bf16.mxu1 %v10489_v12  ;;  %5636 = vmatprep.mubr.msk.bf16.mxu1 %vm6638_vm0, %v10489_v12 }
 0x1f0   : > { %v7930_v25 = vpop.f32.mrb[72].mxu0  ;;  %v7932_v27 = vpop.f32.mrb[72].mxu1 }
 0x1f1   : > { %10577 = vst [vmem:[#allocation27_spill] sm:$0xff] %v7930_v25  ;;  %10578 = vst [vmem:[#allocation28_spill] sm:$0xff] %v7932_v27  ;;  %v5208_v48 = vpop.f32.mrb[73].mxu0  ;;  %v5306_v63 = vpop.f32.mrb[73].mxu1  ;;  %v6439_v27 = vld [vmem:[%s6857_s30 + $0x88] sm:$0xff] }
 0x1f2   : > { %5663 = vmatpush3.bf16.msra.mxu1 %v10579_v1  ;;  %v7937_v60 = vpop.f32.mrb[74].mxu0  ;;  %v7939_v32 = vpop.f32.mrb[74].mxu1  ;;  %v7947_v48 = vld [vmem:[#allocation2 + $0x18] sm:$0xff]   ;;  %v1703_v63 = vmul.f32 %v6418_v6, %v6417_v31  ;;  %v6419_v1 = vld [vmem:[%s6829_s7 + $0x48] sm:$0xff] }
 0x1f3   : > { %10580 = vst [vmem:[#allocation29_spill] sm:$0xff] %v7937_v60  ;;  %10581 = vst [vmem:[#allocation30_spill] sm:$0xff] %v7939_v32  ;;  %v5209_v0 = vpop.f32.mrb[75].mxu0  ;;  %5664 = vmatprep.subr.bf16.mxu1 %v10489_v12  ;;  %v5307_v61 = vpop.f32.mrb[75].mxu1  ;;  %v1704_v20 = vmul.f32 %v6420_v26, %v6419_v1  ;;  %v7976_v60 = vld [vmem:[#allocation2 + $0x20] sm:$0xff]  }
 0x1f4   : > { %v10582_v0 = vpack.c.bf16 %v7613_v45, %v7611_v53 }
 0x1f5   : > { %5539 = vmatmul.mubr.msk.bf16.gmra.mrb[180].mxu0 %vm407_vm1, %v1740_v47  ;;  %5637 = vmatmul.mubr.msk.bf16.gmra.mrb[180].mxu1 %vm407_vm1, %v7947_v48  ;;  %v1741_v31 = vpack.c.bf16 %v1704_v20, %v1703_v63  ;;  %v6422_v20 = vld [vmem:[%s6829_s7 + $0x50] sm:$0xff] }
 0x1f6   : > { %5665 = vmatpush3.bf16.msra.mxu1 %v10582_v0  ;;  %5542 = vmatprep.mubr.msk.bf16.mxu0 %vm6638_vm0, %v10489_v12  ;;  %v6423_v63 = vld [vmem:[%s6857_s30 + $0x50] sm:$0xff] }
 0x1f7   : > { %5640 = vmatprep.mubr.msk.bf16.mxu1 %vm6638_vm0, %v10489_v12  ;;  %5694 = vmatprep.subr.bf16.mxu1 %v10489_v12 }
 0x1f8   : > { %v7963_v47 = vpop.f32.mrb[76].mxu0  ;;  %v7965_v61 = vpop.f32.mrb[76].mxu1 }
 0x1f9   : > { %10583 = vst [vmem:[#allocation31_spill] sm:$0xff] %v7963_v47  ;;  %10584 = vst [vmem:[#allocation32_spill] sm:$0xff] %v7965_v61  ;;  %v5212_v26 = vpop.f32.mrb[77].mxu0  ;;  %v5310_v53 = vpop.f32.mrb[77].mxu1  ;;  %v6435_v61 = vld [vmem:[%s6857_s30 + $0x78] sm:$0xff] }
 0x1fa   : > { %v7967_v45 = vpop.f32.mrb[78].mxu0  ;;  %v7969_v6 = vpop.f32.mrb[78].mxu1  ;;  %v1705_v26 = vmul.f32 %v6423_v63, %v6422_v20  ;;  %v6424_v53 = vld [vmem:[%s6829_s7 + $0x58] sm:$0xff] }
 0x1fb   : > { %10585 = vst [vmem:[#allocation33_spill] sm:$0xff] %v7967_v45  ;;  %10586 = vst [vmem:[#allocation34_spill] sm:$0xff] %v7969_v6  ;;  %v5213_v0 = vpop.f32.mrb[79].mxu0  ;;  %v5311_v25 = vpop.f32.mrb[79].mxu1  ;;  %v1706_v24 = vmul.f32 %v6425_v37, %v6424_v53  ;;  %v6438_v6 = vld [vmem:[%s6829_s7 + $0x88] sm:$0xff] }
 0x1fc   : > { %v1712_v32 = vmul.f32 %v6439_v27, %v6438_v6 }
 0x1fd   : > { %5543 = vmatmul.mubr.msk.bf16.gmra.mrb[184].mxu0 %vm407_vm1, %v1741_v31  ;;  %5641 = vmatmul.mubr.msk.bf16.gmra.mrb[184].mxu1 %vm407_vm1, %v7976_v60  ;;  %v1742_v1 = vpack.c.bf16 %v1706_v24, %v1705_v26  ;;  %v6427_v24 = vld [vmem:[%s6829_s7 + $0x60] sm:$0xff] }
 0x1fe   : > { %5546 = vmatprep.mubr.msk.bf16.mxu0 %vm6638_vm0, %v10489_v12  ;;  %5644 = vmatprep.mubr.msk.bf16.mxu1 %vm6638_vm0, %v10489_v12  ;;  %v6428_v26 = vld [vmem:[%s6857_s30 + $0x60] sm:$0xff] }
 0x200   : > { %v7988_v25 = vpop.f32.mrb[80].mxu0  ;;  %v7990_v31 = vpop.f32.mrb[80].mxu1 }
 0x201   : > { %10587 = vst [vmem:[#allocation35_spill] sm:$0xff] %v7988_v25  ;;  %10588 = vst [vmem:[#allocation36_spill] sm:$0xff] %v7990_v31  ;;  %v5216_v0 = vpop.f32.mrb[81].mxu0  ;;  %v5314_v20 = vpop.f32.mrb[81].mxu1  ;;  %v6433_v31 = vld [vmem:[%s6857_s30 + $0x70] sm:$0xff] }
 0x202   : > { %v7992_v63 = vpop.f32.mrb[82].mxu0  ;;  %v7994_v37 = vpop.f32.mrb[82].mxu1  ;;  %v1707_v0 = vmul.f32 %v6428_v26, %v6427_v24  ;;  %v6429_v20 = vld [vmem:[%s6829_s7 + $0x68] sm:$0xff] }
 0x203   : > { %10589 = vst [vmem:[#allocation37_spill] sm:$0xff] %v7992_v63  ;;  %10590 = vst [vmem:[#allocation38_spill] sm:$0xff] %v7994_v37  ;;  %v5217_v41 = vpop.f32.mrb[83].mxu0  ;;  %v5315_v45 = vpop.f32.mrb[83].mxu1  ;;  %v1708_v35 = vmul.f32 %v6430_v10, %v6429_v20  ;;  %v1709_v37 = vmul.f32 %v6433_v31, %v6432_v46 }
 0x205   : > { %5547 = vmatmul.mubr.msk.bf16.gmra.mrb[188].mxu0 %vm407_vm1, %v1742_v1  ;;  %5645 = vmatmul.mubr.msk.bf16.gmra.mrb[188].mxu1 %vm407_vm1, %v8001_v15  ;;  %v1743_v53 = vpack.c.bf16 %v1708_v35, %v1707_v0 }
 0x206   : > { %5550 = vmatprep.mubr.msk.bf16.mxu0 %vm6638_vm0, %v10489_v12  ;;  %5648 = vmatprep.mubr.msk.bf16.mxu1 %vm6638_vm0, %v10489_v12 }
 0x208   : > { %v1159_v41 = vpop.f32.mrb[84].mxu0  ;;  %v1507_v45 = vpop.f32.mrb[84].mxu1 }
 0x209   : > { %v5332_v1 = vpop.f32.mrb[85].mxu0  ;;  %v5430_v47 = vpop.f32.mrb[85].mxu1 }
 0x20a   : > { %v1162_v25 = vpop.f32.mrb[86].mxu0  ;;  %v1510_v24 = vpop.f32.mrb[86].mxu1  ;;  %v6434_v1 = vld [vmem:[%s6829_s7 + $0x78] sm:$0xff] }
 0x20b   : > { %v1326_v26 = vpack.c.bf16 %v1162_v25, %v1159_v41  ;;  %v5333_v63 = vpop.f32.mrb[87].mxu0  ;;  %v1674_v10 = vpack.c.bf16 %v1510_v24, %v1507_v45  ;;  %v5431_v20 = vpop.f32.mrb[87].mxu1  ;;  %v1710_v35 = vmul.f32 %v6435_v61, %v6434_v1 }
 0x20c   : > { %v6437_v20 = vld [vmem:[%s6857_s30 + $0x80] sm:$0xff] }
 0x20d   : > { %5551 = vmatmul.mubr.msk.bf16.gmra.mrb[192].mxu0 %vm407_vm1, %v1743_v53  ;;  %5649 = vmatmul.mubr.msk.bf16.gmra.mrb[192].mxu1 %vm407_vm1, %v8014_v17  ;;  %v1744_v46 = vpack.c.bf16 %v1710_v35, %v1709_v37 }
 0x20e   : > { %5554 = vmatprep.mubr.msk.bf16.mxu0 %vm6638_vm0, %v10489_v12  ;;  %5666 = vmatprep.mubr.msk.bf16.mxu1 %vm6638_vm0, %v10489_v12 }
 0x20f   : > { %5737 = vmatpush3.bf16.msra.mxu0 %v1674_v10  ;;  %v6436_v10 = vld [vmem:[%s6829_s7 + $0x80] sm:$0xff] }
 0x210   : > { %v1167_v47 = vpop.f32.mrb[88].mxu0  ;;  %v1515_v25 = vpop.f32.mrb[88].mxu1  ;;  %5738 = vmatprep.subr.bf16.mxu0 %v10489_v12  ;;  %v1711_v1 = vmul.f32 %v6437_v20, %v6436_v10 }
 0x211   : > { %v5336_v63 = vpop.f32.mrb[89].mxu0  ;;  %v5434_v31 = vpop.f32.mrb[89].mxu1 }
 0x212   : > { %v1170_v53 = vpop.f32.mrb[90].mxu0  ;;  %v1518_v61 = vpop.f32.mrb[90].mxu1 }
 0x213   : > { %v1327_v0 = vpack.c.bf16 %v1170_v53, %v1167_v47  ;;  %v5337_v41 = vpop.f32.mrb[91].mxu0  ;;  %v1675_v45 = vpack.c.bf16 %v1518_v61, %v1515_v25  ;;  %v5435_v24 = vpop.f32.mrb[91].mxu1  ;;  %v1745_v25 = vpack.c.bf16 %v1712_v32, %v1711_v1  ;;  %v6440_v32 = vld [vmem:[%s6829_s7 + $0x90] sm:$0xff] }
 0x214   : > { %v6441_v61 = vld [vmem:[%s6857_s30 + $0x90] sm:$0xff]  ;;  %v6443_v24 = vld [vmem:[%s6857_s30 + $0x98] sm:$0xff] }
 0x215   : > { %5555 = vmatmul.mubr.msk.bf16.gmra.mrb[196].mxu0 %vm407_vm1, %v1744_v46  ;;  %5667 = vmatmul.mubr.msk.bf16.vlgmr.msra.gmra.mrb[196].mxu1 %vm407_vm1, %v7848_v54  ;;  %v1713_v41 = vmul.f32 %v6441_v61, %v6440_v32  ;;  %v6446_v32 = vld [vmem:[%s6829_s7 + $0xa8] sm:$0xff] }
 0x216   : > { %5695 = vmatpush3.bf16.msra.mxu1 %v1326_v26  ;;  %5558 = vmatprep.mubr.msk.bf16.mxu0 %vm6638_vm0, %v10489_v12  ;;  %v6447_v61 = vld [vmem:[%s6857_s30 + $0xa8] sm:$0xff] }
 0x217   : > { %5696 = vmatprep.subr.bf16.mxu1 %v10489_v12  ;;  %5670 = vmatprep.mubr.msk.bf16.mxu1 %vm6638_vm0, %v10489_v12 }
 0x218   : > { %v1175_v37 = vpop.f32.mrb[92].mxu0  ;;  %5739 = vmatpush3.bf16.msra.mxu0 %v1675_v45  ;;  %v1523_v35 = vpop.f32.mrb[92].mxu1  ;;  %v6442_v45 = vld [vmem:[%s6829_s7 + $0x98] sm:$0xff] }
 0x219   : > { %v5340_v47 = vpop.f32.mrb[93].mxu0  ;;  %v5438_v63 = vpop.f32.mrb[93].mxu1  ;;  %5740 = vmatprep.subr.bf16.mxu0 %v10489_v12  ;;  %v1714_v10 = vmul.f32 %v6443_v24, %v6442_v45 }
 0x21a   : > { %5697 = vmatpush3.bf16.msra.mxu1 %v1327_v0  ;;  %v1178_v27 = vpop.f32.mrb[94].mxu0  ;;  %v1526_v6 = vpop.f32.mrb[94].mxu1 }
 0x21b   : > { %v1328_v26 = vpack.c.bf16 %v1178_v27, %v1175_v37  ;;  %v5341_v46 = vpop.f32.mrb[95].mxu0  ;;  %5698 = vmatprep.subr.bf16.mxu1 %v10489_v12  ;;  %v1676_v31 = vpack.c.bf16 %v1526_v6, %v1523_v35  ;;  %v5439_v53 = vpop.f32.mrb[95].mxu1  ;;  %v1746_v37 = vpack.c.bf16 %v1714_v10, %v1713_v41  ;;  %v1716_v41 = vmul.f32 %v6447_v61, %v6446_v32 }
 0x21c   : > { %v6444_v46 = vld [vmem:[%s6829_s7 + $0xa0] sm:$0xff] }
 0x21d   : > { %5559 = vmatmul.mubr.msk.bf16.gmra.mrb[200].mxu0 %vm407_vm1, %v1745_v25  ;;  %5671 = vmatmul.mubr.msk.bf16.gmra.mrb[200].mxu1 %vm407_vm1, %v7881_v34 }
 0x21e   : > { %5699 = vmatpush3.bf16.msra.mxu1 %v1328_v26  ;;  %5562 = vmatprep.mubr.msk.bf16.mxu0 %vm6638_vm0, %v10489_v12 }
 0x21f   : > { %5674 = vmatprep.mubr.msk.bf16.mxu1 %vm6638_vm0, %v10489_v12  ;;  %5700 = vmatprep.subr.bf16.mxu1 %v10489_v12 }
 0x220   : > { %v1183_v0 = vpop.f32.mrb[96].mxu0  ;;  %5741 = vmatpush3.bf16.msra.mxu0 %v1676_v31  ;;  %v1531_v20 = vpop.f32.mrb[96].mxu1  ;;  %v6445_v31 = vld [vmem:[%s6857_s30 + $0xa0] sm:$0xff] }
 0x221   : > { %v5344_v1 = vpop.f32.mrb[97].mxu0  ;;  %v5442_v35 = vpop.f32.mrb[97].mxu1  ;;  %5742 = vmatprep.subr.bf16.mxu0 %v10489_v12  ;;  %v1715_v53 = vmul.f32 %v6445_v31, %v6444_v46  ;;  %v6450_v46 = vld [vmem:[%s6829_s7 + $0xb8] sm:$0xff] }
 0x222   : > { %v1186_v47 = vpop.f32.mrb[98].mxu0  ;;  %v1534_v25 = vpop.f32.mrb[98].mxu1  ;;  %v6451_v31 = vld [vmem:[%s6857_s30 + $0xb8] sm:$0xff] }
 0x223   : > { %v1329_v63 = vpack.c.bf16 %v1186_v47, %v1183_v0  ;;  %v5345_v27 = vpop.f32.mrb[99].mxu0  ;;  %v1677_v6 = vpack.c.bf16 %v1534_v25, %v1531_v20  ;;  %v5443_v26 = vpop.f32.mrb[99].mxu1  ;;  %v1747_v0 = vpack.c.bf16 %v1716_v41, %v1715_v53  ;;  %v1718_v53 = vmul.f32 %v6451_v31, %v6450_v46 }
 0x224   : > { %v6448_v27 = vld [vmem:[%s6829_s7 + $0xb0] sm:$0xff] }
 0x225   : > { %5563 = vmatmul.mubr.msk.bf16.gmra.mrb[204].mxu0 %vm407_vm1, %v1746_v37  ;;  %5675 = vmatmul.mubr.msk.bf16.gmra.mrb[204].mxu1 %vm407_vm1, %v7914_v13 }
 0x226   : > { %5701 = vmatpush3.bf16.msra.mxu1 %v1329_v63  ;;  %5566 = vmatprep.mubr.msk.bf16.mxu0 %vm6638_vm0, %v10489_v12 }
 0x227   : > { %5678 = vmatprep.mubr.msk.bf16.mxu1 %vm6638_vm0, %v10489_v12  ;;  %5702 = vmatprep.subr.bf16.mxu1 %v10489_v12 }
 0x228   : > { %v1191_v45 = vpop.f32.mrb[100].mxu0  ;;  %v1539_v24 = vpop.f32.mrb[100].mxu1  ;;  %5743 = vmatpush3.bf16.msra.mxu0 %v1677_v6  ;;  %v6449_v6 = vld [vmem:[%s6857_s30 + $0xb0] sm:$0xff] }
 0x229   : > { %v5348_v10 = vpop.f32.mrb[101].mxu0  ;;  %v5446_v20 = vpop.f32.mrb[101].mxu1  ;;  %5744 = vmatprep.subr.bf16.mxu0 %v10489_v12  ;;  %v1717_v26 = vmul.f32 %v6449_v6, %v6448_v27  ;;  %v6454_v27 = vld [vmem:[%s6829_s7 + $0xc8] sm:$0xff] }
 0x22a   : > { %v1194_v1 = vpop.f32.mrb[102].mxu0  ;;  %v1542_v37 = vpop.f32.mrb[102].mxu1  ;;  %v6455_v6 = vld [vmem:[%s6857_s30 + $0xc8] sm:$0xff] }
 0x22b   : > { %v1330_v35 = vpack.c.bf16 %v1194_v1, %v1191_v45  ;;  %v5349_v47 = vpop.f32.mrb[103].mxu0  ;;  %v1678_v25 = vpack.c.bf16 %v1542_v37, %v1539_v24  ;;  %v5447_v63 = vpop.f32.mrb[103].mxu1  ;;  %v1748_v45 = vpack.c.bf16 %v1718_v53, %v1717_v26  ;;  %v1720_v26 = vmul.f32 %v6455_v6, %v6454_v27 }
 0x22c   : > { %v6452_v47 = vld [vmem:[%s6829_s7 + $0xc0] sm:$0xff] }
 0x22d   : > { %5567 = vmatmul.mubr.msk.bf16.gmra.mrb[208].mxu0 %vm407_vm1, %v1747_v0  ;;  %5679 = vmatmul.mubr.msk.bf16.gmra.mrb[208].mxu1 %vm407_vm1, %v7947_v48 }
 0x22e   : > { %5703 = vmatpush3.bf16.msra.mxu1 %v1330_v35  ;;  %5570 = vmatprep.mubr.msk.bf16.mxu0 %vm6638_vm0, %v10489_v12 }
 0x22f   : > { %5682 = vmatprep.mubr.msk.bf16.mxu1 %vm6638_vm0, %v10489_v12  ;;  %5704 = vmatprep.subr.bf16.mxu1 %v10489_v12 }
 0x230   : > { %v1199_v32 = vpop.f32.mrb[104].mxu0  ;;  %v1547_v61 = vpop.f32.mrb[104].mxu1  ;;  %5745 = vmatpush3.bf16.msra.mxu0 %v1678_v25  ;;  %v6453_v25 = vld [vmem:[%s6857_s30 + $0xc0] sm:$0xff] }
 0x231   : > { %v5352_v41 = vpop.f32.mrb[105].mxu0  ;;  %v5450_v24 = vpop.f32.mrb[105].mxu1  ;;  %5746 = vmatprep.subr.bf16.mxu0 %v10489_v12  ;;  %v1719_v63 = vmul.f32 %v6453_v25, %v6452_v47  ;;  %v6458_v47 = vld [vmem:[%s6829_s7 + $0xd8] sm:$0xff] }
 0x232   : > { %v1202_v10 = vpop.f32.mrb[106].mxu0  ;;  %v1550_v0 = vpop.f32.mrb[106].mxu1  ;;  %v6459_v25 = vld [vmem:[%s6857_s30 + $0xd8] sm:$0xff] }
 0x233   : > { %v1331_v20 = vpack.c.bf16 %v1202_v10, %v1199_v32  ;;  %v5353_v1 = vpop.f32.mrb[107].mxu0  ;;  %v1679_v37 = vpack.c.bf16 %v1550_v0, %v1547_v61  ;;  %v5451_v35 = vpop.f32.mrb[107].mxu1  ;;  %v1749_v32 = vpack.c.bf16 %v1720_v26, %v1719_v63  ;;  %v1722_v63 = vmul.f32 %v6459_v25, %v6458_v47 }
 0x234   : > { %v6456_v1 = vld [vmem:[%s6829_s7 + $0xd0] sm:$0xff] }
 0x235   : > { %5571 = vmatmul.mubr.msk.bf16.gmra.mrb[212].mxu0 %vm407_vm1, %v1748_v45  ;;  %5683 = vmatmul.mubr.msk.bf16.gmra.mrb[212].mxu1 %vm407_vm1, %v7976_v60 }
 0x236   : > { %5705 = vmatpush3.bf16.msra.mxu1 %v1331_v20  ;;  %5574 = vmatprep.mubr.msk.bf16.mxu0 %vm6638_vm0, %v10489_v12 }
 0x237   : > { %5686 = vmatprep.mubr.msk.bf16.mxu1 %vm6638_vm0, %v10489_v12  ;;  %5706 = vmatprep.subr.bf16.mxu1 %v10489_v12 }
 0x238   : > { %v1207_v46 = vpop.f32.mrb[108].mxu0  ;;  %v1555_v31 = vpop.f32.mrb[108].mxu1  ;;  %5747 = vmatpush3.bf16.msra.mxu0 %v1679_v37  ;;  %v6457_v37 = vld [vmem:[%s6857_s30 + $0xd0] sm:$0xff] }
 0x239   : > { %v5356_v53 = vpop.f32.mrb[109].mxu0  ;;  %v5454_v61 = vpop.f32.mrb[109].mxu1  ;;  %5748 = vmatprep.subr.bf16.mxu0 %v10489_v12  ;;  %v1721_v35 = vmul.f32 %v6457_v37, %v6456_v1  ;;  %v6462_v1 = vld [vmem:[%s6829_s7 + $0xe8] sm:$0xff] }
 0x23a   : > { %v1210_v41 = vpop.f32.mrb[110].mxu0  ;;  %v1558_v45 = vpop.f32.mrb[110].mxu1  ;;  %v6463_v37 = vld [vmem:[%s6857_s30 + $0xe8] sm:$0xff] }
 0x23b   : > { %v1332_v24 = vpack.c.bf16 %v1210_v41, %v1207_v46  ;;  %v5357_v10 = vpop.f32.mrb[111].mxu0  ;;  %v1680_v0 = vpack.c.bf16 %v1558_v45, %v1555_v31  ;;  %v5455_v20 = vpop.f32.mrb[111].mxu1  ;;  %v1750_v46 = vpack.c.bf16 %v1722_v63, %v1721_v35  ;;  %v1724_v35 = vmul.f32 %v6463_v37, %v6462_v1  ;;  %v6464_v37 = vld [vmem:[%s6829_s7 + $0xf0] sm:$0xff] }
 0x23c   : > { %v6460_v10 = vld [vmem:[%s6829_s7 + $0xe0] sm:$0xff] }
 0x23d   : > { %5575 = vmatmul.mubr.msk.bf16.gmra.mrb[216].mxu0 %vm407_vm1, %v1749_v32  ;;  %5687 = vmatmul.mubr.msk.bf16.gmra.mrb[216].mxu1 %vm407_vm1, %v8001_v15 }
 0x23e   : > { %5707 = vmatpush3.bf16.msra.mxu1 %v1332_v24  ;;  %5578 = vmatprep.mubr.msk.bf16.mxu0 %vm6638_vm0, %v10489_v12 }
 0x23f   : > { %5690 = vmatprep.mubr.msk.bf16.mxu1 %vm6638_vm0, %v10489_v12  ;;  %5749 = vmatpush3.bf16.msra.mxu0 %v1680_v0  ;;  %v6461_v0 = vld [vmem:[%s6857_s30 + $0xe0] sm:$0xff] }
 0x240   : > { %v8104_v27 = vpop.f32.mrb[112].mxu0  ;;  %5820 = vmatprep.subr.bf16.mxu0 %v10489_v12  ;;  %v8107_v6 = vpop.f32.mrb[112].mxu1  ;;  %5778 = vmatprep.subr.bf16.mxu1 %v10489_v12  ;;  %v1723_v20 = vmul.f32 %v6461_v0, %v6460_v10 }
 0x241   : > { %10591 = vst [vmem:[#allocation39_spill] sm:$0xff] %v8107_v6  ;;  %v5360_v26 = vpop.f32.mrb[113].mxu0  ;;  %v5458_v31 = vpop.f32.mrb[113].mxu1 }
 0x242   : > { %v8110_v53 = vpop.f32.mrb[114].mxu0  ;;  %v8112_v32 = vpop.f32.mrb[114].mxu1  ;;  %v1751_v26 = vpack.c.bf16 %v1724_v35, %v1723_v20  ;;  %v6465_v20 = vld [vmem:[%s6857_s30 + $0xf0] sm:$0xff] }
 0x243   : > { %v5361_v41 = vpop.f32.mrb[115].mxu0  ;;  %v5459_v24 = vpop.f32.mrb[115].mxu1  ;;  %v1725_v35 = vmul.f32 %v6465_v20, %v6464_v37 }
 0x245   : > { %5579 = vmatmul.mubr.msk.bf16.gmra.mrb[220].mxu0 %vm407_vm1, %v1750_v46  ;;  %5691 = vmatmul.mubr.msk.bf16.gmra.mrb[220].mxu1 %vm407_vm1, %v8014_v17 }
 0x246   : > { %5582 = vmatprep.mubr.msk.bf16.mxu0 %vm6638_vm0, %v10489_v12  ;;  %5708 = vmatprep.mubr.msk.bf16.mxu1 %vm6638_vm0, %v10489_v12 }
 0x248   : > { %v8129_v47 = vpop.f32.mrb[116].mxu0  ;;  %v8131_v25 = vpop.f32.mrb[116].mxu1 }
 0x249   : > { %10592 = vst [vmem:[#allocation40_spill] sm:$0xff] %v8131_v25  ;;  %v5364_v63 = vpop.f32.mrb[117].mxu0  ;;  %v5462_v46 = vpop.f32.mrb[117].mxu1 }
 0x24a   : > { %v8133_v31 = vpop.f32.mrb[118].mxu0  ;;  %v8135_v41 = vpop.f32.mrb[118].mxu1  ;;  %v6466_v63 = vld [vmem:[%s6829_s7 + $0xf8] sm:$0xff] }
 0x24b   : > { %10593 = vst [vmem:[#allocation41_spill] sm:$0xff] %v8135_v41  ;;  %v5365_v10 = vpop.f32.mrb[119].mxu0  ;;  %v5463_v1 = vpop.f32.mrb[119].mxu1  ;;  %v6467_v46 = vld [vmem:[%s6857_s30 + $0xf8] sm:$0xff]  ;;  %v6487_v41 = vld [vmem:[%s6857_s30 + $0x148] sm:$0xff] }
 0x24c   : > { %v1726_v45 = vmul.f32 %v6467_v46, %v6466_v63 }
 0x24d   : > { %5583 = vmatmul.mubr.msk.bf16.gmra.mrb[224].mxu0 %vm407_vm1, %v1751_v26  ;;  %5709 = vmatmul.mubr.msk.bf16.vlgmr.msra.gmra.mrb[224].mxu1 %vm407_vm1, %v7848_v54 }
 0x24e   : > { %5586 = vmatprep.mubr.msk.bf16.mxu0 %vm6638_vm0, %v10489_v12  ;;  %5712 = vmatprep.mubr.msk.bf16.mxu1 %vm6638_vm0, %v10489_v12  ;;  %v1752_v0 = vpack.c.bf16 %v1726_v45, %v1725_v35  ;;  %v6469_v45 = vld [vmem:[%s6857_s30 + $0x100] sm:$0xff] }
 0x250   : > { %v8152_v10 = vpop.f32.mrb[120].mxu0  ;;  %v8154_v26 = vpop.f32.mrb[120].mxu1 }
 0x251   : > { %10594 = vst [vmem:[#allocation42_spill] sm:$0xff] %v8154_v26  ;;  %v5368_v1 = vpop.f32.mrb[121].mxu0  ;;  %v5466_v37 = vpop.f32.mrb[121].mxu1 }
 0x252   : > { %v8156_v20 = vpop.f32.mrb[122].mxu0  ;;  %v8158_v63 = vpop.f32.mrb[122].mxu1  ;;  %v6468_v1 = vld [vmem:[%s6829_s7 + $0x100] sm:$0xff]  ;;  %v6470_v37 = vld [vmem:[%s6829_s7 + $0x108] sm:$0xff] }
 0x253   : > { %10595 = vst [vmem:[#allocation43_spill] sm:$0xff] %v8158_v63  ;;  %v5369_v24 = vpop.f32.mrb[123].mxu0  ;;  %v5467_v9 = vpop.f32.mrb[123].mxu1  ;;  %v1727_v35 = vmul.f32 %v6469_v45, %v6468_v1  ;;  %v1728_v23 = vmul.f32 %v6471_v50, %v6470_v37  ;;  %v6483_v63 = vld [vmem:[%s6857_s30 + $0x138] sm:$0xff] }
 0x255   : > { %5587 = vmatmul.mubr.msk.bf16.gmra.mrb[228].mxu0 %vm407_vm1, %v1752_v0  ;;  %5713 = vmatmul.mubr.msk.bf16.gmra.mrb[228].mxu1 %vm407_vm1, %v7881_v34  ;;  %v1753_v61 = vpack.c.bf16 %v1728_v23, %v1727_v35  ;;  %v6473_v23 = vld [vmem:[%s6857_s30 + $0x110] sm:$0xff] }
 0x256   : > { %5590 = vmatprep.mubr.msk.bf16.mxu0 %vm6638_vm0, %v10489_v12  ;;  %5716 = vmatprep.mubr.msk.bf16.mxu1 %vm6638_vm0, %v10489_v12 }
 0x258   : > { %v8175_v9 = vpop.f32.mrb[124].mxu0  ;;  %v8177_v24 = vpop.f32.mrb[124].mxu1 }
 0x259   : > { %10596 = vst [vmem:[#allocation44_spill] sm:$0xff] %v8177_v24  ;;  %v5372_v0 = vpop.f32.mrb[125].mxu0  ;;  %v5470_v1 = vpop.f32.mrb[125].mxu1 }
 0x25a   : > { %v8179_v45 = vpop.f32.mrb[126].mxu0  ;;  %v8181_v50 = vpop.f32.mrb[126].mxu1  ;;  %v6472_v0 = vld [vmem:[%s6829_s7 + $0x110] sm:$0xff]  ;;  %v6474_v1 = vld [vmem:[%s6829_s7 + $0x118] sm:$0xff] }
 0x25b   : > { %10597 = vst [vmem:[#allocation10_spill] sm:$0xff] %v8181_v50  ;;  %v5373_v46 = vpop.f32.mrb[127].mxu0  ;;  %v5471_v7 = vpop.f32.mrb[127].mxu1  ;;  %v1729_v35 = vmul.f32 %v6473_v23, %v6472_v0  ;;  %v1730_v5 = vmul.f32 %v6475_v57, %v6474_v1  ;;  %v6479_v50 = vld [vmem:[%s6857_s30 + $0x128] sm:$0xff] }
 0x25d   : > { %5591 = vmatmul.mubr.msk.bf16.gmra.mrb[232].mxu0 %vm407_vm1, %v1753_v61  ;;  %5717 = vmatmul.mubr.msk.bf16.gmra.mrb[232].mxu1 %vm407_vm1, %v7914_v13  ;;  %v1754_v56 = vpack.c.bf16 %v1730_v5, %v1729_v35  ;;  %v6477_v5 = vld [vmem:[%s6857_s30 + $0x120] sm:$0xff] }
 0x25e   : > { %5594 = vmatprep.mubr.msk.bf16.mxu0 %vm6638_vm0, %v10489_v12  ;;  %5720 = vmatprep.mubr.msk.bf16.mxu1 %vm6638_vm0, %v10489_v12 }
 0x260   : > { %v8198_v7 = vpop.f32.mrb[128].mxu0  ;;  %v8200_v61 = vpop.f32.mrb[128].mxu1 }
 0x261   : > { %10598 = vst [vmem:[#allocation9_spill] sm:$0xff] %v8200_v61  ;;  %v5376_v46 = vpop.f32.mrb[129].mxu0  ;;  %v5474_v0 = vpop.f32.mrb[129].mxu1 }
 0x262   : > { %v8202_v23 = vpop.f32.mrb[130].mxu0  ;;  %v8204_v57 = vpop.f32.mrb[130].mxu1  ;;  %v6476_v46 = vld [vmem:[%s6829_s7 + $0x120] sm:$0xff]  ;;  %v6478_v0 = vld [vmem:[%s6829_s7 + $0x128] sm:$0xff] }
 0x263   : > { %10599 = vst [vmem:[#allocation45_spill] sm:$0xff] %v8204_v57  ;;  %v5377_v37 = vpop.f32.mrb[131].mxu0  ;;  %v5475_v24 = vpop.f32.mrb[131].mxu1  ;;  %v1731_v35 = vmul.f32 %v6477_v5, %v6476_v46  ;;  %v1732_v26 = vmul.f32 %v6479_v50, %v6478_v0 }
 0x265   : > { %5595 = vmatmul.mubr.msk.bf16.gmra.mrb[236].mxu0 %vm407_vm1, %v1754_v56  ;;  %5721 = vmatmul.mubr.msk.bf16.gmra.mrb[236].mxu1 %vm407_vm1, %v7947_v48  ;;  %v1755_v40 = vpack.c.bf16 %v1732_v26, %v1731_v35  ;;  %v6481_v26 = vld [vmem:[%s6857_s30 + $0x130] sm:$0xff] }
 0x266   : > { %5598 = vmatprep.mubr.msk.bf16.mxu0 %vm6638_vm0, %v10489_v12  ;;  %5724 = vmatprep.mubr.msk.bf16.mxu1 %vm6638_vm0, %v10489_v12 }
 0x268   : > { %v8221_v24 = vpop.f32.mrb[132].mxu0  ;;  %v8223_v56 = vpop.f32.mrb[132].mxu1 }
 0x269   : > { %10600 = vst [vmem:[#allocation46_spill] sm:$0xff] %v8223_v56  ;;  %v5380_v37 = vpop.f32.mrb[133].mxu0  ;;  %v5478_v46 = vpop.f32.mrb[133].mxu1 }
 0x26a   : > { %v8225_v5 = vpop.f32.mrb[134].mxu0  ;;  %v8227_v50 = vpop.f32.mrb[134].mxu1  ;;  %v6480_v37 = vld [vmem:[%s6829_s7 + $0x130] sm:$0xff]  ;;  %v6482_v46 = vld [vmem:[%s6829_s7 + $0x138] sm:$0xff] }
 0x26b   : > { %10601 = vst [vmem:[#allocation47_spill] sm:$0xff] %v8227_v50  ;;  %v5381_v1 = vpop.f32.mrb[135].mxu0  ;;  %v5479_v57 = vpop.f32.mrb[135].mxu1  ;;  %v1733_v35 = vmul.f32 %v6481_v26, %v6480_v37  ;;  %v1734_v25 = vmul.f32 %v6483_v63, %v6482_v46 }
 0x26d   : > { %5599 = vmatmul.mubr.msk.bf16.gmra.mrb[240].mxu0 %vm407_vm1, %v1755_v40  ;;  %5725 = vmatmul.mubr.msk.bf16.gmra.mrb[240].mxu1 %vm407_vm1, %v7976_v60  ;;  %v1756_v61 = vpack.c.bf16 %v1734_v25, %v1733_v35  ;;  %v6485_v25 = vld [vmem:[%s6857_s30 + $0x140] sm:$0xff] }
 0x26e   : > { %5602 = vmatprep.mubr.msk.bf16.mxu0 %vm6638_vm0, %v10489_v12  ;;  %5728 = vmatprep.mubr.msk.bf16.mxu1 %vm6638_vm0, %v10489_v12 }
 0x270   : > { %v8244_v57 = vpop.f32.mrb[136].mxu0  ;;  %v8246_v40 = vpop.f32.mrb[136].mxu1 }
 0x271   : > { %10602 = vst [vmem:[#allocation48_spill] sm:$0xff] %v8246_v40  ;;  %v5384_v1 = vpop.f32.mrb[137].mxu0  ;;  %v5482_v37 = vpop.f32.mrb[137].mxu1 }
 0x272   : > { %v8248_v26 = vpop.f32.mrb[138].mxu0  ;;  %v8250_v63 = vpop.f32.mrb[138].mxu1  ;;  %v6484_v1 = vld [vmem:[%s6829_s7 + $0x140] sm:$0xff]  ;;  %v6486_v37 = vld [vmem:[%s6829_s7 + $0x148] sm:$0xff] }
 0x273   : > { %10603 = vst [vmem:[#allocation49_spill] sm:$0xff] %v8250_v63  ;;  %v5385_v0 = vpop.f32.mrb[139].mxu0  ;;  %v5483_v50 = vpop.f32.mrb[139].mxu1  ;;  %v1735_v35 = vmul.f32 %v6485_v25, %v6484_v1  ;;  %v1736_v6 = vmul.f32 %v6487_v41, %v6486_v37 }
 0x275   : > { %5603 = vmatmul.mubr.msk.bf16.gmra.mrb[244].mxu0 %vm407_vm1, %v1756_v61  ;;  %5729 = vmatmul.mubr.msk.bf16.gmra.mrb[244].mxu1 %vm407_vm1, %v8001_v15  ;;  %v1757_v56 = vpack.c.bf16 %v1736_v6, %v1735_v35 }
 0x276   : > { %5606 = vmatprep.mubr.msk.bf16.mxu0 %vm6638_vm0, %v10489_v12  ;;  %5732 = vmatprep.mubr.msk.bf16.mxu1 %vm6638_vm0, %v10489_v12 }
 0x278   : > { %v8267_v0 = vpop.f32.mrb[140].mxu0  ;;  %v8269_v50 = vpop.f32.mrb[140].mxu1 }
 0x279   : > { %10604 = vst [vmem:[#allocation50_spill] sm:$0xff] %v8267_v0  ;;  %v5388_v61 = vpop.f32.mrb[141].mxu0  ;;  %v5486_v46 = vpop.f32.mrb[141].mxu1 }
 0x27a   : > { %v8271_v40 = vpop.f32.mrb[142].mxu0  ;;  %v8273_v63 = vpop.f32.mrb[142].mxu1 }
 0x27b   : > { %10605 = vst [vmem:[#allocation51_spill] sm:$0xff] %v8271_v40  ;;  %v5389_v1 = vpop.f32.mrb[143].mxu0  ;;  %v5487_v37 = vpop.f32.mrb[143].mxu1  ;;  %v10608_v40 = vpack.c.bf16 %v7636_v18, %v7632_v62 }
 0x27d   : > { %5607 = vmatmul.mubr.msk.bf16.gmra.mrb[248].mxu0 %vm407_vm1, %v1757_v56  ;;  %5733 = vmatmul.mubr.msk.bf16.gmra.mrb[248].mxu1 %vm407_vm1, %v8014_v17 }
 0x27e   : > { %5750 = vmatprep.mubr.msk.bf16.mxu0 %vm6638_vm0, %v10489_v12  ;;  %5792 = vmatprep.mubr.msk.bf16.mxu1 %vm6638_vm0, %v10489_v12 }
 0x280   : > { %v8286_v6 = vpop.f32.mrb[144].mxu0  ;;  %v8288_v46 = vpop.f32.mrb[144].mxu1 }
 0x281   : > { %10606 = vst [vmem:[#allocation52_spill] sm:$0xff] %v8286_v6  ;;  %v5392_v35 = vpop.f32.mrb[145].mxu0  ;;  %v5490_v61 = vpop.f32.mrb[145].mxu1 }
 0x282   : > { %v8290_v1 = vpop.f32.mrb[146].mxu0  ;;  %v8292_v37 = vpop.f32.mrb[146].mxu1 }
 0x283   : > { %10607 = vst [vmem:[#allocation53_spill] sm:$0xff] %v8290_v1  ;;  %v5393_v41 = vpop.f32.mrb[147].mxu0  ;;  %v5491_v0 = vpop.f32.mrb[147].mxu1 }
 0x284   : > { %v10610_v0 = vpack.c.bf16 %v7662_v58, %v7658_v28  ;;  %v10612_v28 = vpack.c.bf16 %v7688_v21, %v7684_v29 }
 0x285   : > { %5751 = vmatmul.mubr.msk.bf16.vlgmr.msra.gmra.mrb[252].mxu0 %vm407_vm1, %v7848_v54 }
 0x286   : > { %5821 = vmatpush3.bf16.msra.mxu0 %v10608_v40  ;;  %5754 = vmatprep.mubr.msk.bf16.mxu0 %vm6638_vm0, %v10489_v12 }
 0x287   : > { %5822 = vmatprep.subr.bf16.mxu0 %v10489_v12 }
 0x288   : > { %v8306_v35 = vpop.f32.mrb[148].mxu0  ;;  %v8308_v61 = vpop.f32.mrb[148].mxu1 }
 0x289   : > { %10609 = vst [vmem:[#allocation54_spill] sm:$0xff] %v8306_v35  ;;  %v5396_v41 = vpop.f32.mrb[149].mxu0  ;;  %v5494_v56 = vpop.f32.mrb[149].mxu1 }
 0x28a   : > { %5823 = vmatpush3.bf16.msra.mxu0 %v10610_v0  ;;  %v8313_v25 = vpop.f32.mrb[150].mxu0  ;;  %v8315_v6 = vpop.f32.mrb[150].mxu1 }
 0x28b   : > { %10611 = vst [vmem:[#allocation55_spill] sm:$0xff] %v8313_v25  ;;  %v5397_v18 = vpop.f32.mrb[151].mxu0  ;;  %5824 = vmatprep.subr.bf16.mxu0 %v10489_v12  ;;  %v5495_v1 = vpop.f32.mrb[151].mxu1 }
 0x28c   : > { %v10614_v1 = vpack.c.bf16 %v7714_v14, %v7710_v59  ;;  %v10616_v59 = vpack.c.bf16 %v7740_v42, %v7736_v51 }
 0x28d   : > { %5755 = vmatmul.mubr.msk.bf16.gmra.mrb[0].mxu0 %vm407_vm1, %v7881_v34 }
 0x28e   : > { %5825 = vmatpush3.bf16.msra.mxu0 %v10612_v28  ;;  %5758 = vmatprep.mubr.msk.bf16.mxu0 %vm6638_vm0, %v10489_v12 }
 0x28f   : > { %5826 = vmatprep.subr.bf16.mxu0 %v10489_v12 }
 0x290   : > { %v8330_v58 = vpop.f32.mrb[152].mxu0  ;;  %v8332_v56 = vpop.f32.mrb[152].mxu1 }
 0x291   : > { %10613 = vst [vmem:[#allocation56_spill] sm:$0xff] %v8330_v58  ;;  %v5400_v41 = vpop.f32.mrb[153].mxu0  ;;  %v5498_v0 = vpop.f32.mrb[153].mxu1 }
 0x292   : > { %5827 = vmatpush3.bf16.msra.mxu0 %v10614_v1  ;;  %v8337_v18 = vpop.f32.mrb[154].mxu0  ;;  %v8339_v62 = vpop.f32.mrb[154].mxu1 }
 0x293   : > { %10615 = vst [vmem:[#allocation57_spill] sm:$0xff] %v8337_v18  ;;  %v5401_v21 = vpop.f32.mrb[155].mxu0  ;;  %5828 = vmatprep.subr.bf16.mxu0 %v10489_v12  ;;  %v5499_v40 = vpop.f32.mrb[155].mxu1 }
 0x294   : > { %v10619_v40 = vpack.c.bf16 %v7766_v8, %v7762_v43  ;;  %v10622_v8 = vpack.c.bf16 %v7792_v33, %v7788_v16 }
 0x295   : > { %5759 = vmatmul.mubr.msk.bf16.gmra.mrb[4].mxu0 %vm407_vm1, %v7914_v13 }
 0x296   : > { %5829 = vmatpush3.bf16.msra.mxu0 %v10616_v59  ;;  %5762 = vmatprep.mubr.msk.bf16.mxu0 %vm6638_vm0, %v10489_v12 }
 0x297   : > { %5830 = vmatprep.subr.bf16.mxu0 %v10489_v12 }
 0x298   : > { %v8354_v14 = vpop.f32.mrb[156].mxu0  ;;  %v8356_v41 = vpop.f32.mrb[156].mxu1 }
 0x299   : > { %10617 = vst [vmem:[#allocation58_spill] sm:$0xff] %v8354_v14  ;;  %10618 = vst [vmem:[#allocation59_spill] sm:$0xff] %v8356_v41  ;;  %v5404_v0 = vpop.f32.mrb[157].mxu0  ;;  %v5502_v1 = vpop.f32.mrb[157].mxu1 }
 0x29a   : > { %5831 = vmatpush3.bf16.msra.mxu0 %v10619_v40  ;;  %v8361_v21 = vpop.f32.mrb[158].mxu0  ;;  %v8363_v29 = vpop.f32.mrb[158].mxu1 }
 0x29b   : > { %10620 = vst [vmem:[#allocation60_spill] sm:$0xff] %v8361_v21  ;;  %10621 = vst [vmem:[#allocation61_spill] sm:$0xff] %v8363_v29  ;;  %v5405_v42 = vpop.f32.mrb[159].mxu0  ;;  %5832 = vmatprep.subr.bf16.mxu0 %v10489_v12  ;;  %v5503_v28 = vpop.f32.mrb[159].mxu1 }
 0x29d   : > { %5763 = vmatmul.mubr.msk.bf16.gmra.mrb[8].mxu0 %vm407_vm1, %v7947_v48 }
 0x29e   : > { %5833 = vmatpush3.bf16.msra.mxu0 %v10622_v8  ;;  %5766 = vmatprep.mubr.msk.bf16.mxu0 %vm6638_vm0, %v10489_v12 }
 0x29f   : > { %5904 = vmatprep.subr.bf16.mxu0 %v10489_v12 }
 0x2a0   : > { %v8378_v43 = vpop.f32.mrb[160].mxu0  ;;  %v8380_v0 = vpop.f32.mrb[160].mxu1 }
 0x2a1   : > { %10623 = vst [vmem:[#allocation62_spill] sm:$0xff] %v8378_v43  ;;  %10624 = vst [vmem:[#allocation63_spill] sm:$0xff] %v8380_v0  ;;  %v5408_v1 = vpop.f32.mrb[161].mxu0  ;;  %v5506_v40 = vpop.f32.mrb[161].mxu1 }
 0x2a2   : > { %v8382_v42 = vpop.f32.mrb[162].mxu0  ;;  %v8384_v28 = vpop.f32.mrb[162].mxu1 }
 0x2a3   : > { %10625 = vst [vmem:[#allocation64_spill] sm:$0xff] %v8382_v42  ;;  %10626 = vst [vmem:[#allocation65_spill] sm:$0xff] %v8384_v28  ;;  %v5409_v33 = vpop.f32.mrb[163].mxu0  ;;  %v5507_v8 = vpop.f32.mrb[163].mxu1 }
 0x2a5   : > { %5767 = vmatmul.mubr.msk.bf16.gmra.mrb[12].mxu0 %vm407_vm1, %v7976_v60 }
 0x2a6   : > { %5770 = vmatprep.mubr.msk.bf16.mxu0 %vm6638_vm0, %v10489_v12 }
 0x2a8   : > { %v8394_v1 = vpop.f32.mrb[164].mxu0  ;;  %v8396_v40 = vpop.f32.mrb[164].mxu1 }
 0x2a9   : > { %10627 = vst [vmem:[#allocation66_spill] sm:$0xff] %v8394_v1  ;;  %10628 = vst [vmem:[#allocation67_spill] sm:$0xff] %v8396_v40  ;;  %v5412_v59 = vpop.f32.mrb[165].mxu0  ;;  %v5510_v14 = vpop.f32.mrb[165].mxu1 }
 0x2aa   : > { %v8398_v21 = vpop.f32.mrb[166].mxu0  ;;  %v8400_v51 = vpop.f32.mrb[166].mxu1 }
 0x2ab   : > { %10629 = vst [vmem:[#allocation68_spill] sm:$0xff] %v8398_v21  ;;  %10630 = vst [vmem:[#allocation69_spill] sm:$0xff] %v8400_v51  ;;  %v5413_v8 = vpop.f32.mrb[167].mxu0  ;;  %v5511_v43 = vpop.f32.mrb[167].mxu1 }
 0x2ad   : > { %5771 = vmatmul.mubr.msk.bf16.gmra.mrb[16].mxu0 %vm407_vm1, %v8001_v15 }
 0x2ae   : > { %5774 = vmatprep.mubr.msk.bf16.mxu0 %vm6638_vm0, %v10489_v12 }
 0x2b0   : > { %v1855_v59 = vpop.f32.mrb[168].mxu0  ;;  %v8410_v14 = vpop.f32.mrb[168].mxu1 }
 0x2b1   : > { %v5528_v42 = vpop.f32.mrb[169].mxu0  ;;  %v5626_v58 = vpop.f32.mrb[169].mxu1 }
 0x2b2   : > { %v1858_v18 = vpop.f32.mrb[170].mxu0  ;;  %v8412_v35 = vpop.f32.mrb[170].mxu1 }
 0x2b3   : > { %v2022_v33 = vpack.c.bf16 %v1858_v18, %v1855_v59  ;;  %v5529_v8 = vpop.f32.mrb[171].mxu0  ;;  %v5627_v1 = vpop.f32.mrb[171].mxu1 }
 0x2b5   : > { %5775 = vmatmul.mubr.msk.bf16.gmra.mrb[20].mxu0 %vm407_vm1, %v8014_v17  ;;  %5779 = vmatpush3.bf16.msra.mxu1 %v2022_v33  ;;  %v10631_v33 = vpack.c.bf16 %v8110_v53, %v8104_v27 }
 0x2b6   : > { %5780 = vmatprep.subr.bf16.mxu1 %v10489_v12  ;;  %5834 = vmatprep.mubr.msk.bf16.mxu0 %vm6638_vm0, %v10489_v12 }
 0x2b8   : > { %v1863_v43 = vpop.f32.mrb[172].mxu0  ;;  %v8419_v16 = vpop.f32.mrb[172].mxu1 }
 0x2b9   : > { %v5532_v42 = vpop.f32.mrb[173].mxu0  ;;  %v5630_v58 = vpop.f32.mrb[173].mxu1 }
 0x2ba   : > { %v1866_v21 = vpop.f32.mrb[174].mxu0  ;;  %v8421_v25 = vpop.f32.mrb[174].mxu1  ;;  %v10632_v58 = vpack.c.bf16 %v8133_v31, %v8129_v47 }
 0x2bb   : > { %v2023_v18 = vpack.c.bf16 %v1866_v21, %v1863_v43  ;;  %v5533_v59 = vpop.f32.mrb[175].mxu0  ;;  %v5631_v1 = vpop.f32.mrb[175].mxu1 }
 0x2bc   : > { %v10633_v1 = vpack.c.bf16 %v8156_v20, %v8152_v10 }
 0x2bd   : > { %5781 = vmatpush3.bf16.msra.mxu1 %v2023_v18  ;;  %5835 = vmatmul.mubr.msk.bf16.vlgmr.msra.gmra.mrb[24].mxu0 %vm407_vm1, %v7848_v54 }
 0x2be   : > { %5905 = vmatpush3.bf16.msra.mxu0 %v10631_v33  ;;  %5782 = vmatprep.subr.bf16.mxu1 %v10489_v12 }
 0x2bf   : > { %5906 = vmatprep.subr.bf16.mxu0 %v10489_v12  ;;  %5838 = vmatprep.mubr.msk.bf16.mxu0 %vm6638_vm0, %v10489_v12 }
 0x2c0   : > { %v1871_v8 = vpop.f32.mrb[176].mxu0  ;;  %v8432_v42 = vpop.f32.mrb[176].mxu1 }
 0x2c1   : > { %v5536_v21 = vpop.f32.mrb[177].mxu0  ;;  %v5634_v43 = vpop.f32.mrb[177].mxu1 }
 0x2c2   : > { %5907 = vmatpush3.bf16.msra.mxu0 %v10632_v58  ;;  %v1874_v54 = vpop.f32.mrb[178].mxu0  ;;  %v8437_v18 = vpop.f32.mrb[178].mxu1  ;;  %v10634_v21 = vpack.c.bf16 %v8179_v45, %v8175_v9 }
 0x2c3   : > { %v2024_v27 = vpack.c.bf16 %v1874_v54, %v1871_v8  ;;  %v5537_v53 = vpop.f32.mrb[179].mxu0  ;;  %5908 = vmatprep.subr.bf16.mxu0 %v10489_v12  ;;  %v5635_v59 = vpop.f32.mrb[179].mxu1  ;;  %v10635_v54 = vpack.c.bf16 %v8202_v23, %v8198_v7 }
 0x2c4   : > { %v10636_v59 = vpack.c.bf16 %v8225_v5, %v8221_v24 }
 0x2c5   : > { %5783 = vmatpush3.bf16.msra.mxu1 %v2024_v27  ;;  %5839 = vmatmul.mubr.msk.bf16.gmra.mrb[28].mxu0 %vm407_vm1, %v7881_v34 }
 0x2c6   : > { %5909 = vmatpush3.bf16.msra.mxu0 %v10633_v1  ;;  %5784 = vmatprep.subr.bf16.mxu1 %v10489_v12 }
 0x2c7   : > { %5910 = vmatprep.subr.bf16.mxu0 %v10489_v12  ;;  %5842 = vmatprep.mubr.msk.bf16.mxu0 %vm6638_vm0, %v10489_v12 }
 0x2c8   : > { %v1879_v47 = vpop.f32.mrb[180].mxu0  ;;  %v8449_v31 = vpop.f32.mrb[180].mxu1 }
 0x2c9   : > { %v5540_v33 = vpop.f32.mrb[181].mxu0  ;;  %v5638_v8 = vpop.f32.mrb[181].mxu1 }
 0x2ca   : > { %5911 = vmatpush3.bf16.msra.mxu0 %v10634_v21  ;;  %v1882_v34 = vpop.f32.mrb[182].mxu0  ;;  %v8454_v43 = vpop.f32.mrb[182].mxu1  ;;  %v10637_v33 = vpack.c.bf16 %v8248_v26, %v8244_v57 }
 0x2cb   : > { %v2025_v10 = vpack.c.bf16 %v1882_v34, %v1879_v47  ;;  %v5541_v20 = vpop.f32.mrb[183].mxu0  ;;  %5912 = vmatprep.subr.bf16.mxu0 %v10489_v12  ;;  %v5639_v58 = vpop.f32.mrb[183].mxu1 }
 0x2cd   : > { %5785 = vmatpush3.bf16.msra.mxu1 %v2025_v10  ;;  %5843 = vmatmul.mubr.msk.bf16.gmra.mrb[32].mxu0 %vm407_vm1, %v7914_v13 }
 0x2ce   : > { %5913 = vmatpush3.bf16.msra.mxu0 %v10635_v54  ;;  %5786 = vmatprep.subr.bf16.mxu1 %v10489_v12 }
 0x2cf   : > { %5914 = vmatprep.subr.bf16.mxu0 %v10489_v12  ;;  %5846 = vmatprep.mubr.msk.bf16.mxu0 %vm6638_vm0, %v10489_v12 }
 0x2d0   : > { %v1887_v9 = vpop.f32.mrb[184].mxu0  ;;  %v8466_v45 = vpop.f32.mrb[184].mxu1 }
 0x2d1   : > { %v5544_v27 = vpop.f32.mrb[185].mxu0  ;;  %v5642_v53 = vpop.f32.mrb[185].mxu1 }
 0x2d2   : > { %5915 = vmatpush3.bf16.msra.mxu0 %v10636_v59  ;;  %v1890_v13 = vpop.f32.mrb[186].mxu0  ;;  %v8471_v1 = vpop.f32.mrb[186].mxu1 }
 0x2d3   : > { %v2026_v7 = vpack.c.bf16 %v1890_v13, %v1887_v9  ;;  %v5545_v23 = vpop.f32.mrb[187].mxu0  ;;  %5916 = vmatprep.subr.bf16.mxu0 %v10489_v12  ;;  %v5643_v47 = vpop.f32.mrb[187].mxu1 }
 0x2d4   : > { %v2154_v23 = vmul.f32 1.0016193, %v8412_v35  ;;  %v8503_v47 = vld [vmem:[#allocation2] sm:$0xff]  }
 0x2d5   : > { %5787 = vmatpush3.bf16.msra.mxu1 %v2026_v7  ;;  %5847 = vmatmul.mubr.msk.bf16.gmra.mrb[36].mxu0 %vm407_vm1, %v7947_v48 }
 0x2d6   : > { %5917 = vmatpush3.bf16.msra.mxu0 %v10637_v33  ;;  %5788 = vmatprep.subr.bf16.mxu1 %v10489_v12 }
 0x2d7   : > { %5850 = vmatprep.mubr.msk.bf16.mxu0 %vm6638_vm0, %v10489_v12  ;;  %5988 = vmatprep.subr.bf16.mxu0 %v10489_v12 }
 0x2d8   : > { %v1895_v24 = vpop.f32.mrb[188].mxu0  ;;  %v8483_v5 = vpop.f32.mrb[188].mxu1 }
 0x2d9   : > { %v5548_v8 = vpop.f32.mrb[189].mxu0  ;;  %v5646_v21 = vpop.f32.mrb[189].mxu1  ;;  %v2163_v0 = vmul.f32 1.0016193, %v8483_v5 }
 0x2da   : > { %v1898_v34 = vpop.f32.mrb[190].mxu0  ;;  %v8485_v10 = vpop.f32.mrb[190].mxu1 }
 0x2db   : > { %v2027_v48 = vpack.c.bf16 %v1898_v34, %v1895_v24  ;;  %v5549_v20 = vpop.f32.mrb[191].mxu0  ;;  %v5647_v58 = vpop.f32.mrb[191].mxu1  ;;  %v8514_v34 = vmul.f32 %v2154_v23, %v2154_v23  ;;  %v2164_v5 = vmul.f32 1.0016193, %v8485_v10 }
 0x2dd   : > { %5789 = vmatpush3.bf16.msra.mxu1 %v2027_v48  ;;  %5851 = vmatmul.mubr.msk.bf16.gmra.mrb[40].mxu0 %vm407_vm1, %v7976_v60  ;;  %v2153_v60 = vmul.f32 1.0016193, %v8410_v14 }
 0x2de   : > { %5790 = vmatprep.subr.bf16.mxu1 %v10489_v12  ;;  %5854 = vmatprep.mubr.msk.bf16.mxu0 %vm6638_vm0, %v10489_v12 }
 0x2df   : > { %v8507_v8 = vmul.f32 %v2153_v60, %v2153_v60 }
 0x2e0   : > { %v1903_v57 = vpop.f32.mrb[192].mxu0  ;;  %v8492_v26 = vpop.f32.mrb[192].mxu1 }
 0x2e1   : > { %v5552_v54 = vpop.f32.mrb[193].mxu0  ;;  %v5650_v9 = vpop.f32.mrb[193].mxu1  ;;  %v2165_v28 = vmul.f32 1.0016193, %v8492_v26  ;;  %v8725_v26 = vld [vmem:[#allocation2 + $0x30] sm:$0xff]  }
 0x2e2   : > { %v1906_v27 = vpop.f32.mrb[194].mxu0  ;;  %v8494_v53 = vpop.f32.mrb[194].mxu1 }
 0x2e3   : > { %v2028_v59 = vpack.c.bf16 %v1906_v27, %v1903_v57  ;;  %v5553_v13 = vpop.f32.mrb[195].mxu0  ;;  %v5651_v7 = vpop.f32.mrb[195].mxu1  ;;  %v2155_v27 = vmul.f32 1.0016193, %v8419_v16 }
 0x2e5   : > { %5791 = vmatpush3.bf16.msra.mxu1 %v2028_v59  ;;  %5855 = vmatmul.mubr.msk.bf16.gmra.mrb[44].mxu0 %vm407_vm1, %v8001_v15  ;;  %v10638_v15 = vpack.c.bf16 %v7638_v22, %v7634_v3  ;;  %v10640_v59 = vpack.c.bf16 %v7664_v55, %v7660_v49  ;;  %v2156_v49 = vmul.f32 1.0016193, %v8421_v25  ;;  %v8543_v55 = vld [vmem:[#allocation2 + $0x8] sm:$0xff]  }
 0x2e6   : > { %5862 = vmatprep.subr.bf16.mxu1 %v10489_v12  ;;  %5858 = vmatprep.mubr.msk.bf16.mxu0 %vm6638_vm0, %v10489_v12 }
 0x2e8   : > { %5793 = vmatmul.mubr.msk.bf16.vlgmr.msra.gmra.mrb[252].mxu1 %vm407_vm1, %v8503_v47  ;;  %v2201_v33 = vpop.f32.mrb[196].mxu1  ;;  %v1911_v24 = vpop.f32.mrb[196].mxu0 }
 0x2e9   : > { %5863 = vmatpush3.bf16.msra.mxu1 %v10638_v15  ;;  %5796 = vmatprep.mubr.msk.bf16.mxu1 %vm6638_vm0, %v10489_v12  ;;  %v2256_v35 = vmul.f32 1.0016193, %v2201_v33  ;;  %v5668_v14 = vpop.f32.mrb[197].mxu1  ;;  %v5556_v21 = vpop.f32.mrb[197].mxu0 }
 0x2ea   : > { %5864 = vmatprep.subr.bf16.mxu1 %v10489_v12  ;;  %v2204_v48 = vpop.f32.mrb[198].mxu1  ;;  %v1914_v20 = vpop.f32.mrb[198].mxu0 }
 0x2eb   : > { %v8517_v58 = vmul.f32 %v2256_v35, %v2256_v35  ;;  %v8519_v57 = vmul.f32 %v2256_v35, %v2153_v60  ;;  %v2257_v54 = vmul.f32 1.0016193, %v2204_v48  ;;  %v5669_v9 = vpop.f32.mrb[199].mxu1  ;;  %v2029_v3 = vpack.c.bf16 %v1914_v20, %v1911_v24  ;;  %v5557_v22 = vpop.f32.mrb[199].mxu0 }
 0x2ec   : > { %v10642_v24 = vpack.c.bf16 %v7690_v38, %v7686_v30 }
 0x2ed   : > { %10639 = vst [vmem:[#allocation70_spill] sm:$0xff] %v8519_v57  ;;  %5859 = vmatmul.mubr.msk.bf16.gmra.mrb[48].mxu0 %vm407_vm1, %v8014_v17  ;;  %5865 = vmatpush3.bf16.msra.mxu1 %v10640_v59  ;;  %v8529_v13 = vadd.f32 %v8517_v58, %v8507_v8  ;;  %v8531_v7 = vmul.f32 %v2257_v54, %v2257_v54  ;;  %v2157_v59 = vmul.f32 1.0016193, %v8432_v42 }
 0x2ee   : > { %v8533_v60 = vmul.f32 %v2257_v54, %v2154_v23  ;;  %5866 = vmatprep.subr.bf16.mxu1 %v10489_v12  ;;  %5918 = vmatprep.mubr.msk.bf16.mxu0 %vm6638_vm0, %v10489_v12  ;;  %v8547_v23 = vmul.f32 %v2155_v27, %v2155_v27  ;;  %v8559_v54 = vmul.f32 %v2156_v49, %v2156_v49 }
 0x2ef   : > { %v8540_v17 = vadd.f32 %v8531_v7, %v8514_v34 }
 0x2f0   : > { %10641 = vst [vmem:[#allocation71_spill] sm:$0xff] %v8533_v60  ;;  %5797 = vmatmul.mubr.msk.bf16.gmra.mrb[0].mxu1 %vm407_vm1, %v8543_v55  ;;  %v2209_v16 = vpop.f32.mrb[200].mxu1  ;;  %v1919_v33 = vpop.f32.mrb[200].mxu0 }
 0x2f1   : > { %5867 = vmatpush3.bf16.msra.mxu1 %v10642_v24  ;;  %5800 = vmatprep.mubr.msk.bf16.mxu1 %vm6638_vm0, %v10489_v12  ;;  %v2258_v15 = vmul.f32 1.0016193, %v2209_v16  ;;  %v5672_v25 = vpop.f32.mrb[201].mxu1  ;;  %v5560_v35 = vpop.f32.mrb[201].mxu0  ;;  %v10644_v16 = vpack.c.bf16 %v7716_v4, %v7712_v2  ;;  %v2158_v24 = vmul.f32 1.0016193, %v8437_v18 }
 0x2f2   : > { %5868 = vmatprep.subr.bf16.mxu1 %v10489_v12  ;;  %v2212_v48 = vpop.f32.mrb[202].mxu1  ;;  %v1922_v20 = vpop.f32.mrb[202].mxu0  ;;  %v8579_v2 = vld [vmem:[#allocation2 + $0x10] sm:$0xff]   ;;  %v8588_v25 = vmul.f32 %v2157_v59, %v2157_v59 }
 0x2f3   : > { %v8555_v14 = vmul.f32 %v2258_v15, %v2258_v15  ;;  %v8557_v21 = vmul.f32 %v2258_v15, %v2155_v27  ;;  %v2259_v9 = vmul.f32 1.0016193, %v2212_v48  ;;  %v5673_v22 = vpop.f32.mrb[203].mxu1  ;;  %v2030_v30 = vpack.c.bf16 %v1922_v20, %v1919_v33  ;;  %v5561_v38 = vpop.f32.mrb[203].mxu0 }
 0x2f4   : > { %v8595_v20 = vmul.f32 %v2158_v24, %v2158_v24 }
 0x2f5   : > { %10643 = vst [vmem:[#allocation72_spill] sm:$0xff] %v8557_v21  ;;  %5869 = vmatpush3.bf16.msra.mxu1 %v10644_v16  ;;  %5919 = vmatmul.mubr.msk.bf16.vlgmr.msra.gmra.mrb[52].mxu0 %vm407_vm1, %v8503_v47  ;;  %v8569_v27 = vadd.f32 %v8555_v14, %v8547_v23  ;;  %v8575_v33 = vmul.f32 %v2259_v9, %v2259_v9 }
 0x2f6   : > { %5870 = vmatprep.subr.bf16.mxu1 %v10489_v12  ;;  %5922 = vmatprep.mubr.msk.bf16.mxu0 %vm6638_vm0, %v10489_v12  ;;  %v8577_v42 = vmul.f32 %v2259_v9, %v2156_v49  ;;  %v10646_v49 = vpack.c.bf16 %v7742_v44, %v7738_v52 }
 0x2f7   : > { %5989 = vmatpush3.bf16.msra.mxu0 %v2029_v3  ;;  %v8585_v4 = vadd.f32 %v8575_v33, %v8559_v54 }
 0x2f8   : > { %10645 = vst [vmem:[#allocation73_spill] sm:$0xff] %v8577_v42  ;;  %5801 = vmatmul.mubr.msk.bf16.gmra.mrb[4].mxu1 %vm407_vm1, %v8579_v2  ;;  %v2217_v18 = vpop.f32.mrb[204].mxu1  ;;  %v1927_v15 = vpop.f32.mrb[204].mxu0  ;;  %5990 = vmatprep.subr.bf16.mxu0 %v10489_v12 }
 0x2f9   : > { %5871 = vmatpush3.bf16.msra.mxu1 %v10646_v49  ;;  %5804 = vmatprep.mubr.msk.bf16.mxu1 %vm6638_vm0, %v10489_v12  ;;  %v2260_v3 = vmul.f32 1.0016193, %v2217_v18  ;;  %v5676_v35 = vpop.f32.mrb[205].mxu1  ;;  %v5564_v48 = vpop.f32.mrb[205].mxu0  ;;  %v2159_v18 = vmul.f32 1.0016193, %v8449_v31  ;;  %v10648_v49 = vpack.c.bf16 %v7768_v39, %v7764_v36 }
 0x2fa   : > { %5872 = vmatprep.subr.bf16.mxu1 %v10489_v12  ;;  %v2220_v9 = vpop.f32.mrb[206].mxu1  ;;  %v1930_v22 = vpop.f32.mrb[206].mxu0  ;;  %v2160_v39 = vmul.f32 1.0016193, %v8454_v43  ;;  %v8625_v31 = vld [vmem:[#allocation2 + $0x18] sm:$0xff]  }
 0x2fb   : > { %v8598_v38 = vmul.f32 %v2260_v3, %v2260_v3  ;;  %v8600_v16 = vmul.f32 %v2260_v3, %v2157_v59  ;;  %v2261_v42 = vmul.f32 1.0016193, %v2220_v9  ;;  %v5677_v21 = vpop.f32.mrb[207].mxu1  ;;  %5991 = vmatpush3.bf16.msra.mxu0 %v2030_v30  ;;  %v2031_v52 = vpack.c.bf16 %v1930_v22, %v1927_v15  ;;  %v5565_v44 = vpop.f32.mrb[207].mxu0 }
 0x2fc   : > { %5992 = vmatprep.subr.bf16.mxu0 %v10489_v12  ;;  %v10650_v15 = vpack.c.bf16 %v7794_v11, %v7790_v19 }
 0x2fd   : > { %10647 = vst [vmem:[#allocation74_spill] sm:$0xff] %v8600_v16  ;;  %5873 = vmatpush3.bf16.msra.mxu1 %v10648_v49  ;;  %5923 = vmatmul.mubr.msk.bf16.gmra.mrb[56].mxu0 %vm407_vm1, %v8543_v55  ;;  %v8611_v59 = vadd.f32 %v8598_v38, %v8588_v25  ;;  %v8613_v3 = vmul.f32 %v2261_v42, %v2261_v42 }
 0x2fe   : > { %v8615_v21 = vmul.f32 %v2261_v42, %v2158_v24  ;;  %5874 = vmatprep.subr.bf16.mxu1 %v10489_v12  ;;  %5926 = vmatprep.mubr.msk.bf16.mxu0 %vm6638_vm0, %v10489_v12  ;;  %v8630_v42 = vmul.f32 %v2159_v18, %v2159_v18  ;;  %v8642_v49 = vmul.f32 %v2160_v39, %v2160_v39 }
 0x2ff   : > { %v8622_v36 = vadd.f32 %v8613_v3, %v8595_v20  ;;  %5993 = vmatpush3.bf16.msra.mxu0 %v2031_v52 }
 0x300   : > { %10649 = vst [vmem:[#allocation75_spill] sm:$0xff] %v8615_v21  ;;  %5805 = vmatmul.mubr.msk.bf16.gmra.mrb[8].mxu1 %vm407_vm1, %v8625_v31  ;;  %v2225_v30 = vpop.f32.mrb[208].mxu1  ;;  %v1935_v24 = vpop.f32.mrb[208].mxu0  ;;  %5994 = vmatprep.subr.bf16.mxu0 %v10489_v12  ;;  %10652 = vst [vmem:[#allocation77_spill] sm:$0xff] %v8642_v49 }
 0x301   : > { %5875 = vmatpush3.bf16.msra.mxu1 %v10650_v15  ;;  %5808 = vmatprep.mubr.msk.bf16.mxu1 %vm6638_vm0, %v10489_v12  ;;  %v2262_v35 = vmul.f32 1.0016193, %v2225_v30  ;;  %v5680_v43 = vpop.f32.mrb[209].mxu1  ;;  %v5568_v48 = vpop.f32.mrb[209].mxu0  ;;  %v2161_v15 = vmul.f32 1.0016193, %v8466_v45 }
 0x302   : > { %5946 = vmatprep.subr.bf16.mxu1 %v10489_v12  ;;  %v2228_v52 = vpop.f32.mrb[210].mxu1  ;;  %v1938_v44 = vpop.f32.mrb[210].mxu0  ;;  %v8659_v45 = vld [vmem:[#allocation2 + $0x20] sm:$0xff]  }
 0x303   : > { %v8638_v9 = vmul.f32 %v2262_v35, %v2262_v35  ;;  %v8640_v22 = vmul.f32 %v2262_v35, %v2159_v18  ;;  %v2263_v21 = vmul.f32 1.0016193, %v2228_v52  ;;  %v5681_v16 = vpop.f32.mrb[211].mxu1  ;;  %v2032_v19 = vpack.c.bf16 %v1938_v44, %v1935_v24  ;;  %v5569_v11 = vpop.f32.mrb[211].mxu0 }
 0x304   : > { %v2162_v18 = vmul.f32 1.0016193, %v8471_v1  ;;  %v8667_v48 = vmul.f32 %v2161_v15, %v2161_v15 }
 0x305   : > { %10651 = vst [vmem:[#allocation76_spill] sm:$0xff] %v8640_v22  ;;  %5927 = vmatmul.mubr.msk.bf16.gmra.mrb[60].mxu0 %vm407_vm1, %v8579_v2  ;;  %v8649_v30 = vadd.f32 %v8638_v9, %v8630_v42  ;;  %v8654_v35 = vmul.f32 %v2263_v21, %v2263_v21  ;;  %v8656_v43 = vmul.f32 %v2263_v21, %v2160_v39 }
 0x306   : > { %5930 = vmatprep.mubr.msk.bf16.mxu0 %vm6638_vm0, %v10489_v12  ;;  %5995 = vmatpush3.bf16.msra.mxu0 %v2032_v19  ;;  %v8671_v44 = vmul.f32 %v2162_v18, %v2162_v18 }
 0x307   : > { %10653 = vst [vmem:[#allocation78_spill] sm:$0xff] %v8649_v30  ;;  %10654 = vst [vmem:[#allocation79_spill] sm:$0xff] %v8656_v43  ;;  %5996 = vmatprep.subr.bf16.mxu0 %v10489_v12  ;;  %v8665_v16 = vadd.f32 %v8654_v35, %v8642_v49 }
 0x308   : > { %5809 = vmatmul.mubr.msk.bf16.gmra.mrb[12].mxu1 %vm407_vm1, %v8659_v45  ;;  %v2233_v1 = vpop.f32.mrb[212].mxu1  ;;  %v1943_v24 = vpop.f32.mrb[212].mxu0  ;;  %10656 = vst [vmem:[#allocation81_spill] sm:$0xff] %v8671_v44 }
 0x309   : > { %10655 = vst [vmem:[#allocation80_spill] sm:$0xff] %v8665_v16  ;;  %5812 = vmatprep.mubr.msk.bf16.mxu1 %vm6638_vm0, %v10489_v12  ;;  %v2264_v21 = vmul.f32 1.0016193, %v2233_v1  ;;  %v5684_v39 = vpop.f32.mrb[213].mxu1  ;;  %v5572_v52 = vpop.f32.mrb[213].mxu0  ;;  %v10694_v16 = vld [vmem:[#allocation12_spill] sm:$0xff] }
 0x30a   : > { %v2236_v19 = vpop.f32.mrb[214].mxu1  ;;  %v1946_v11 = vpop.f32.mrb[214].mxu0 }
 0x30b   : > { %v8673_v43 = vmul.f32 %v2264_v21, %v2264_v21  ;;  %v8675_v22 = vmul.f32 %v2264_v21, %v2161_v15  ;;  %v2265_v60 = vmul.f32 1.0016193, %v2236_v19  ;;  %v5685_v57 = vpop.f32.mrb[215].mxu1  ;;  %v2033_v40 = vpack.c.bf16 %v1946_v11, %v1943_v24  ;;  %v5573_v51 = vpop.f32.mrb[215].mxu0 }
 0x30c   : > { %v8696_v57 = vld [vmem:[#allocation2 + $0x28] sm:$0xff]  }
 0x30d   : > { %10657 = vst [vmem:[#allocation82_spill] sm:$0xff] %v8673_v43  ;;  %10658 = vst [vmem:[#allocation83_spill] sm:$0xff] %v8675_v22  ;;  %5931 = vmatmul.mubr.msk.bf16.gmra.mrb[64].mxu0 %vm407_vm1, %v8625_v31  ;;  %v8682_v1 = vadd.f32 %v8673_v43, %v8667_v48  ;;  %v8684_v39 = vmul.f32 %v2265_v60, %v2265_v60  ;;  %v8686_v52 = vmul.f32 %v2265_v60, %v2162_v18 }
 0x30e   : > { %5934 = vmatprep.mubr.msk.bf16.mxu0 %vm6638_vm0, %v10489_v12  ;;  %5997 = vmatpush3.bf16.msra.mxu0 %v2033_v40  ;;  %v8700_v18 = vmul.f32 %v2163_v0, %v2163_v0  ;;  %v8708_v22 = vmul.f32 %v2164_v5, %v2164_v5 }
 0x30f   : > { %10659 = vst [vmem:[#allocation84_spill] sm:$0xff] %v8682_v1  ;;  %10660 = vst [vmem:[#allocation85_spill] sm:$0xff] %v8684_v39  ;;  %v8692_v51 = vadd.f32 %v8684_v39, %v8671_v44  ;;  %5998 = vmatprep.subr.bf16.mxu0 %v10489_v12 }
 0x310   : > { %10661 = vst [vmem:[#allocation86_spill] sm:$0xff] %v8686_v52  ;;  %5813 = vmatmul.mubr.msk.bf16.gmra.mrb[16].mxu1 %vm407_vm1, %v8696_v57  ;;  %v2241_v15 = vpop.f32.mrb[216].mxu1  ;;  %v1951_v60 = vpop.f32.mrb[216].mxu0  ;;  %10665 = vst [vmem:[#allocation90_spill] sm:$0xff] %v8708_v22 }
 0x311   : > { %10662 = vst [vmem:[#allocation87_spill] sm:$0xff] %v8692_v51  ;;  %5816 = vmatprep.mubr.msk.bf16.mxu1 %vm6638_vm0, %v10489_v12  ;;  %v2266_v40 = vmul.f32 1.0016193, %v2241_v15  ;;  %v5688_v24 = vpop.f32.mrb[217].mxu1  ;;  %v5576_v21 = vpop.f32.mrb[217].mxu0 }
 0x312   : > { %v2244_v10 = vpop.f32.mrb[218].mxu1  ;;  %v1954_v52 = vpop.f32.mrb[218].mxu0 }
 0x313   : > { %v8704_v19 = vmul.f32 %v2266_v40, %v2266_v40  ;;  %v8706_v11 = vmul.f32 %v2266_v40, %v2163_v0  ;;  %v2267_v51 = vmul.f32 1.0016193, %v2244_v10  ;;  %v5689_v1 = vpop.f32.mrb[219].mxu1  ;;  %v2034_v39 = vpack.c.bf16 %v1954_v52, %v1951_v60  ;;  %v5577_v43 = vpop.f32.mrb[219].mxu0 }
 0x314   : > { %v2166_v0 = vmul.f32 1.0016193, %v8494_v53  ;;  %v8733_v52 = vmul.f32 %v2165_v28, %v2165_v28 }
 0x315   : > { %10663 = vst [vmem:[#allocation88_spill] sm:$0xff] %v8704_v19  ;;  %10664 = vst [vmem:[#allocation89_spill] sm:$0xff] %v8706_v11  ;;  %5935 = vmatmul.mubr.msk.bf16.gmra.mrb[68].mxu0 %vm407_vm1, %v8659_v45  ;;  %v8715_v15 = vadd.f32 %v8704_v19, %v8700_v18  ;;  %v8718_v40 = vmul.f32 %v2267_v51, %v2267_v51  ;;  %v8720_v24 = vmul.f32 %v2267_v51, %v2164_v5 }
 0x316   : > { %5938 = vmatprep.mubr.msk.bf16.mxu0 %vm6638_vm0, %v10489_v12  ;;  %5999 = vmatpush3.bf16.msra.mxu0 %v2034_v39  ;;  %10670 = vst [vmem:[#allocation95_spill] sm:$0xff] %v8733_v52  ;;  %v8737_v60 = vmul.f32 %v2166_v0, %v2166_v0 }
 0x317   : > { %10666 = vst [vmem:[#allocation91_spill] sm:$0xff] %v8715_v15  ;;  %10667 = vst [vmem:[#allocation92_spill] sm:$0xff] %v8718_v40  ;;  %6000 = vmatprep.subr.bf16.mxu0 %v10489_v12  ;;  %v8731_v43 = vadd.f32 %v8718_v40, %v8708_v22 }
 0x318   : > { %10668 = vst [vmem:[#allocation93_spill] sm:$0xff] %v8720_v24  ;;  %5817 = vmatmul.mubr.msk.bf16.gmra.mrb[20].mxu1 %vm407_vm1, %v8725_v26  ;;  %v2249_v53 = vpop.f32.mrb[220].mxu1  ;;  %v1959_v1 = vpop.f32.mrb[220].mxu0  ;;  %10671 = vst [vmem:[#allocation96_spill] sm:$0xff] %v8737_v60 }
 0x319   : > { %10669 = vst [vmem:[#allocation94_spill] sm:$0xff] %v8731_v43  ;;  %v2268_v51 = vmul.f32 1.0016193, %v2249_v53  ;;  %v5692_v5 = vpop.f32.mrb[221].mxu1  ;;  %5876 = vmatprep.mubr.msk.bf16.mxu1 %vm6638_vm0, %v10489_v12  ;;  %v5580_v39 = vpop.f32.mrb[221].mxu0 }
 0x31a   : > { %v2252_v21 = vpop.f32.mrb[222].mxu1  ;;  %v1962_v10 = vpop.f32.mrb[222].mxu0 }
 0x31b   : > { %v8739_v24 = vmul.f32 %v2268_v51, %v2268_v51  ;;  %v8741_v11 = vmul.f32 %v2268_v51, %v2165_v28  ;;  %v2269_v15 = vmul.f32 1.0016193, %v2252_v21  ;;  %v5693_v43 = vpop.f32.mrb[223].mxu1  ;;  %v2035_v40 = vpack.c.bf16 %v1962_v10, %v1959_v1  ;;  %v5581_v19 = vpop.f32.mrb[223].mxu0 }
 0x31d   : > { %10672 = vst [vmem:[#allocation97_spill] sm:$0xff] %v8739_v24  ;;  %10673 = vst [vmem:[#allocation98_spill] sm:$0xff] %v8741_v11  ;;  %v8745_v53 = vadd.f32 %v8739_v24, %v8733_v52  ;;  %5939 = vmatmul.mubr.msk.bf16.gmra.mrb[72].mxu0 %vm407_vm1, %v8696_v57  ;;  %v8749_v5 = vmul.f32 %v2269_v15, %v2269_v15  ;;  %v8751_v39 = vmul.f32 %v2269_v15, %v2166_v0  ;;  %v10679_v15 = vld [vmem:[#allocation39_spill] sm:$0xff]  ;;  %v10693_v24 = vld [vmem:[#allocation14_spill] sm:$0xff] }
 0x31e   : > { %5942 = vmatprep.mubr.msk.bf16.mxu0 %vm6638_vm0, %v10489_v12  ;;  %6001 = vmatpush3.bf16.msra.mxu0 %v2035_v40  ;;  %v10680_v0 = vpack.c.bf16 %v8112_v32, %v10679_v15 }
 0x31f   : > { %10674 = vst [vmem:[#allocation99_spill] sm:$0xff] %v8745_v53  ;;  %10675 = vst [vmem:[#allocation100_spill] sm:$0xff] %v8749_v5  ;;  %v8757_v28 = vadd.f32 %v8749_v5, %v8737_v60  ;;  %6072 = vmatprep.subr.bf16.mxu0 %v10489_v12 }
 0x320   : > { %10676 = vst [vmem:[#allocation101_spill] sm:$0xff] %v8751_v39  ;;  %v2332_v19 = vpop.f32.mrb[224].mxu1  ;;  %5877 = vmatmul.mubr.msk.bf16.vlgmr.msra.gmra.mrb[24].mxu1 %vm407_vm1, %v8503_v47  ;;  %v8762_v43 = vpop.f32.mrb[224].mxu0 }
 0x321   : > { %10677 = vst [vmem:[#allocation102_spill] sm:$0xff] %v8757_v28  ;;  %10678 = vst [vmem:[#allocation103_spill] sm:$0xff] %v8762_v43  ;;  %v8764_v1 = vmul.f32 1.0016193, %v2332_v19  ;;  %5947 = vmatpush3.bf16.msra.mxu1 %v10680_v0  ;;  %5880 = vmatprep.mubr.msk.bf16.mxu1 %vm6638_vm0, %v10489_v12  ;;  %v5710_v40 = vpop.f32.mrb[225].mxu1  ;;  %v5584_v51 = vpop.f32.mrb[225].mxu0  ;;  %v10695_v43 = vpack.c.bf16 %v10693_v24, %v10694_v16 }
 0x322   : > { %5948 = vmatprep.subr.bf16.mxu1 %v10489_v12  ;;  %v2335_v10 = vpop.f32.mrb[226].mxu1  ;;  %v8774_v39 = vpop.f32.mrb[226].mxu0  ;;  %v10682_v0 = vld [vmem:[#allocation41_spill] sm:$0xff]  ;;  %v10683_v28 = vld [vmem:[#allocation40_spill] sm:$0xff] }
 0x323   : > { %10681 = vst [vmem:[#allocation39_spill] sm:$0xff] %v8774_v39  ;;  %v8776_v11 = vmul.f32 1.0016193, %v2335_v10  ;;  %v5711_v19 = vpop.f32.mrb[227].mxu1  ;;  %v5585_v15 = vpop.f32.mrb[227].mxu0  ;;  %v10684_v53 = vpack.c.bf16 %v10682_v0, %v10683_v28  ;;  %v10687_v28 = vld [vmem:[#allocation42_spill] sm:$0xff] }
 0x325   : > { %5949 = vmatpush3.bf16.msra.mxu1 %v10684_v53  ;;  %5943 = vmatmul.mubr.msk.bf16.gmra.mrb[76].mxu0 %vm407_vm1, %v8725_v26  ;;  %v10686_v53 = vld [vmem:[#allocation43_spill] sm:$0xff] }
 0x326   : > { %5950 = vmatprep.subr.bf16.mxu1 %v10489_v12  ;;  %6002 = vmatprep.mubr.msk.bf16.mxu0 %vm6638_vm0, %v10489_v12  ;;  %v10688_v15 = vpack.c.bf16 %v10686_v53, %v10687_v28  ;;  %v10701_v53 = vld [vmem:[#allocation16_spill] sm:$0xff] }
 0x328   : > { %v2340_v51 = vpop.f32.mrb[228].mxu1  ;;  %5881 = vmatmul.mubr.msk.bf16.gmra.mrb[28].mxu1 %vm407_vm1, %v8543_v55  ;;  %v8792_v10 = vpop.f32.mrb[228].mxu0 }
 0x329   : > { %10685 = vst [vmem:[#allocation41_spill] sm:$0xff] %v8792_v10  ;;  %v8794_v19 = vmul.f32 1.0016193, %v2340_v51  ;;  %5951 = vmatpush3.bf16.msra.mxu1 %v10688_v15  ;;  %v5714_v0 = vpop.f32.mrb[229].mxu1  ;;  %5884 = vmatprep.mubr.msk.bf16.mxu1 %vm6638_vm0, %v10489_v12  ;;  %v5588_v32 = vpop.f32.mrb[229].mxu0 }
 0x32a   : > { %v2343_v40 = vpop.f32.mrb[230].mxu1  ;;  %5952 = vmatprep.subr.bf16.mxu1 %v10489_v12  ;;  %v8802_v21 = vpop.f32.mrb[230].mxu0  ;;  %v10690_v0 = vld [vmem:[#allocation10_spill] sm:$0xff]  ;;  %v10691_v32 = vld [vmem:[#allocation44_spill] sm:$0xff] }
 0x32b   : > { %10689 = vst [vmem:[#allocation40_spill] sm:$0xff] %v8802_v21  ;;  %v8806_v39 = vmul.f32 1.0016193, %v2343_v40  ;;  %v5715_v51 = vpop.f32.mrb[231].mxu1  ;;  %v5589_v28 = vpop.f32.mrb[231].mxu0  ;;  %v10692_v5 = vpack.c.bf16 %v10690_v0, %v10691_v32  ;;  %v10698_v0 = vld [vmem:[#allocation9_spill] sm:$0xff] }
 0x32c   : > { %v10697_v28 = vld [vmem:[#allocation45_spill] sm:$0xff] }
 0x32d   : > { %5953 = vmatpush3.bf16.msra.mxu1 %v10692_v5  ;;  %6003 = vmatmul.mubr.msk.bf16.vlgmr.msra.gmra.mrb[80].mxu0 %vm407_vm1, %v8503_v47  ;;  %v10699_v32 = vpack.c.bf16 %v10697_v28, %v10698_v0 }
 0x32e   : > { %6073 = vmatpush3.bf16.msra.mxu0 %v10695_v43  ;;  %5954 = vmatprep.subr.bf16.mxu1 %v10489_v12  ;;  %v10700_v43 = vld [vmem:[#allocation18_spill] sm:$0xff] }
 0x32f   : > { %6074 = vmatprep.subr.bf16.mxu0 %v10489_v12  ;;  %6006 = vmatprep.mubr.msk.bf16.mxu0 %vm6638_vm0, %v10489_v12  ;;  %v10702_v15 = vpack.c.bf16 %v10700_v43, %v10701_v53  ;;  %v10707_v43 = vld [vmem:[#allocation22_spill] sm:$0xff]  ;;  %v10715_v53 = vld [vmem:[#allocation24_spill] sm:$0xff] }
 0x330   : > { %v2348_v40 = vpop.f32.mrb[232].mxu1  ;;  %5885 = vmatmul.mubr.msk.bf16.gmra.mrb[32].mxu1 %vm407_vm1, %v8579_v2  ;;  %v8826_v51 = vpop.f32.mrb[232].mxu0 }
 0x331   : > { %10696 = vst [vmem:[#allocation43_spill] sm:$0xff] %v8826_v51  ;;  %v8828_v5 = vmul.f32 1.0016193, %v2348_v40  ;;  %5955 = vmatpush3.bf16.msra.mxu1 %v10699_v32  ;;  %v5718_v16 = vpop.f32.mrb[233].mxu1  ;;  %5888 = vmatprep.mubr.msk.bf16.mxu1 %vm6638_vm0, %v10489_v12  ;;  %v5592_v24 = vpop.f32.mrb[233].mxu0 }
 0x332   : > { %6075 = vmatpush3.bf16.msra.mxu0 %v10702_v15  ;;  %v2351_v10 = vpop.f32.mrb[234].mxu1  ;;  %5956 = vmatprep.subr.bf16.mxu1 %v10489_v12  ;;  %v8839_v21 = vpop.f32.mrb[234].mxu0  ;;  %v10704_v15 = vld [vmem:[#allocation47_spill] sm:$0xff]  ;;  %v10705_v16 = vld [vmem:[#allocation46_spill] sm:$0xff] }
 0x333   : > { %10703 = vst [vmem:[#allocation42_spill] sm:$0xff] %v8839_v21  ;;  %v8843_v30 = vmul.f32 1.0016193, %v2351_v10  ;;  %6076 = vmatprep.subr.bf16.mxu0 %v10489_v12  ;;  %v5719_v28 = vpop.f32.mrb[235].mxu1  ;;  %v5593_v32 = vpop.f32.mrb[235].mxu0  ;;  %v10706_v24 = vpack.c.bf16 %v10704_v15, %v10705_v16  ;;  %v10708_v10 = vld [vmem:[#allocation20_spill] sm:$0xff] }
 0x334   : > { %v10709_v40 = vpack.c.bf16 %v10707_v43, %v10708_v10  ;;  %v10711_v16 = vld [vmem:[#allocation49_spill] sm:$0xff]  ;;  %v10714_v10 = vld [vmem:[#allocation26_spill] sm:$0xff] }
 0x335   : > { %5957 = vmatpush3.bf16.msra.mxu1 %v10706_v24  ;;  %6007 = vmatmul.mubr.msk.bf16.gmra.mrb[84].mxu0 %vm407_vm1, %v8543_v55  ;;  %v10712_v24 = vld [vmem:[#allocation48_spill] sm:$0xff]  ;;  %v10716_v51 = vpack.c.bf16 %v10714_v10, %v10715_v53  ;;  %v10718_v53 = vld [vmem:[#allocation30_spill] sm:$0xff] }
 0x336   : > { %6077 = vmatpush3.bf16.msra.mxu0 %v10709_v40  ;;  %5958 = vmatprep.subr.bf16.mxu1 %v10489_v12  ;;  %v10713_v0 = vpack.c.bf16 %v10711_v16, %v10712_v24 }
 0x337   : > { %6078 = vmatprep.subr.bf16.mxu0 %v10489_v12  ;;  %6010 = vmatprep.mubr.msk.bf16.mxu0 %vm6638_vm0, %v10489_v12 }
 0x338   : > { %v2356_v28 = vpop.f32.mrb[236].mxu1  ;;  %5889 = vmatmul.mubr.msk.bf16.gmra.mrb[36].mxu1 %vm407_vm1, %v8625_v31  ;;  %v8864_v32 = vpop.f32.mrb[236].mxu0 }
 0x339   : > { %10710 = vst [vmem:[#allocation10_spill] sm:$0xff] %v8864_v32  ;;  %v8866_v15 = vmul.f32 1.0016193, %v2356_v28  ;;  %5959 = vmatpush3.bf16.msra.mxu1 %v10713_v0  ;;  %v5722_v40 = vpop.f32.mrb[237].mxu1  ;;  %5892 = vmatprep.mubr.msk.bf16.mxu1 %vm6638_vm0, %v10489_v12  ;;  %v5596_v43 = vpop.f32.mrb[237].mxu0 }
 0x33a   : > { %6079 = vmatpush3.bf16.msra.mxu0 %v10716_v51  ;;  %v2359_v21 = vpop.f32.mrb[238].mxu1  ;;  %v8876_v41 = vpop.f32.mrb[238].mxu0  ;;  %6030 = vmatprep.subr.bf16.mxu1 %v10489_v12  ;;  %v10719_v40 = vld [vmem:[#allocation28_spill] sm:$0xff] }
 0x33b   : > { %10717 = vst [vmem:[#allocation44_spill] sm:$0xff] %v8876_v41  ;;  %v8881_v29 = vmul.f32 1.0016193, %v2359_v21  ;;  %6080 = vmatprep.subr.bf16.mxu0 %v10489_v12  ;;  %v5723_v0 = vpop.f32.mrb[239].mxu1  ;;  %v5597_v24 = vpop.f32.mrb[239].mxu0  ;;  %v10720_v43 = vpack.c.bf16 %v10718_v53, %v10719_v40  ;;  %v10722_v53 = vld [vmem:[#allocation34_spill] sm:$0xff] }
 0x33c   : > { %v10723_v40 = vld [vmem:[#allocation32_spill] sm:$0xff] }
 0x33d   : > { %6011 = vmatmul.mubr.msk.bf16.gmra.mrb[88].mxu0 %vm407_vm1, %v8579_v2 }
 0x33e   : > { %6081 = vmatpush3.bf16.msra.mxu0 %v10720_v43  ;;  %6014 = vmatprep.mubr.msk.bf16.mxu0 %vm6638_vm0, %v10489_v12  ;;  %v10724_v43 = vpack.c.bf16 %v10722_v53, %v10723_v40  ;;  %v10726_v53 = vld [vmem:[#allocation38_spill] sm:$0xff]  ;;  %v10727_v40 = vld [vmem:[#allocation36_spill] sm:$0xff] }
 0x33f   : > { %6082 = vmatprep.subr.bf16.mxu0 %v10489_v12 }
 0x340   : > { %v2364_v21 = vpop.f32.mrb[240].mxu1  ;;  %5893 = vmatmul.mubr.msk.bf16.gmra.mrb[40].mxu1 %vm407_vm1, %v8659_v45  ;;  %v8898_v10 = vpop.f32.mrb[240].mxu0 }
 0x341   : > { %10721 = vst [vmem:[#allocation14_spill] sm:$0xff] %v8898_v10  ;;  %v8900_v0 = vmul.f32 1.0016193, %v2364_v21  ;;  %v5726_v24 = vpop.f32.mrb[241].mxu1  ;;  %5896 = vmatprep.mubr.msk.bf16.mxu1 %vm6638_vm0, %v10489_v12  ;;  %v5600_v16 = vpop.f32.mrb[241].mxu0 }
 0x342   : > { %6083 = vmatpush3.bf16.msra.mxu0 %v10724_v43  ;;  %v2367_v51 = vpop.f32.mrb[242].mxu1  ;;  %v8907_v28 = vpop.f32.mrb[242].mxu0  ;;  %v10728_v43 = vpack.c.bf16 %v10726_v53, %v10727_v40 }
 0x343   : > { %10725 = vst [vmem:[#allocation12_spill] sm:$0xff] %v8907_v28  ;;  %v8911_v41 = vmul.f32 1.0016193, %v2367_v51  ;;  %6084 = vmatprep.subr.bf16.mxu0 %v10489_v12  ;;  %v5727_v21 = vpop.f32.mrb[243].mxu1  ;;  %v5601_v49 = vpop.f32.mrb[243].mxu0 }
 0x345   : > { %6015 = vmatmul.mubr.msk.bf16.gmra.mrb[92].mxu0 %vm407_vm1, %v8625_v31 }
 0x346   : > { %6085 = vmatpush3.bf16.msra.mxu0 %v10728_v43  ;;  %6018 = vmatprep.mubr.msk.bf16.mxu0 %vm6638_vm0, %v10489_v12  ;;  %v10736_v43 = vld [vmem:[#allocation11_spill] sm:$0xff] }
 0x347   : > { %6156 = vmatprep.subr.bf16.mxu0 %v10489_v12 }
 0x348   : > { %v2372_v51 = vpop.f32.mrb[244].mxu1  ;;  %5897 = vmatmul.mubr.msk.bf16.gmra.mrb[44].mxu1 %vm407_vm1, %v8696_v57  ;;  %v8928_v49 = vpop.f32.mrb[244].mxu0 }
 0x349   : > { %10729 = vst [vmem:[#allocation45_spill] sm:$0xff] %v8928_v49  ;;  %v8930_v21 = vmul.f32 1.0016193, %v2372_v51  ;;  %v5730_v24 = vpop.f32.mrb[245].mxu1  ;;  %5900 = vmatprep.mubr.msk.bf16.mxu1 %vm6638_vm0, %v10489_v12  ;;  %v5604_v16 = vpop.f32.mrb[245].mxu0 }
 0x34a   : > { %v2375_v53 = vpop.f32.mrb[246].mxu1  ;;  %v8934_v40 = vpop.f32.mrb[246].mxu0 }
 0x34b   : > { %10730 = vst [vmem:[#allocation9_spill] sm:$0xff] %v8934_v40  ;;  %v8938_v32 = vmul.f32 1.0016193, %v2375_v53  ;;  %v5731_v10 = vpop.f32.mrb[247].mxu1  ;;  %v5605_v44 = vpop.f32.mrb[247].mxu0 }
 0x34d   : > { %10731 = vst [vmem:[#allocation18_spill] sm:$0xff] %v8938_v32  ;;  %6019 = vmatmul.mubr.msk.bf16.gmra.mrb[96].mxu0 %vm407_vm1, %v8659_v45 }
 0x34e   : > { %6022 = vmatprep.mubr.msk.bf16.mxu0 %vm6638_vm0, %v10489_v12 }
 0x350   : > { %v2380_v16 = vpop.f32.mrb[248].mxu1  ;;  %5901 = vmatmul.mubr.msk.bf16.gmra.mrb[48].mxu1 %vm407_vm1, %v8725_v26  ;;  %v8950_v51 = vpop.f32.mrb[248].mxu0 }
 0x351   : > { %10732 = vst [vmem:[#allocation16_spill] sm:$0xff] %v8950_v51  ;;  %v8952_v10 = vmul.f32 1.0016193, %v2380_v16  ;;  %v5734_v53 = vpop.f32.mrb[249].mxu1  ;;  %v5608_v28 = vpop.f32.mrb[249].mxu0  ;;  %5960 = vmatprep.mubr.msk.bf16.mxu1 %vm6638_vm0, %v10489_v12 }
 0x352   : > { %v2383_v44 = vpop.f32.mrb[250].mxu1  ;;  %v8956_v24 = vpop.f32.mrb[250].mxu0 }
 0x353   : > { %10733 = vst [vmem:[#allocation47_spill] sm:$0xff] %v8956_v24  ;;  %v8960_v49 = vmul.f32 1.0016193, %v2383_v44  ;;  %v5609_v22 = vpop.f32.mrb[251].mxu0  ;;  %v5735_v32 = vpop.f32.mrb[251].mxu1  ;;  %v10735_v44 = vld [vmem:[#allocation13_spill] sm:$0xff]  ;;  %v10738_v24 = vsub.f32 %v8764_v1, %v8507_v8  ;;  %v10742_v8 = vsub.f32 %v8776_v11, %v8514_v34 }
 0x354   : > { %v10737_v52 = vpack.c.bf16 %v10735_v44, %v10736_v43  ;;  %v10740_v43 = vld [vmem:[#allocation15_spill] sm:$0xff] }
 0x355   : > { %10734 = vst [vmem:[#allocation46_spill] sm:$0xff] %v8960_v49  ;;  %6023 = vmatmul.mubr.msk.bf16.gmra.mrb[100].mxu0 %vm407_vm1, %v8696_v57  ;;  %v10739_v49 = vld [vmem:[#allocation17_spill] sm:$0xff]  ;;  %v10744_v44 = vld [vmem:[#allocation19_spill] sm:$0xff] }
 0x356   : > { %6026 = vmatprep.mubr.msk.bf16.mxu0 %vm6638_vm0, %v10489_v12 }
 0x358   : > { %v2449_v28 = vpop.f32.mrb[252].mxu0  ;;  %5961 = vmatmul.mubr.msk.bf16.vlgmr.msra.gmra.mrb[52].mxu1 %vm407_vm1, %v8503_v47 }
 0x359   : > { %v2504_v53 = vmul.f32 1.0016193, %v2449_v28  ;;  %6031 = vmatpush3.bf16.msra.mxu1 %v10737_v52  ;;  %v5752_v22 = vpop.f32.mrb[253].mxu0  ;;  %5964 = vmatprep.mubr.msk.bf16.mxu1 %vm6638_vm0, %v10489_v12  ;;  %v10741_v52 = vpack.c.bf16 %v10739_v49, %v10740_v43 }
 0x35a   : > { %v2452_v32 = vpop.f32.mrb[254].mxu0  ;;  %6032 = vmatprep.subr.bf16.mxu1 %v10489_v12 }
 0x35b   : > { %v2518_v40 = vsub.f32 %v2504_v53, %v8517_v58  ;;  %v2505_v16 = vmul.f32 1.0016193, %v2452_v32  ;;  %v5753_v51 = vpop.f32.mrb[255].mxu0  ;;  %v2546_v58 = vadd.f32 0.0001, %v8529_v13  ;;  %v10743_v53 = vld [vmem:[#allocation21_spill] sm:$0xff] }
 0x35c   : > { %v10745_v22 = vpack.c.bf16 %v10743_v53, %v10744_v44 }
 0x35d   : > { %v2560_v60 = vadd.f32 %v2518_v40, %v10738_v24  ;;  %v2519_v28 = vsub.f32 %v2505_v16, %v8531_v7  ;;  %6033 = vmatpush3.bf16.msra.mxu1 %v10741_v52  ;;  %6027 = vmatmul.mubr.msk.bf16.gmra.mrb[104].mxu0 %vm407_vm1, %v8725_v26  ;;  %v2547_v7 = vadd.f32 0.0001, %v8540_v17 }
 0x35e   : > { %6034 = vmatprep.subr.bf16.mxu1 %v10489_v12  ;;  %6086 = vmatprep.mubr.msk.bf16.mxu0 %vm6638_vm0, %v10489_v12 }
 0x35f   : > { %v2574_v51 = vadd.f32 0.0009, %v2560_v60  ;;  %v2561_v1 = vadd.f32 %v2519_v28, %v10742_v8  ;;  %v10746_v28 = vsub.f32 %v8794_v19, %v8547_v23  ;;  %v10751_v23 = vsub.f32 %v8806_v39, %v8559_v54 }
 0x360   : > { %v2457_v40 = vpop.f32.mrb[0].mxu0  ;;  %5965 = vmatmul.mubr.msk.bf16.gmra.mrb[56].mxu1 %vm407_vm1, %v8543_v55  ;;  %v2549_v19 = vadd.f32 0.0001, %v8585_v4  ;;  %v10755_v39 = vpack.c.bf16 %v8292_v37, %v8288_v46  ;;  %v10758_v46 = vld [vmem:[#allocation31_spill] sm:$0xff] }
 0x361   : > { %v8998_v49 = vmul.f32 %v2574_v51, %v2546_v58  ;;  %v2575_v24 = vadd.f32 0.0009, %v2561_v1  ;;  %v2506_v16 = vmul.f32 1.0016193, %v2457_v40  ;;  %6035 = vmatpush3.bf16.msra.mxu1 %v10745_v22  ;;  %v5756_v13 = vpop.f32.mrb[1].mxu0  ;;  %5968 = vmatprep.mubr.msk.bf16.mxu1 %vm6638_vm0, %v10489_v12  ;;  %v10747_v58 = vld [vmem:[#allocation25_spill] sm:$0xff]  ;;  %v10750_v1 = vpack.c.bf16 %v8273_v63, %v8269_v50 }
 0x362   : > { %v2460_v34 = vpop.f32.mrb[2].mxu0  ;;  %6036 = vmatprep.subr.bf16.mxu1 %v10489_v12  ;;  %v10748_v51 = vld [vmem:[#allocation23_spill] sm:$0xff] }
 0x363   : > { %v9006_v17 = vmul.f32 %v2575_v24, %v2547_v7  ;;  %v2520_v11 = vsub.f32 %v2506_v16, %v8555_v14  ;;  %v2507_v60 = vmul.f32 1.0016193, %v2460_v34  ;;  %v5757_v32 = vpop.f32.mrb[3].mxu0  ;;  %v10749_v8 = vpack.c.bf16 %v10747_v58, %v10748_v51  ;;  %v10752_v24 = vld [vmem:[#allocation29_spill] sm:$0xff]  ;;  %v10753_v16 = vld [vmem:[#allocation27_spill] sm:$0xff] }
 0x364   : > { %v2548_v14 = vadd.f32 0.0001, %v8569_v27  ;;  %v10754_v53 = vpack.c.bf16 %v10752_v24, %v10753_v16  ;;  %v10762_v51 = vld [vmem:[#allocation37_spill] sm:$0xff]  ;;  %6317 = vrcp.f32 %v8998_v49  ;;  %v10826_v49 = vld [vmem:[#allocation71_spill] sm:$0xff] }
 0x365   : > { %v2562_v43 = vadd.f32 %v2520_v11, %v10746_v28  ;;  %v2521_v52 = vsub.f32 %v2507_v60, %v8575_v33  ;;  %6037 = vmatpush3.bf16.msra.mxu1 %v10749_v8  ;;  %6087 = vmatmul.mubr.msk.bf16.vlgmr.msra.gmra.mrb[108].mxu0 %vm407_vm1, %v8503_v47  ;;  %v10756_v11 = vsub.f32 %v8828_v5, %v8588_v25  ;;  %v10757_v28 = vld [vmem:[#allocation33_spill] sm:$0xff]  ;;  %v2551_v5 = vadd.f32 0.0001, %v8622_v36  ;;  %v10763_v8 = vld [vmem:[#allocation35_spill] sm:$0xff] }
 0x366   : > { %6157 = vmatpush3.bf16.msra.mxu0 %v10750_v1  ;;  %6038 = vmatprep.subr.bf16.mxu1 %v10489_v12  ;;  %v10759_v37 = vpack.c.bf16 %v10757_v28, %v10758_v46  ;;  %v10761_v25 = vsub.f32 %v8843_v30, %v8595_v20  ;;  %v10764_v1 = vpack.c.bf16 %v10762_v51, %v10763_v8  ;;  %v10777_v46 = vld [vmem:[#allocation82_spill] sm:$0xff]  ;;  %v10783_v51 = vld [vmem:[#allocation84_spill] sm:$0xff]  ;;  %6319 = vrcp.f32 %v9006_v17 }
 0x367   : > { %v2576_v7 = vadd.f32 0.0009, %v2562_v43  ;;  %v2563_v33 = vadd.f32 %v2521_v52, %v10751_v23  ;;  %6158 = vmatprep.subr.bf16.mxu0 %v10489_v12  ;;  %6090 = vmatprep.mubr.msk.bf16.mxu0 %vm6638_vm0, %v10489_v12  ;;  %v2550_v43 = vadd.f32 0.0001, %v8611_v59  ;;  %v10765_v30 = vpack.c.bf16 %v8339_v62, %v8332_v56  ;;  %v10767_v62 = vld [vmem:[#allocation61_spill] sm:$0xff]  ;;  %v10768_v56 = vld [vmem:[#allocation59_spill] sm:$0xff] }
 0x368   : > { %v2465_v40 = vpop.f32.mrb[4].mxu0  ;;  %5969 = vmatmul.mubr.msk.bf16.gmra.mrb[60].mxu1 %vm407_vm1, %v8579_v2  ;;  %v2554_v8 = vadd.f32 0.0001, %v10783_v51 }
 0x369   : > { %v9032_v63 = vmul.f32 %v2576_v7, %v2548_v14  ;;  %v2577_v50 = vadd.f32 0.0009, %v2563_v33  ;;  %v2508_v27 = vmul.f32 1.0016193, %v2465_v40  ;;  %6039 = vmatpush3.bf16.msra.mxu1 %v10754_v53  ;;  %v5760_v54 = vpop.f32.mrb[5].mxu0  ;;  %5972 = vmatprep.mubr.msk.bf16.mxu1 %vm6638_vm0, %v10489_v12  ;;  %v10771_v53 = vld [vmem:[#allocation77_spill] sm:$0xff] }
 0x36a   : > { %6159 = vmatpush3.bf16.msra.mxu0 %v10755_v39  ;;  %v2468_v4 = vpop.f32.mrb[6].mxu0  ;;  %6040 = vmatprep.subr.bf16.mxu1 %v10489_v12  ;;  %v10772_v54 = vsub.f32 %v8881_v29, %v10771_v53  ;;  %v10789_v53 = vld [vmem:[#allocation92_spill] sm:$0xff] }
 0x36b   : > { %v9043_v44 = vmul.f32 %v2577_v50, %v2549_v19  ;;  %v2522_v22 = vsub.f32 %v2508_v27, %v8598_v38  ;;  %v2509_v13 = vmul.f32 1.0016193, %v2468_v4  ;;  %6160 = vmatprep.subr.bf16.mxu0 %v10489_v12  ;;  %v5761_v34 = vpop.f32.mrb[7].mxu0  ;;  %v10760_v38 = vpack.c.bf16 %v8315_v6, %v8308_v61 }
 0x36c   : > { %v10766_v19 = vsub.f32 %v8866_v15, %v8630_v42  ;;  %v10769_v27 = vpack.c.bf16 %v10767_v62, %v10768_v56  ;;  %v10787_v56 = vld [vmem:[#allocation88_spill] sm:$0xff]  ;;  %6321 = vrcp.f32 %v9032_v63 }
 0x36d   : > { %v2564_v60 = vadd.f32 %v2522_v22, %v10756_v11  ;;  %v2523_v32 = vsub.f32 %v2509_v13, %v8613_v3  ;;  %6041 = vmatpush3.bf16.msra.mxu1 %v10759_v37  ;;  %6091 = vmatmul.mubr.msk.bf16.gmra.mrb[112].mxu0 %vm407_vm1, %v8543_v55  ;;  %v10774_v11 = vld [vmem:[#allocation65_spill] sm:$0xff]  ;;  %6323 = vrcp.f32 %v9043_v44 }
 0x36e   : > { %6161 = vmatpush3.bf16.msra.mxu0 %v10760_v38  ;;  %6042 = vmatprep.subr.bf16.mxu1 %v10489_v12 }
 0x36f   : > { %v2578_v52 = vadd.f32 0.0009, %v2564_v60  ;;  %v2565_v3 = vadd.f32 %v2523_v32, %v10761_v25  ;;  %6162 = vmatprep.subr.bf16.mxu0 %v10489_v12  ;;  %6094 = vmatprep.mubr.msk.bf16.mxu0 %vm6638_vm0, %v10489_v12  ;;  %v10775_v60 = vld [vmem:[#allocation63_spill] sm:$0xff] }
 0x370   : > { %v2473_v58 = vpop.f32.mrb[8].mxu0  ;;  %5973 = vmatmul.mubr.msk.bf16.gmra.mrb[64].mxu1 %vm407_vm1, %v8625_v31  ;;  %v10776_v29 = vpack.c.bf16 %v10774_v11, %v10775_v60  ;;  %v10794_v11 = vld [vmem:[#allocation94_spill] sm:$0xff] }
 0x371   : > { %v9070_v6 = vmul.f32 %v2578_v52, %v2550_v43  ;;  %v2579_v61 = vadd.f32 0.0009, %v2565_v3  ;;  %v2510_v59 = vmul.f32 1.0016193, %v2473_v58  ;;  %6043 = vmatpush3.bf16.msra.mxu1 %v10764_v1  ;;  %v5764_v20 = vpop.f32.mrb[9].mxu0  ;;  %5976 = vmatprep.mubr.msk.bf16.mxu1 %vm6638_vm0, %v10489_v12  ;;  %v10778_v52 = vsub.f32 %v8900_v0, %v8667_v48  ;;  %v10779_v3 = vld [vmem:[#allocation85_spill] sm:$0xff] }
 0x372   : > { %6163 = vmatpush3.bf16.msra.mxu0 %v10765_v30  ;;  %v2476_v36 = vpop.f32.mrb[10].mxu0  ;;  %6114 = vmatprep.subr.bf16.mxu1 %v10489_v12  ;;  %v10780_v58 = vld [vmem:[#allocation69_spill] sm:$0xff]  ;;  %v10786_v0 = vld [vmem:[#allocation87_spill] sm:$0xff]  ;;  %v2557_v60 = vadd.f32 0.0001, %v10794_v11 }
 0x373   : > { %v9081_v14 = vmul.f32 %v2579_v61, %v2551_v5  ;;  %v2524_v7 = vsub.f32 %v2510_v59, %v8638_v9  ;;  %v2511_v23 = vmul.f32 1.0016193, %v2476_v36  ;;  %6164 = vmatprep.subr.bf16.mxu0 %v10489_v12  ;;  %v5765_v33 = vpop.f32.mrb[11].mxu0  ;;  %v10770_v9 = vld [vmem:[#allocation78_spill] sm:$0xff]  ;;  %v10781_v61 = vld [vmem:[#allocation67_spill] sm:$0xff]  ;;  %v10784_v20 = vld [vmem:[#allocation81_spill] sm:$0xff]  ;;  %6325 = vrcp.f32 %v9070_v6 }
 0x374   : > { %v2552_v24 = vadd.f32 0.0001, %v10770_v9  ;;  %v10782_v59 = vpack.c.bf16 %v10780_v58, %v10781_v61  ;;  %v10785_v30 = vsub.f32 %v8911_v41, %v10784_v20  ;;  %v2555_v36 = vadd.f32 0.0001, %v10786_v0  ;;  %v10813_v11 = vld [vmem:[#allocation57_spill] sm:$0xff]  ;;  %v10836_v6 = vld [vmem:[#allocation40_spill] sm:$0xff] }
 0x375   : > { %v2566_v40 = vadd.f32 %v2524_v7, %v10766_v19  ;;  %v2525_v50 = vsub.f32 %v2511_v23, %v8654_v35  ;;  %6095 = vmatmul.mubr.msk.bf16.gmra.mrb[116].mxu0 %vm407_vm1, %v8579_v2  ;;  %v10773_v35 = vld [vmem:[#allocation80_spill] sm:$0xff]  ;;  %6327 = vrcp.f32 %v9081_v14 }
 0x376   : > { %6165 = vmatpush3.bf16.msra.mxu0 %v10769_v27  ;;  %6098 = vmatprep.mubr.msk.bf16.mxu0 %vm6638_vm0, %v10489_v12  ;;  %v2553_v15 = vadd.f32 0.0001, %v10773_v35 }
 0x377   : > { %v2580_v16 = vadd.f32 0.0009, %v2566_v40  ;;  %v2567_v42 = vadd.f32 %v2525_v50, %v10772_v54  ;;  %6166 = vmatprep.subr.bf16.mxu0 %v10489_v12 }
 0x378   : > { %v2481_v39 = vpop.f32.mrb[12].mxu0  ;;  %5977 = vmatmul.mubr.msk.bf16.gmra.mrb[68].mxu1 %vm407_vm1, %v8659_v45 }
 0x379   : > { %v9104_v4 = vmul.f32 %v2580_v16, %v2552_v24  ;;  %v2581_v22 = vadd.f32 0.0009, %v2567_v42  ;;  %v2512_v13 = vmul.f32 1.0016193, %v2481_v39  ;;  %v5768_v34 = vpop.f32.mrb[13].mxu0  ;;  %5980 = vmatprep.mubr.msk.bf16.mxu1 %vm6638_vm0, %v10489_v12  ;;  %v10788_v24 = vsub.f32 %v8930_v21, %v8700_v18  ;;  %v10790_v42 = vld [vmem:[#allocation91_spill] sm:$0xff] }
 0x37a   : > { %6167 = vmatpush3.bf16.msra.mxu0 %v10776_v29  ;;  %v2484_v32 = vpop.f32.mrb[14].mxu0  ;;  %v2556_v35 = vadd.f32 0.0001, %v10790_v42  ;;  %v10791_v39 = vld [vmem:[#allocation18_spill] sm:$0xff] }
 0x37b   : > { %v9111_v28 = vmul.f32 %v2581_v22, %v2553_v15  ;;  %v2526_v37 = vsub.f32 %v2512_v13, %v10777_v46  ;;  %v2513_v38 = vmul.f32 1.0016193, %v2484_v32  ;;  %6168 = vmatprep.subr.bf16.mxu0 %v10489_v12  ;;  %v5769_v43 = vpop.f32.mrb[15].mxu0  ;;  %v10792_v22 = vld [vmem:[#allocation90_spill] sm:$0xff]  ;;  %6329 = vrcp.f32 %v9104_v4 }
 0x37c   : > { %v10793_v13 = vsub.f32 %v10791_v39, %v10792_v22  ;;  %v10795_v43 = vld [vmem:[#allocation97_spill] sm:$0xff] }
 0x37d   : > { %v2568_v25 = vadd.f32 %v2526_v37, %v10778_v52  ;;  %v2527_v5 = vsub.f32 %v2513_v38, %v10779_v3  ;;  %6099 = vmatmul.mubr.msk.bf16.gmra.mrb[120].mxu0 %vm407_vm1, %v8625_v31  ;;  %6331 = vrcp.f32 %v9111_v28 }
 0x37e   : > { %6169 = vmatpush3.bf16.msra.mxu0 %v10782_v59  ;;  %6102 = vmatprep.mubr.msk.bf16.mxu0 %vm6638_vm0, %v10489_v12  ;;  %v10798_v59 = vld [vmem:[#allocation100_spill] sm:$0xff] }
 0x37f   : > { %v2582_v1 = vadd.f32 0.0009, %v2568_v25  ;;  %v2569_v48 = vadd.f32 %v2527_v5, %v10785_v30  ;;  %v10796_v5 = vld [vmem:[#allocation95_spill] sm:$0xff]  ;;  %v10800_v30 = vld [vmem:[#allocation46_spill] sm:$0xff] }
 0x380   : > { %v2489_v7 = vpop.f32.mrb[16].mxu0  ;;  %5981 = vmatmul.mubr.msk.bf16.gmra.mrb[72].mxu1 %vm407_vm1, %v8696_v57  ;;  %v10797_v58 = vsub.f32 %v8952_v10, %v10796_v5  ;;  %v10820_v5 = vld [vmem:[#allocation62_spill] sm:$0xff] }
 0x381   : > { %v9133_v23 = vmul.f32 %v2582_v1, %v2554_v8  ;;  %v2583_v33 = vadd.f32 0.0009, %v2569_v48  ;;  %v2514_v19 = vmul.f32 1.0016193, %v2489_v7  ;;  %v5772_v40 = vpop.f32.mrb[17].mxu0  ;;  %5984 = vmatprep.mubr.msk.bf16.mxu1 %vm6638_vm0, %v10489_v12  ;;  %v10799_v8 = vld [vmem:[#allocation99_spill] sm:$0xff] }
 0x382   : > { %v2492_v50 = vpop.f32.mrb[18].mxu0  ;;  %v2558_v1 = vadd.f32 0.0001, %v10799_v8  ;;  %v10801_v48 = vld [vmem:[#allocation96_spill] sm:$0xff]  ;;  %v10803_v7 = vld [vmem:[#allocation102_spill] sm:$0xff] }
 0x383   : > { %v9137_v62 = vmul.f32 %v2583_v33, %v2555_v36  ;;  %v2528_v41 = vsub.f32 %v2514_v19, %v10787_v56  ;;  %v2515_v27 = vmul.f32 1.0016193, %v2492_v50  ;;  %v5773_v9 = vpop.f32.mrb[19].mxu0  ;;  %v10802_v0 = vsub.f32 %v10800_v30, %v10801_v48  ;;  %v10804_v50 = vld [vmem:[#allocation51_spill] sm:$0xff]  ;;  %v10805_v56 = vld [vmem:[#allocation50_spill] sm:$0xff] }
 0x384   : > { %v2559_v33 = vadd.f32 0.0001, %v10803_v7  ;;  %v10823_v8 = vld [vmem:[#allocation66_spill] sm:$0xff]  ;;  %6333 = vrcp.f32 %v9133_v23 }
 0x385   : > { %v2570_v16 = vadd.f32 %v2528_v41, %v10788_v24  ;;  %v2529_v54 = vsub.f32 %v2515_v27, %v10789_v53  ;;  %6103 = vmatmul.mubr.msk.bf16.gmra.mrb[124].mxu0 %vm407_vm1, %v8659_v45  ;;  %v10806_v41 = vpack.c.bf16 %v10804_v50, %v10805_v56  ;;  %v10808_v53 = vld [vmem:[#allocation52_spill] sm:$0xff]  ;;  %6335 = vrcp.f32 %v9137_v62 }
 0x386   : > { %6106 = vmatprep.mubr.msk.bf16.mxu0 %vm6638_vm0, %v10489_v12 }
 0x387   : > { %v2584_v15 = vadd.f32 0.0009, %v2570_v16  ;;  %v2571_v34 = vadd.f32 %v2529_v54, %v10793_v13  ;;  %v10807_v16 = vld [vmem:[#allocation53_spill] sm:$0xff] }
 0x388   : > { %v2497_v29 = vpop.f32.mrb[20].mxu0  ;;  %5985 = vmatmul.mubr.msk.bf16.gmra.mrb[76].mxu1 %vm407_vm1, %v8725_v26  ;;  %v10809_v54 = vpack.c.bf16 %v10807_v16, %v10808_v53  ;;  %v10825_v16 = vld [vmem:[#allocation70_spill] sm:$0xff] }
 0x389   : > { %v9155_v18 = vmul.f32 %v2584_v15, %v2556_v35  ;;  %v2585_v21 = vadd.f32 0.0009, %v2571_v34  ;;  %v2516_v32 = vmul.f32 1.0016193, %v2497_v29  ;;  %v5776_v46 = vpop.f32.mrb[21].mxu0  ;;  %6044 = vmatprep.mubr.msk.bf16.mxu1 %vm6638_vm0, %v10489_v12  ;;  %v10810_v35 = vld [vmem:[#allocation55_spill] sm:$0xff] }
 0x38a   : > { %v2500_v37 = vpop.f32.mrb[22].mxu0  ;;  %v10811_v15 = vld [vmem:[#allocation54_spill] sm:$0xff]  ;;  %v2733_v53 = vmul.f32 2.0, %v10825_v16 }
 0x38b   : > { %v9159_v38 = vmul.f32 %v2585_v21, %v2557_v60  ;;  %v2530_v52 = vsub.f32 %v2516_v32, %v10795_v43  ;;  %v2517_v25 = vmul.f32 1.0016193, %v2500_v37  ;;  %v5777_v3 = vpop.f32.mrb[23].mxu0  ;;  %v10812_v39 = vpack.c.bf16 %v10810_v35, %v10811_v15  ;;  %v10814_v60 = vld [vmem:[#allocation56_spill] sm:$0xff]  ;;  %v10817_v46 = vld [vmem:[#allocation58_spill] sm:$0xff] }
 0x38c   : > { %v10815_v29 = vpack.c.bf16 %v10813_v11, %v10814_v60  ;;  %v10816_v32 = vld [vmem:[#allocation60_spill] sm:$0xff]  ;;  %v2747_v11 = vadd.f32 0.0001, %v2733_v53  ;;  %6337 = vrcp.f32 %v9155_v18 }
 0x38d   : > { %v2572_v61 = vadd.f32 %v2530_v52, %v10797_v58  ;;  %v2531_v51 = vsub.f32 %v2517_v25, %v10798_v59  ;;  %6107 = vmatmul.mubr.msk.bf16.gmra.mrb[128].mxu0 %vm407_vm1, %v8696_v57  ;;  %v10818_v37 = vpack.c.bf16 %v10816_v32, %v10817_v46  ;;  %v10819_v3 = vld [vmem:[#allocation64_spill] sm:$0xff]  ;;  %6339 = vrcp.f32 %v9159_v38 }
 0x38e   : > { %6110 = vmatprep.mubr.msk.bf16.mxu0 %vm6638_vm0, %v10489_v12  ;;  %v10821_v58 = vpack.c.bf16 %v10819_v3, %v10820_v5 }
 0x38f   : > { %v2586_v20 = vadd.f32 0.0009, %v2572_v61  ;;  %v2573_v36 = vadd.f32 %v2531_v51, %v10802_v0  ;;  %v9236_v61 = vld [vmem:[#allocation2 + $0x8] sm:$0xff]   ;;  %v10822_v51 = vld [vmem:[#allocation68_spill] sm:$0xff] }
 0x390   : > { %6045 = vmatmul.mubr.msk.bf16.vlgmr.msra.gmra.mrb[80].mxu1 %vm407_vm1, %v8503_v47  ;;  %v9176_v10 = vpop.f32.mrb[24].mxu0 }
 0x391   : > { %v9179_v19 = vmul.f32 %v2586_v20, %v2558_v1  ;;  %v2587_v40 = vadd.f32 0.0009, %v2573_v36  ;;  %6115 = vmatpush3.bf16.msra.mxu1 %v10806_v41  ;;  %6048 = vmatprep.mubr.msk.bf16.mxu1 %vm6638_vm0, %v10489_v12  ;;  %v5836_v27 = vpop.f32.mrb[25].mxu0  ;;  %v10824_v1 = vpack.c.bf16 %v10822_v51, %v10823_v8  ;;  %v6318_v8 = vpop.eup %6317 }
 0x392   : > { %6116 = vmatprep.subr.bf16.mxu1 %v10489_v12  ;;  %v9187_v9 = vpop.f32.mrb[26].mxu0 }
 0x393   : > { %v9189_v47 = vmul.f32 %v2587_v40, %v2559_v33  ;;  %v5837_v24 = vpop.f32.mrb[27].mxu0  ;;  %6341 = vrcp.f32 %v9179_v19 }
 0x395   : > { %6117 = vmatpush3.bf16.msra.mxu1 %v10809_v54  ;;  %6111 = vmatmul.mubr.msk.bf16.gmra.mrb[132].mxu0 %vm407_vm1, %v8725_v26  ;;  %6343 = vrcp.f32 %v9189_v47 }
 0x396   : > { %6118 = vmatprep.subr.bf16.mxu1 %v10489_v12  ;;  %6170 = vmatprep.mubr.msk.bf16.mxu0 %vm6638_vm0, %v10489_v12 }
 0x398   : > { %6049 = vmatmul.mubr.msk.bf16.gmra.mrb[84].mxu1 %vm407_vm1, %v8543_v55  ;;  %v9201_v42 = vpop.f32.mrb[28].mxu0  ;;  %v9214_v55 = vld [vmem:[#allocation2] sm:$0xff]  }
 0x399   : > { %6119 = vmatpush3.bf16.msra.mxu1 %v10812_v39  ;;  %6052 = vmatprep.mubr.msk.bf16.mxu1 %vm6638_vm0, %v10489_v12  ;;  %v5840_v22 = vpop.f32.mrb[29].mxu0  ;;  %v2734_v39 = vmul.f32 2.0, %v10826_v49 }
 0x39a   : > { %6120 = vmatprep.subr.bf16.mxu1 %v10489_v12  ;;  %v9209_v13 = vpop.f32.mrb[30].mxu0 }
 0x39b   : > { %v5841_v34 = vpop.f32.mrb[31].mxu0  ;;  %v2748_v46 = vadd.f32 0.0001, %v2734_v39 }
 0x39d   : > { %6121 = vmatpush3.bf16.msra.mxu1 %v10815_v29  ;;  %6171 = vmatmul.mubr.msk.bf16.vlgmr.msra.gmra.mrb[136].mxu0 %vm407_vm1, %v9214_v55 }
 0x39e   : > { %6122 = vmatprep.subr.bf16.mxu1 %v10489_v12  ;;  %6174 = vmatprep.mubr.msk.bf16.mxu0 %vm6638_vm0, %v10489_v12 }
 0x3a0   : > { %6053 = vmatmul.mubr.msk.bf16.gmra.mrb[88].mxu1 %vm407_vm1, %v8579_v2  ;;  %v9223_v21 = vpop.f32.mrb[32].mxu0 }
 0x3a1   : > { %6123 = vmatpush3.bf16.msra.mxu1 %v10818_v37  ;;  %6056 = vmatprep.mubr.msk.bf16.mxu1 %vm6638_vm0, %v10489_v12  ;;  %v5844_v43 = vpop.f32.mrb[33].mxu0 }
 0x3a2   : > { %6124 = vmatprep.subr.bf16.mxu1 %v10489_v12  ;;  %v9231_v52 = vpop.f32.mrb[34].mxu0  ;;  %v9299_v43 = vmul.f32 1.0016193, %v9176_v10 }
 0x3a3   : > { %v5845_v25 = vpop.f32.mrb[35].mxu0  ;;  %v9393_v4 = vmul.f32 1.0016193, %v9231_v52 }
 0x3a4   : > { %v9316_v44 = vmul.f32 %v9299_v43, %v9299_v43 }
 0x3a5   : > { %6125 = vmatpush3.bf16.msra.mxu1 %v10821_v58  ;;  %6175 = vmatmul.mubr.msk.bf16.gmra.mrb[140].mxu0 %vm407_vm1, %v9236_v61 }
 0x3a6   : > { %6126 = vmatprep.subr.bf16.mxu1 %v10489_v12  ;;  %6178 = vmatprep.mubr.msk.bf16.mxu0 %vm6638_vm0, %v10489_v12 }
 0x3a8   : > { %6057 = vmatmul.mubr.msk.bf16.gmra.mrb[92].mxu1 %vm407_vm1, %v8625_v31  ;;  %v9245_v59 = vpop.f32.mrb[36].mxu0 }
 0x3a9   : > { %6127 = vmatpush3.bf16.msra.mxu1 %v10824_v1  ;;  %6060 = vmatprep.mubr.msk.bf16.mxu1 %vm6638_vm0, %v10489_v12  ;;  %v5848_v20 = vpop.f32.mrb[37].mxu0  ;;  %v10827_v1 = vld [vmem:[#allocation72_spill] sm:$0xff] }
 0x3aa   : > { %6198 = vmatprep.subr.bf16.mxu1 %v10489_v12  ;;  %v9253_v30 = vpop.f32.mrb[38].mxu0  ;;  %v2735_v20 = vmul.f32 2.0, %v10827_v1 }
 0x3ab   : > { %v5849_v48 = vpop.f32.mrb[39].mxu0  ;;  %v9439_v23 = vmul.f32 1.0016193, %v9253_v30 }
 0x3ac   : > { %v10828_v48 = vld [vmem:[#allocation73_spill] sm:$0xff]  ;;  %v2749_v53 = vadd.f32 0.0001, %v2735_v20 }
 0x3ad   : > { %6179 = vmatmul.mubr.msk.bf16.gmra.mrb[144].mxu0 %vm407_vm1, %v8579_v2 }
 0x3ae   : > { %6182 = vmatprep.mubr.msk.bf16.mxu0 %vm6638_vm0, %v10489_v12 }
 0x3b0   : > { %6061 = vmatmul.mubr.msk.bf16.gmra.mrb[96].mxu1 %vm407_vm1, %v8659_v45  ;;  %v9261_v0 = vpop.f32.mrb[40].mxu0 }
 0x3b1   : > { %6064 = vmatprep.mubr.msk.bf16.mxu1 %vm6638_vm0, %v10489_v12  ;;  %v5852_v36 = vpop.f32.mrb[41].mxu0 }
 0x3b2   : > { %v9265_v7 = vpop.f32.mrb[42].mxu0  ;;  %v2736_v36 = vmul.f32 2.0, %v10828_v48 }
 0x3b3   : > { %v5853_v33 = vpop.f32.mrb[43].mxu0  ;;  %v9484_v18 = vmul.f32 1.0016193, %v9265_v7 }
 0x3b5   : > { %6183 = vmatmul.mubr.msk.bf16.gmra.mrb[148].mxu0 %vm407_vm1, %v8625_v31 }
 0x3b6   : > { %6186 = vmatprep.mubr.msk.bf16.mxu0 %vm6638_vm0, %v10489_v12 }
 0x3b8   : > { %6065 = vmatmul.mubr.msk.bf16.gmra.mrb[100].mxu1 %vm407_vm1, %v8696_v57  ;;  %v9273_v2 = vpop.f32.mrb[44].mxu0 }
 0x3b9   : > { %6068 = vmatprep.mubr.msk.bf16.mxu1 %vm6638_vm0, %v10489_v12  ;;  %v5856_v40 = vpop.f32.mrb[45].mxu0 }
 0x3ba   : > { %v9277_v50 = vpop.f32.mrb[46].mxu0  ;;  %v9305_v40 = vmul.f32 1.0016193, %v9187_v9 }
 0x3bb   : > { %v2650_v56 = vpop.f32.mrb[252].mxu1  ;;  %v5857_v41 = vpop.f32.mrb[47].mxu0  ;;  %v9522_v19 = vmul.f32 1.0016193, %v9277_v50 }
 0x3bc   : > { %v2705_v27 = vmul.f32 1.0016193, %v2650_v56  ;;  %v5794_v31 = vpop.f32.mrb[253].mxu1 }
 0x3bd   : > { %v2653_v24 = vpop.f32.mrb[254].mxu1  ;;  %6187 = vmatmul.mubr.msk.bf16.gmra.mrb[152].mxu0 %vm407_vm1, %v8659_v45  ;;  %v6320_v31 = vpop.eup %6319 }
 0x3be   : > { %v2719_v54 = vsub.f32 %v2705_v27, %v10825_v16  ;;  %v2706_v35 = vmul.f32 1.0016193, %v2653_v24  ;;  %v5795_v15 = vpop.f32.mrb[255].mxu1  ;;  %6190 = vmatprep.mubr.msk.bf16.mxu0 %vm6638_vm0, %v10489_v12 }
 0x3c0   : > { %v2761_v22 = vmul.f32 2.0, %v2719_v54  ;;  %v2720_v34 = vsub.f32 %v2706_v35, %v10826_v49  ;;  %6069 = vmatmul.mubr.msk.bf16.gmra.mrb[104].mxu1 %vm407_vm1, %v8725_v26  ;;  %v9291_v17 = vpop.f32.mrb[48].mxu0  ;;  %v10831_v54 = vld [vmem:[#allocation39_spill] sm:$0xff]  ;;  %v9328_v49 = vmul.f32 %v9305_v40, %v9305_v40 }
 0x3c1   : > { %6128 = vmatprep.mubr.msk.bf16.mxu1 %vm6638_vm0, %v10489_v12  ;;  %v5860_v45 = vpop.f32.mrb[49].mxu0  ;;  %v10832_v35 = vld [vmem:[#allocation103_spill] sm:$0xff] }
 0x3c2   : > { %v2775_v60 = vadd.f32 0.0009, %v2761_v22  ;;  %v2762_v29 = vmul.f32 2.0, %v2720_v34  ;;  %v9295_v32 = vpop.f32.mrb[50].mxu0  ;;  %v10833_v15 = vpack.c.bf16 %v10831_v54, %v10832_v35  ;;  %v2750_v34 = vadd.f32 0.0001, %v2736_v36 }
 0x3c3   : > { %v2658_v37 = vpop.f32.mrb[0].mxu1  ;;  %v5861_v25 = vpop.f32.mrb[51].mxu0  ;;  %v10835_v36 = vld [vmem:[#allocation75_spill] sm:$0xff] }
 0x3c4   : > { %v2789_v3 = vmul.f32 %v2775_v60, %v2747_v11  ;;  %v2776_v5 = vadd.f32 0.0009, %v2762_v29  ;;  %v2707_v58 = vmul.f32 1.0016193, %v2658_v37  ;;  %v5798_v51 = vpop.f32.mrb[1].mxu1  ;;  %v10872_v37 = vld [vmem:[#allocation93_spill] sm:$0xff] }
 0x3c5   : > { %v2661_v33 = vpop.f32.mrb[2].mxu1  ;;  %6191 = vmatmul.mubr.msk.bf16.gmra.mrb[156].mxu0 %vm407_vm1, %v8696_v57 }
 0x3c6   : > { %v9309_v63 = vmul.f32 %v6318_v8, %v2789_v3  ;;  %v2790_v10 = vmul.f32 %v2776_v5, %v2748_v46  ;;  %v2721_v56 = vsub.f32 %v2707_v58, %v10827_v1  ;;  %v2708_v41 = vmul.f32 1.0016193, %v2661_v33  ;;  %v5799_v27 = vpop.f32.mrb[3].mxu1  ;;  %6194 = vmatprep.mubr.msk.bf16.mxu0 %vm6638_vm0, %v10489_v12  ;;  %v10834_v5 = vld [vmem:[#allocation74_spill] sm:$0xff] }
 0x3c7   : > { %v9337_v46 = vmul.f32 1.0016193, %v9201_v42  ;;  %v2737_v58 = vmul.f32 2.0, %v10834_v5  ;;  %v2738_v33 = vmul.f32 2.0, %v10835_v36  ;;  %v10837_v42 = vld [vmem:[#allocation41_spill] sm:$0xff] }
 0x3c8   : > { %10829 = vst [vmem:[#allocation22_spill] sm:$0xff] %v9309_v63  ;;  %v9318_v9 = vmul.f32 %v6320_v31, %v2790_v10  ;;  %v2763_v24 = vmul.f32 2.0, %v2721_v56  ;;  %v2722_v57 = vsub.f32 %v2708_v41, %v10828_v48  ;;  %6129 = vmatmul.mubr.msk.bf16.vlgmr.msra.gmra.mrb[108].mxu1 %vm407_vm1, %v9214_v55  ;;  %v3113_v16 = vpop.f32.mrb[52].mxu0  ;;  %v6322_v48 = vpop.eup %6321  ;;  %v10838_v10 = vpack.c.bf16 %v10836_v6, %v10837_v42  ;;  %v10846_v42 = vld [vmem:[#allocation76_spill] sm:$0xff] }
 0x3c9   : > { %6199 = vmatpush3.bf16.msra.mxu1 %v10833_v15  ;;  %6132 = vmatprep.mubr.msk.bf16.mxu1 %vm6638_vm0, %v10489_v12  ;;  %v9332_v39 = vmul.f32 1.0016193, %v3113_v16  ;;  %v5920_v22 = vpop.f32.mrb[53].mxu0  ;;  %v9350_v41 = vmul.f32 1.0016193, %v9209_v13  ;;  %v9362_v13 = vmul.f32 %v9337_v46, %v9337_v46 }
 0x3ca   : > { %10830 = vst [vmem:[#allocation20_spill] sm:$0xff] %v9318_v9  ;;  %v2777_v45 = vadd.f32 0.0009, %v2763_v24  ;;  %v2764_v11 = vmul.f32 2.0, %v2722_v57  ;;  %6200 = vmatprep.subr.bf16.mxu1 %v10489_v12  ;;  %v3116_v60 = vpop.f32.mrb[54].mxu0 }
 0x3cb   : > { %v2666_v29 = vpop.f32.mrb[4].mxu1  ;;  %v9341_v25 = vmul.f32 1.0016193, %v3116_v60  ;;  %v5921_v3 = vpop.f32.mrb[55].mxu0  ;;  %v2751_v22 = vadd.f32 0.0001, %v2737_v58 }
 0x3cc   : > { %v2791_v51 = vmul.f32 %v2777_v45, %v2749_v53  ;;  %v2778_v8 = vadd.f32 0.0009, %v2764_v11  ;;  %v2709_v1 = vmul.f32 1.0016193, %v2666_v29  ;;  %v5802_v20 = vpop.f32.mrb[5].mxu1  ;;  %v6324_v53 = vpop.eup %6323  ;;  %v10842_v45 = vld [vmem:[#allocation42_spill] sm:$0xff] }
 0x3cd   : > { %6201 = vmatpush3.bf16.msra.mxu1 %v10838_v10  ;;  %v2669_v56 = vpop.f32.mrb[6].mxu1  ;;  %6195 = vmatmul.mubr.msk.bf16.gmra.mrb[160].mxu0 %vm407_vm1, %v8725_v26  ;;  %v10843_v11 = vld [vmem:[#allocation43_spill] sm:$0xff]  ;;  %v2739_v10 = vmul.f32 2.0, %v10846_v42 }
 0x3ce   : > { %v9356_v31 = vmul.f32 %v6322_v48, %v2791_v51  ;;  %v2792_v24 = vmul.f32 %v2778_v8, %v2750_v34  ;;  %v2723_v57 = vsub.f32 %v2709_v1, %v10834_v5  ;;  %v2710_v14 = vmul.f32 1.0016193, %v2669_v56  ;;  %6202 = vmatprep.subr.bf16.mxu1 %v10489_v12  ;;  %v5803_v16 = vpop.f32.mrb[7].mxu1  ;;  %v10871_v48 = vld [vmem:[#allocation89_spill] sm:$0xff] }
 0x3cf   : > { %v9371_v34 = vmul.f32 %v9350_v41, %v9350_v41  ;;  %v10844_v60 = vpack.c.bf16 %v10842_v45, %v10843_v11  ;;  %v2752_v5 = vadd.f32 0.0001, %v2738_v33  ;;  %v9383_v1 = vmul.f32 1.0016193, %v9223_v21  ;;  %v10847_v16 = vld [vmem:[#allocation79_spill] sm:$0xff]  ;;  %v10848_v21 = vld [vmem:[#allocation44_spill] sm:$0xff] }
 0x3d0   : > { %10839 = vst [vmem:[#allocation49_spill] sm:$0xff] %v9356_v31  ;;  %v9364_v54 = vmul.f32 %v6324_v53, %v2792_v24  ;;  %v2765_v35 = vmul.f32 2.0, %v2723_v57  ;;  %v2724_v15 = vsub.f32 %v2710_v14, %v10835_v36  ;;  %6133 = vmatmul.mubr.msk.bf16.gmra.mrb[112].mxu1 %vm407_vm1, %v9236_v61  ;;  %v3121_v26 = vpop.f32.mrb[56].mxu0  ;;  %v6326_v14 = vpop.eup %6325  ;;  %v2740_v53 = vmul.f32 2.0, %v10847_v16  ;;  %v10861_v45 = vld [vmem:[#allocation45_spill] sm:$0xff] }
 0x3d1   : > { %10841 = vst [vmem:[#allocation26_spill] sm:$0xff] %v9371_v34  ;;  %6203 = vmatpush3.bf16.msra.mxu1 %v10844_v60  ;;  %6136 = vmatprep.mubr.msk.bf16.mxu1 %vm6638_vm0, %v10489_v12  ;;  %v9378_v29 = vmul.f32 1.0016193, %v3121_v26  ;;  %v5924_v3 = vpop.f32.mrb[57].mxu0  ;;  %v9406_v52 = vmul.f32 %v9383_v1, %v9383_v1 }
 0x3d2   : > { %10840 = vst [vmem:[#allocation48_spill] sm:$0xff] %v9364_v54  ;;  %v2779_v51 = vadd.f32 0.0009, %v2765_v35  ;;  %v2766_v8 = vmul.f32 2.0, %v2724_v15  ;;  %6204 = vmatprep.subr.bf16.mxu1 %v10489_v12  ;;  %v3124_v58 = vpop.f32.mrb[58].mxu0  ;;  %v10849_v35 = vld [vmem:[#allocation10_spill] sm:$0xff] }
 0x3d3   : > { %v2674_v20 = vpop.f32.mrb[8].mxu1  ;;  %v9387_v36 = vmul.f32 1.0016193, %v3124_v58  ;;  %v5925_v6 = vpop.f32.mrb[59].mxu0  ;;  %v10850_v15 = vpack.c.bf16 %v10848_v21, %v10849_v35  ;;  %v2754_v21 = vadd.f32 0.0001, %v2740_v53 }
 0x3d4   : > { %v2793_v33 = vmul.f32 %v2779_v51, %v2751_v22  ;;  %v2780_v56 = vadd.f32 0.0009, %v2766_v8  ;;  %v2711_v24 = vmul.f32 1.0016193, %v2674_v20  ;;  %v5806_v57 = vpop.f32.mrb[9].mxu1  ;;  %v6328_v51 = vpop.eup %6327  ;;  %v9411_v6 = vld [vmem:[#allocation2 + $0x10] sm:$0xff]  }
 0x3d5   : > { %10845 = vst [vmem:[#allocation24_spill] sm:$0xff] %v9387_v36  ;;  %6205 = vmatpush3.bf16.msra.mxu1 %v10850_v15  ;;  %v2677_v26 = vpop.f32.mrb[10].mxu1  ;;  %v9536_v54 = vld [vmem:[#allocation2 + $0x28] sm:$0xff]  }
 0x3d6   : > { %v9400_v22 = vmul.f32 %v6326_v14, %v2793_v33  ;;  %v2794_v11 = vmul.f32 %v2780_v56, %v2752_v5  ;;  %v2725_v60 = vsub.f32 %v2711_v24, %v10846_v42  ;;  %v2712_v3 = vmul.f32 1.0016193, %v2677_v26  ;;  %6206 = vmatprep.subr.bf16.mxu1 %v10489_v12  ;;  %v5807_v28 = vpop.f32.mrb[11].mxu1  ;;  %v10853_v56 = vld [vmem:[#allocation12_spill] sm:$0xff]  ;;  %v10854_v24 = vld [vmem:[#allocation14_spill] sm:$0xff] }
 0x3d7   : > { %v2753_v42 = vadd.f32 0.0001, %v2739_v10  ;;  %v9417_v33 = vmul.f32 %v9393_v4, %v9393_v4  ;;  %v10855_v57 = vpack.c.bf16 %v10853_v56, %v10854_v24  ;;  %v9429_v26 = vmul.f32 1.0016193, %v9245_v59  ;;  %v6330_v24 = vpop.eup %6329  ;;  %v10860_v59 = vld [vmem:[#allocation9_spill] sm:$0xff] }
 0x3d8   : > { %10851 = vst [vmem:[#allocation30_spill] sm:$0xff] %v9400_v22  ;;  %v9408_v8 = vmul.f32 %v6328_v51, %v2794_v11  ;;  %v2767_v58 = vmul.f32 2.0, %v2725_v60  ;;  %v2726_v20 = vsub.f32 %v2712_v3, %v10847_v16  ;;  %6137 = vmatmul.mubr.msk.bf16.gmra.mrb[116].mxu1 %vm407_vm1, %v9411_v6  ;;  %v3129_v5 = vpop.f32.mrb[60].mxu0  ;;  %v10858_v51 = vld [vmem:[#allocation83_spill] sm:$0xff]  ;;  %v10862_v60 = vpack.c.bf16 %v10860_v59, %v10861_v45 }
 0x3d9   : > { %6207 = vmatpush3.bf16.msra.mxu1 %v10855_v57  ;;  %6140 = vmatprep.mubr.msk.bf16.mxu1 %vm6638_vm0, %v10489_v12  ;;  %v9424_v14 = vmul.f32 1.0016193, %v3129_v5  ;;  %v5928_v16 = vpop.f32.mrb[61].mxu0  ;;  %v2741_v5 = vmul.f32 2.0, %v10858_v51  ;;  %v10859_v57 = vld [vmem:[#allocation86_spill] sm:$0xff]  ;;  %v9452_v30 = vmul.f32 %v9429_v26, %v9429_v26 }
 0x3da   : > { %10852 = vst [vmem:[#allocation28_spill] sm:$0xff] %v9408_v8  ;;  %v2781_v35 = vadd.f32 0.0009, %v2767_v58  ;;  %v2768_v15 = vmul.f32 2.0, %v2726_v20  ;;  %6208 = vmatprep.subr.bf16.mxu1 %v10489_v12  ;;  %v3132_v10 = vpop.f32.mrb[62].mxu0  ;;  %v2742_v16 = vmul.f32 2.0, %v10859_v57 }
 0x3db   : > { %10856 = vst [vmem:[#allocation34_spill] sm:$0xff] %v9424_v14  ;;  %v2682_v11 = vpop.f32.mrb[12].mxu1  ;;  %v9433_v3 = vmul.f32 1.0016193, %v3132_v10  ;;  %v5929_v28 = vpop.f32.mrb[63].mxu0  ;;  %v9498_v8 = vld [vmem:[#allocation2 + $0x20] sm:$0xff]  }
 0x3dc   : > { %v2795_v53 = vmul.f32 %v2781_v35, %v2753_v42  ;;  %v2782_v58 = vadd.f32 0.0009, %v2768_v15  ;;  %v2713_v20 = vmul.f32 1.0016193, %v2682_v11  ;;  %v5810_v56 = vpop.f32.mrb[13].mxu1  ;;  %v9457_v28 = vld [vmem:[#allocation2 + $0x18] sm:$0xff]  }
 0x3dd   : > { %10857 = vst [vmem:[#allocation32_spill] sm:$0xff] %v9433_v3  ;;  %6209 = vmatpush3.bf16.msra.mxu1 %v10862_v60  ;;  %v2685_v10 = vpop.f32.mrb[14].mxu1  ;;  %v6332_v56 = vpop.eup %6331 }
 0x3de   : > { %v9446_v42 = vmul.f32 %v6330_v24, %v2795_v53  ;;  %v2796_v35 = vmul.f32 %v2782_v58, %v2754_v21  ;;  %v2727_v15 = vsub.f32 %v2713_v20, %v10858_v51  ;;  %v2714_v11 = vmul.f32 1.0016193, %v2685_v10  ;;  %6210 = vmatprep.subr.bf16.mxu1 %v10489_v12  ;;  %v5811_v62 = vpop.f32.mrb[15].mxu1  ;;  %v10866_v58 = vld [vmem:[#allocation47_spill] sm:$0xff]  ;;  %v10867_v20 = vld [vmem:[#allocation16_spill] sm:$0xff] }
 0x3df   : > { %v2755_v51 = vadd.f32 0.0001, %v2741_v5  ;;  %v9463_v53 = vmul.f32 %v9439_v23, %v9439_v23  ;;  %v10868_v24 = vpack.c.bf16 %v10866_v58, %v10867_v20  ;;  %v9474_v5 = vmul.f32 1.0016193, %v9261_v0 }
 0x3e0   : > { %10863 = vst [vmem:[#allocation38_spill] sm:$0xff] %v9446_v42  ;;  %v9454_v45 = vmul.f32 %v6332_v56, %v2796_v35  ;;  %v2769_v60 = vmul.f32 2.0, %v2727_v15  ;;  %v2728_v59 = vsub.f32 %v2714_v11, %v10859_v57  ;;  %6141 = vmatmul.mubr.msk.bf16.gmra.mrb[120].mxu1 %vm407_vm1, %v9457_v28  ;;  %v3137_v21 = vpop.f32.mrb[64].mxu0  ;;  %v2756_v35 = vadd.f32 0.0001, %v2742_v16 }
 0x3e1   : > { %10865 = vst [vmem:[#allocation13_spill] sm:$0xff] %v9463_v53  ;;  %6211 = vmatpush3.bf16.msra.mxu1 %v10868_v24  ;;  %6144 = vmatprep.mubr.msk.bf16.mxu1 %vm6638_vm0, %v10489_v12  ;;  %v9470_v10 = vmul.f32 1.0016193, %v3137_v21  ;;  %v5932_v57 = vpop.f32.mrb[65].mxu0  ;;  %v2743_v21 = vmul.f32 2.0, %v10871_v48 }
 0x3e2   : > { %10864 = vst [vmem:[#allocation36_spill] sm:$0xff] %v9454_v45  ;;  %v2783_v15 = vadd.f32 0.0009, %v2769_v60  ;;  %v2770_v11 = vmul.f32 2.0, %v2728_v59  ;;  %v3140_v62 = vpop.f32.mrb[66].mxu0  ;;  %v6334_v59 = vpop.eup %6333  ;;  %v2744_v45 = vmul.f32 2.0, %v10872_v37 }
 0x3e3   : > { %10869 = vst [vmem:[#allocation11_spill] sm:$0xff] %v9470_v10  ;;  %v2690_v56 = vpop.f32.mrb[16].mxu1  ;;  %v9478_v20 = vmul.f32 1.0016193, %v3140_v62  ;;  %v5933_v24 = vpop.f32.mrb[67].mxu0  ;;  %v10878_v62 = vld [vmem:[#allocation98_spill] sm:$0xff] }
 0x3e4   : > { %v2797_v27 = vmul.f32 %v2783_v15, %v2755_v51  ;;  %v2784_v57 = vadd.f32 0.0009, %v2770_v11  ;;  %v2715_v16 = vmul.f32 1.0016193, %v2690_v56  ;;  %v5814_v60 = vpop.f32.mrb[17].mxu1  ;;  %v6336_v56 = vpop.eup %6335 }
 0x3e5   : > { %10870 = vst [vmem:[#allocation17_spill] sm:$0xff] %v9478_v20  ;;  %v2693_v0 = vpop.f32.mrb[18].mxu1  ;;  %v9493_v60 = vmul.f32 %v9474_v5, %v9474_v5 }
 0x3e6   : > { %v9488_v58 = vmul.f32 %v6334_v59, %v2797_v27  ;;  %v2798_v24 = vmul.f32 %v2784_v57, %v2756_v35  ;;  %v2729_v51 = vsub.f32 %v2715_v16, %v10871_v48  ;;  %v2716_v15 = vmul.f32 1.0016193, %v2693_v0  ;;  %v5815_v11 = vpop.f32.mrb[19].mxu1 }
 0x3e7   : > { %v2757_v35 = vadd.f32 0.0001, %v2743_v21  ;;  %v9504_v48 = vmul.f32 %v9484_v18, %v9484_v18  ;;  %v2758_v59 = vadd.f32 0.0001, %v2744_v45 }
 0x3e8   : > { %10873 = vst [vmem:[#allocation15_spill] sm:$0xff] %v9488_v58  ;;  %v9495_v38 = vmul.f32 %v6336_v56, %v2798_v24  ;;  %v2771_v7 = vmul.f32 2.0, %v2729_v51  ;;  %v2730_v42 = vsub.f32 %v2716_v15, %v10872_v37  ;;  %6145 = vmatmul.mubr.msk.bf16.gmra.mrb[124].mxu1 %vm407_vm1, %v9498_v8  ;;  %v3145_v27 = vpop.f32.mrb[68].mxu0  ;;  %v9512_v51 = vmul.f32 1.0016193, %v9273_v2  ;;  %v10879_v58 = vld [vmem:[#allocation101_spill] sm:$0xff] }
 0x3e9   : > { %10875 = vst [vmem:[#allocation19_spill] sm:$0xff] %v9504_v48  ;;  %6148 = vmatprep.mubr.msk.bf16.mxu1 %vm6638_vm0, %v10489_v12  ;;  %v9508_v57 = vmul.f32 1.0016193, %v3145_v27  ;;  %v5936_v16 = vpop.f32.mrb[69].mxu0  ;;  %v2745_v27 = vmul.f32 2.0, %v10878_v62  ;;  %v2746_v22 = vmul.f32 2.0, %v10879_v58 }
 0x3ea   : > { %10874 = vst [vmem:[#allocation21_spill] sm:$0xff] %v9495_v38  ;;  %v2785_v0 = vadd.f32 0.0009, %v2771_v7  ;;  %v2772_v37 = vmul.f32 2.0, %v2730_v42  ;;  %v3148_v24 = vpop.f32.mrb[70].mxu0  ;;  %v6338_v42 = vpop.eup %6337 }
 0x3eb   : > { %10876 = vst [vmem:[#allocation25_spill] sm:$0xff] %v9508_v57  ;;  %v2698_v21 = vpop.f32.mrb[20].mxu1  ;;  %v9516_v11 = vmul.f32 1.0016193, %v3148_v24  ;;  %v5937_v56 = vpop.f32.mrb[71].mxu0 }
 0x3ec   : > { %v2799_v38 = vmul.f32 %v2785_v0, %v2757_v35  ;;  %v2786_v16 = vadd.f32 0.0009, %v2772_v37  ;;  %v2717_v45 = vmul.f32 1.0016193, %v2698_v21  ;;  %v5818_v7 = vpop.f32.mrb[21].mxu1  ;;  %v6340_v21 = vpop.eup %6339 }
 0x3ed   : > { %10877 = vst [vmem:[#allocation23_spill] sm:$0xff] %v9516_v11  ;;  %v2701_v2 = vpop.f32.mrb[22].mxu1  ;;  %v9531_v7 = vmul.f32 %v9512_v51, %v9512_v51  ;;  %v6342_v11 = vpop.eup %6341 }
 0x3ee   : > { %v9526_v15 = vmul.f32 %v6338_v42, %v2799_v38  ;;  %v2800_v56 = vmul.f32 %v2786_v16, %v2758_v59  ;;  %v2731_v35 = vsub.f32 %v2717_v45, %v10878_v62  ;;  %v2718_v0 = vmul.f32 1.0016193, %v2701_v2  ;;  %v5819_v37 = vpop.f32.mrb[23].mxu1 }
 0x3ef   : > { %v2759_v59 = vadd.f32 0.0001, %v2745_v27  ;;  %v9542_v62 = vmul.f32 %v9522_v19, %v9522_v19  ;;  %v2760_v42 = vadd.f32 0.0001, %v2746_v22  ;;  %v9556_v22 = vmul.f32 1.0016193, %v9295_v32 }
 0x3f0   : > { %10880 = vst [vmem:[#allocation29_spill] sm:$0xff] %v9526_v15  ;;  %v9533_v47 = vmul.f32 %v6340_v21, %v2800_v56  ;;  %v2773_v50 = vmul.f32 2.0, %v2731_v35  ;;  %v2732_v57 = vsub.f32 %v2718_v0, %v10879_v58  ;;  %6149 = vmatmul.mubr.msk.bf16.gmra.mrb[128].mxu1 %vm407_vm1, %v9536_v54  ;;  %v3153_v38 = vpop.f32.mrb[72].mxu0  ;;  %v9549_v35 = vmul.f32 1.0016193, %v9291_v17 }
 0x3f1   : > { %10882 = vst [vmem:[#allocation33_spill] sm:$0xff] %v9542_v62  ;;  %6152 = vmatprep.mubr.msk.bf16.mxu1 %vm6638_vm0, %v10489_v12  ;;  %v9546_v16 = vmul.f32 1.0016193, %v3153_v38  ;;  %v5940_v45 = vpop.f32.mrb[73].mxu0 }
 0x3f2   : > { %10881 = vst [vmem:[#allocation27_spill] sm:$0xff] %v9533_v47  ;;  %v2787_v2 = vadd.f32 0.0009, %v2773_v50  ;;  %v2774_v58 = vmul.f32 2.0, %v2732_v57  ;;  %v3156_v56 = vpop.f32.mrb[74].mxu0 }
 0x3f3   : > { %10883 = vst [vmem:[#allocation31_spill] sm:$0xff] %v9546_v16  ;;  %v2982_v0 = vpop.f32.mrb[24].mxu1  ;;  %v9553_v37 = vmul.f32 1.0016193, %v3156_v56  ;;  %v5941_v21 = vpop.f32.mrb[75].mxu0 }
 0x3f4   : > { %v2801_v24 = vmul.f32 %v2787_v2, %v2759_v59  ;;  %v2788_v47 = vadd.f32 0.0009, %v2774_v58  ;;  %v3037_v15 = vmul.f32 1.0016193, %v2982_v0  ;;  %v5878_v38 = vpop.f32.mrb[25].mxu1  ;;  %v6344_v59 = vpop.eup %6343  ;;  %v9567_v2 = vmul.f32 %v9549_v35, %v9549_v35  ;;  %v9573_v0 = vld [vmem:[#allocation2 + $0x30] sm:$0xff]  }
 0x3f5   : > { %10884 = vst [vmem:[#allocation37_spill] sm:$0xff] %v9553_v37  ;;  %v2985_v57 = vpop.f32.mrb[26].mxu1 }
 0x3f6   : > { %v9560_v50 = vmul.f32 %v6342_v11, %v2801_v24  ;;  %v2802_v45 = vmul.f32 %v2788_v47, %v2760_v42  ;;  %v9562_v31 = vmul.f32 %v3037_v15, %v3037_v15  ;;  %v3383_v56 = vmul.f32 %v3037_v15, %v9299_v43  ;;  %v5879_v21 = vpop.f32.mrb[27].mxu1 }
 0x3f7   : > { %v3038_v58 = vmul.f32 1.0016193, %v2985_v57  ;;  %v9581_v43 = vmul.f32 %v9556_v22, %v9556_v22 }
 0x3f8   : > { %10885 = vst [vmem:[#allocation35_spill] sm:$0xff] %v9560_v50  ;;  %v9571_v32 = vadd.f32 %v9562_v31, %v9316_v44  ;;  %6153 = vmatmul.mubr.msk.bf16.gmra.mrb[132].mxu1 %vm407_vm1, %v9573_v0  ;;  %v3161_v11 = vpop.f32.mrb[76].mxu0  ;;  %v9577_v24 = vmul.f32 %v6344_v59, %v2802_v45 }
 0x3f9   : > { %10887 = vst [vmem:[#allocation59_spill] sm:$0xff] %v9581_v43  ;;  %v9583_v15 = vmul.f32 %v3038_v58, %v3038_v58  ;;  %v3384_v47 = vmul.f32 %v3038_v58, %v9305_v40  ;;  %v9586_v42 = vmul.f32 1.0016193, %v3161_v11  ;;  %v5944_v38 = vpop.f32.mrb[77].mxu0  ;;  %6212 = vmatprep.mubr.msk.bf16.mxu1 %vm6638_vm0, %v10489_v12 }
 0x3fa   : > { %10886 = vst [vmem:[#allocation61_spill] sm:$0xff] %v9577_v24  ;;  %v3164_v57 = vpop.f32.mrb[78].mxu0 }
 0x3fb   : > { %10888 = vst [vmem:[#allocation78_spill] sm:$0xff] %v9586_v42  ;;  %v9592_v21 = vadd.f32 %v9583_v15, %v9328_v49  ;;  %v2990_v45 = vpop.f32.mrb[28].mxu1  ;;  %v9596_v17 = vmul.f32 1.0016193, %v3164_v57  ;;  %v5945_v27 = vpop.f32.mrb[79].mxu0 }
 0x3fc   : > { %v3039_v24 = vmul.f32 1.0016193, %v2990_v45  ;;  %v5882_v40 = vpop.f32.mrb[29].mxu1 }
 0x3fd   : > { %10889 = vst [vmem:[#allocation77_spill] sm:$0xff] %v9596_v17  ;;  %v2993_v58 = vpop.f32.mrb[30].mxu1 }
 0x3fe   : > { %v9600_v38 = vmul.f32 %v3039_v24, %v3039_v24  ;;  %v3385_v50 = vmul.f32 %v3039_v24, %v9337_v46  ;;  %v3040_v37 = vmul.f32 1.0016193, %v2993_v58  ;;  %v5883_v16 = vpop.f32.mrb[31].mxu1  ;;  %v3514_v46 = vmul.f32 2.0, %v3383_v56 }
 0x400   : > { %v9605_v20 = vadd.f32 %v9600_v38, %v9362_v13  ;;  %v9607_v59 = vmul.f32 %v3040_v37, %v3040_v37  ;;  %v3386_v27 = vmul.f32 %v3040_v37, %v9350_v41  ;;  %v3431_v57 = vpop.f32.mrb[80].mxu0  ;;  %6213 = vmatmul.mubr.msk.bf16.vlgmr.msra.gmra.mrb[136].mxu1 %vm407_vm1, %v9214_v55  ;;  %v3515_v41 = vmul.f32 2.0, %v3384_v47 }
 0x401   : > { %v3486_v45 = vmul.f32 1.0016193, %v3431_v57  ;;  %v6004_v40 = vpop.f32.mrb[81].mxu0  ;;  %6216 = vmatprep.mubr.msk.bf16.mxu1 %vm6638_vm0, %v10489_v12  ;;  %v3528_v57 = vadd.f32 0.0001, %v3514_v46 }
 0x402   : > { %10890 = vst [vmem:[#allocation80_spill] sm:$0xff] %v9605_v20  ;;  %v9616_v16 = vadd.f32 %v9607_v59, %v9371_v34  ;;  %v3434_v24 = vpop.f32.mrb[82].mxu0  ;;  %v3529_v20 = vadd.f32 0.0001, %v3515_v41 }
 0x403   : > { %v3500_v58 = vsub.f32 %v3486_v45, %v3383_v56  ;;  %v3487_v11 = vmul.f32 1.0016193, %v3434_v24  ;;  %v2998_v17 = vpop.f32.mrb[32].mxu1  ;;  %v6005_v42 = vpop.f32.mrb[83].mxu0 }
 0x404   : > { %10891 = vst [vmem:[#allocation65_spill] sm:$0xff] %v9616_v16  ;;  %v3041_v37 = vmul.f32 1.0016193, %v2998_v17  ;;  %v5886_v55 = vpop.f32.mrb[33].mxu1 }
 0x405   : > { %v3542_v10 = vmul.f32 2.0, %v3500_v58  ;;  %v3501_v9 = vsub.f32 %v3487_v11, %v3384_v47  ;;  %v3001_v3 = vpop.f32.mrb[34].mxu1 }
 0x406   : > { %v9618_v40 = vmul.f32 %v3041_v37, %v3041_v37  ;;  %v3387_v63 = vmul.f32 %v3041_v37, %v9383_v1  ;;  %v3042_v34 = vmul.f32 1.0016193, %v3001_v3  ;;  %v5887_v16 = vpop.f32.mrb[35].mxu1  ;;  %v3516_v3 = vmul.f32 2.0, %v3385_v50 }
 0x407   : > { %v3556_v14 = vadd.f32 0.0009, %v3542_v10  ;;  %v3543_v36 = vmul.f32 2.0, %v3501_v9 }
 0x408   : > { %v9623_v56 = vadd.f32 %v9618_v40, %v9406_v52  ;;  %v3439_v42 = vpop.f32.mrb[84].mxu0  ;;  %6217 = vmatmul.mubr.msk.bf16.gmra.mrb[140].mxu1 %vm407_vm1, %v9236_v61  ;;  %v9629_v11 = vmul.f32 %v3042_v34, %v3042_v34  ;;  %v3388_v1 = vmul.f32 %v3042_v34, %v9393_v4  ;;  %v3517_v34 = vmul.f32 2.0, %v3386_v27 }
 0x409   : > { %v9627_v17 = vmul.f32 %v3556_v14, %v3528_v57  ;;  %v3557_v47 = vadd.f32 0.0009, %v3543_v36  ;;  %v6008_v10 = vpop.f32.mrb[85].mxu0  ;;  %6220 = vmatprep.mubr.msk.bf16.mxu1 %vm6638_vm0, %v10489_v12  ;;  %v3488_v9 = vmul.f32 1.0016193, %v3439_v42 }
 0x40a   : > { %v9638_v46 = vadd.f32 %v9629_v11, %v9417_v33  ;;  %v3442_v61 = vpop.f32.mrb[86].mxu0  ;;  %v3530_v10 = vadd.f32 0.0001, %v3516_v3 }
 0x40b   : > { %v9634_v45 = vmul.f32 %v3557_v47, %v3529_v20  ;;  %v3006_v14 = vpop.f32.mrb[36].mxu1  ;;  %v3502_v16 = vsub.f32 %v3488_v9, %v3385_v50  ;;  %v3489_v36 = vmul.f32 1.0016193, %v3442_v61  ;;  %v6009_v41 = vpop.f32.mrb[87].mxu0 }
 0x40c   : > { %10893 = vst [vmem:[#allocation82_spill] sm:$0xff] %v9638_v46  ;;  %v3043_v24 = vmul.f32 1.0016193, %v3006_v14  ;;  %v5890_v58 = vpop.f32.mrb[37].mxu1 }
 0x40d   : > { %10892 = vst [vmem:[#allocation63_spill] sm:$0xff] %v9634_v45  ;;  %v3009_v4 = vpop.f32.mrb[38].mxu1  ;;  %v3544_v37 = vmul.f32 2.0, %v3502_v16  ;;  %v3503_v55 = vsub.f32 %v3489_v36, %v3386_v27 }
 0x40e   : > { %v9640_v57 = vmul.f32 %v3043_v24, %v3043_v24  ;;  %v3389_v20 = vmul.f32 %v3043_v24, %v9429_v26  ;;  %v5891_v42 = vpop.f32.mrb[39].mxu1  ;;  %v3044_v47 = vmul.f32 1.0016193, %v3009_v4  ;;  %v3531_v26 = vadd.f32 0.0001, %v3517_v34 }
 0x40f   : > { %v3558_v45 = vadd.f32 0.0009, %v3544_v37  ;;  %v3545_v46 = vmul.f32 2.0, %v3503_v55  ;;  %v3518_v24 = vmul.f32 2.0, %v3387_v63 }
 0x410   : > { %v9645_v50 = vadd.f32 %v9640_v57, %v9452_v30  ;;  %v3447_v9 = vpop.f32.mrb[88].mxu0  ;;  %6221 = vmatmul.mubr.msk.bf16.gmra.mrb[144].mxu1 %vm407_vm1, %v9411_v6  ;;  %v9649_v61 = vmul.f32 %v3044_v47, %v3044_v47  ;;  %v3390_v27 = vmul.f32 %v3044_v47, %v9439_v23 }
 0x411   : > { %v3490_v14 = vmul.f32 1.0016193, %v3447_v9  ;;  %v6012_v16 = vpop.f32.mrb[89].mxu0  ;;  %6224 = vmatprep.mubr.msk.bf16.mxu1 %vm6638_vm0, %v10489_v12  ;;  %v9654_v3 = vmul.f32 %v3558_v45, %v3530_v10  ;;  %v3559_v36 = vadd.f32 0.0009, %v3545_v46  ;;  %v3519_v9 = vmul.f32 2.0, %v3388_v1 }
 0x412   : > { %10894 = vst [vmem:[#allocation85_spill] sm:$0xff] %v9645_v50  ;;  %v9658_v58 = vadd.f32 %v9649_v61, %v9463_v53  ;;  %v3450_v6 = vpop.f32.mrb[90].mxu0 }
 0x413   : > { %v3504_v41 = vsub.f32 %v3490_v14, %v3387_v63  ;;  %v3014_v4 = vpop.f32.mrb[40].mxu1  ;;  %v9660_v37 = vmul.f32 %v3559_v36, %v3531_v26  ;;  %v3491_v23 = vmul.f32 1.0016193, %v3450_v6  ;;  %v6013_v47 = vpop.f32.mrb[91].mxu0 }
 0x414   : > { %10895 = vst [vmem:[#allocation69_spill] sm:$0xff] %v9658_v58  ;;  %v3045_v55 = vmul.f32 1.0016193, %v3014_v4  ;;  %v5894_v42 = vpop.f32.mrb[41].mxu1  ;;  %v3532_v58 = vadd.f32 0.0001, %v3518_v24 }
 0x415   : > { %v3546_v16 = vmul.f32 2.0, %v3504_v41  ;;  %v3017_v34 = vpop.f32.mrb[42].mxu1  ;;  %v3505_v45 = vsub.f32 %v3491_v23, %v3388_v1  ;;  %v3520_v1 = vmul.f32 2.0, %v3389_v20  ;;  %v3533_v24 = vadd.f32 0.0001, %v3519_v9 }
 0x416   : > { %v9662_v10 = vmul.f32 %v3045_v55, %v3045_v55  ;;  %v3391_v46 = vmul.f32 %v3045_v55, %v9474_v5  ;;  %v3046_v50 = vmul.f32 1.0016193, %v3017_v34  ;;  %v5895_v53 = vpop.f32.mrb[43].mxu1 }
 0x417   : > { %v3560_v63 = vadd.f32 0.0009, %v3546_v16  ;;  %v3547_v14 = vmul.f32 2.0, %v3505_v45  ;;  %v3534_v45 = vadd.f32 0.0001, %v3520_v1 }
 0x418   : > { %v9667_v26 = vadd.f32 %v9662_v10, %v9493_v60  ;;  %v9669_v36 = vmul.f32 %v3046_v50, %v3046_v50  ;;  %v3455_v6 = vpop.f32.mrb[92].mxu0  ;;  %6225 = vmatmul.mubr.msk.bf16.gmra.mrb[148].mxu1 %vm407_vm1, %v9457_v28  ;;  %v3392_v5 = vmul.f32 %v3046_v50, %v9484_v18 }
 0x419   : > { %v9673_v41 = vmul.f32 %v3560_v63, %v3532_v58  ;;  %v3492_v4 = vmul.f32 1.0016193, %v3455_v6  ;;  %v6016_v53 = vpop.f32.mrb[93].mxu0  ;;  %6228 = vmatprep.mubr.msk.bf16.mxu1 %vm6638_vm0, %v10489_v12  ;;  %v3561_v23 = vadd.f32 0.0009, %v3547_v14  ;;  %v3521_v6 = vmul.f32 2.0, %v3390_v27 }
 0x41a   : > { %10896 = vst [vmem:[#allocation67_spill] sm:$0xff] %v9667_v26  ;;  %v9680_v55 = vadd.f32 %v9669_v36, %v9504_v48  ;;  %v3458_v47 = vpop.f32.mrb[94].mxu0 }
 0x41b   : > { %v3506_v42 = vsub.f32 %v3492_v4, %v3389_v20  ;;  %v3022_v16 = vpop.f32.mrb[44].mxu1  ;;  %v9682_v28 = vmul.f32 %v3561_v23, %v3533_v24  ;;  %v3493_v58 = vmul.f32 1.0016193, %v3458_v47  ;;  %v6017_v63 = vpop.f32.mrb[95].mxu0 }
 0x41c   : > { %10897 = vst [vmem:[#allocation84_spill] sm:$0xff] %v9680_v55  ;;  %v3047_v34 = vmul.f32 1.0016193, %v3022_v16  ;;  %v5898_v50 = vpop.f32.mrb[45].mxu1  ;;  %v3535_v16 = vadd.f32 0.0001, %v3521_v6 }
 0x41d   : > { %v3548_v18 = vmul.f32 2.0, %v3506_v42  ;;  %v3507_v53 = vsub.f32 %v3493_v58, %v3390_v27  ;;  %v3025_v14 = vpop.f32.mrb[46].mxu1 }
 0x41e   : > { %v9684_v26 = vmul.f32 %v3047_v34, %v3047_v34  ;;  %v3393_v9 = vmul.f32 %v3047_v34, %v9512_v51  ;;  %v3048_v55 = vmul.f32 1.0016193, %v3025_v14  ;;  %v5899_v20 = vpop.f32.mrb[47].mxu1  ;;  %v3522_v34 = vmul.f32 2.0, %v3391_v46 }
 0x41f   : > { %v3562_v48 = vadd.f32 0.0009, %v3548_v18  ;;  %v3549_v4 = vmul.f32 2.0, %v3507_v53  ;;  %v3523_v14 = vmul.f32 2.0, %v3392_v5 }
 0x420   : > { %v9689_v24 = vadd.f32 %v9684_v26, %v9531_v7  ;;  %v3463_v23 = vpop.f32.mrb[96].mxu0  ;;  %6229 = vmatmul.mubr.msk.bf16.gmra.mrb[152].mxu1 %vm407_vm1, %v9498_v8  ;;  %v9695_v27 = vmul.f32 %v3048_v55, %v3048_v55  ;;  %v3394_v42 = vmul.f32 %v3048_v55, %v9522_v19 }
 0x421   : > { %v9693_v1 = vmul.f32 %v3562_v48, %v3534_v45  ;;  %v3494_v51 = vmul.f32 1.0016193, %v3463_v23  ;;  %v6020_v47 = vpop.f32.mrb[97].mxu0  ;;  %6232 = vmatprep.mubr.msk.bf16.mxu1 %vm6638_vm0, %v10489_v12  ;;  %v3563_v58 = vadd.f32 0.0009, %v3549_v4 }
 0x422   : > { %10898 = vst [vmem:[#allocation81_spill] sm:$0xff] %v9689_v24  ;;  %v9702_v18 = vadd.f32 %v9695_v27, %v9542_v62  ;;  %v3466_v8 = vpop.f32.mrb[98].mxu0 }
 0x423   : > { %v3508_v50 = vsub.f32 %v3494_v51, %v3391_v46  ;;  %v3030_v48 = vpop.f32.mrb[48].mxu1  ;;  %v9704_v45 = vmul.f32 %v3563_v58, %v3535_v16  ;;  %v3495_v63 = vmul.f32 1.0016193, %v3466_v8  ;;  %v6021_v55 = vpop.f32.mrb[99].mxu0 }
 0x424   : > { %10899 = vst [vmem:[#allocation87_spill] sm:$0xff] %v9702_v18  ;;  %v3049_v53 = vmul.f32 1.0016193, %v3030_v48  ;;  %v5902_v19 = vpop.f32.mrb[49].mxu1  ;;  %v3536_v18 = vadd.f32 0.0001, %v3522_v34 }
 0x425   : > { %v3550_v20 = vmul.f32 2.0, %v3508_v50  ;;  %v3033_v23 = vpop.f32.mrb[50].mxu1  ;;  %v3509_v47 = vsub.f32 %v3495_v63, %v3392_v5  ;;  %v3524_v34 = vmul.f32 2.0, %v3393_v9 }
 0x426   : > { %v9706_v6 = vmul.f32 %v3049_v53, %v3049_v53  ;;  %v3395_v4 = vmul.f32 %v3049_v53, %v9549_v35  ;;  %v3050_v24 = vmul.f32 1.0016193, %v3033_v23  ;;  %v5903_v62 = vpop.f32.mrb[51].mxu1 }
 0x427   : > { %v3564_v46 = vadd.f32 0.0009, %v3550_v20  ;;  %v3551_v51 = vmul.f32 2.0, %v3509_v47  ;;  %v3537_v62 = vadd.f32 0.0001, %v3523_v14 }
 0x428   : > { %v9711_v16 = vadd.f32 %v9706_v6, %v9567_v2  ;;  %v9713_v58 = vmul.f32 %v3050_v24, %v3050_v24  ;;  %v3471_v8 = vpop.f32.mrb[100].mxu0  ;;  %6233 = vmatmul.mubr.msk.bf16.gmra.mrb[156].mxu1 %vm407_vm1, %v9536_v54  ;;  %v3396_v50 = vmul.f32 %v3050_v24, %v9556_v22  ;;  %v3525_v22 = vmul.f32 2.0, %v3394_v42 }
 0x429   : > { %v9717_v5 = vmul.f32 %v3564_v46, %v3536_v18  ;;  %v3496_v35 = vmul.f32 1.0016193, %v3471_v8  ;;  %v6024_v48 = vpop.f32.mrb[101].mxu0  ;;  %6236 = vmatprep.mubr.msk.bf16.mxu1 %vm6638_vm0, %v10489_v12  ;;  %v3565_v63 = vadd.f32 0.0009, %v3551_v51 }
 0x42a   : > { %10900 = vst [vmem:[#allocation88_spill] sm:$0xff] %v9711_v16  ;;  %v9724_v53 = vadd.f32 %v9713_v58, %v9581_v43  ;;  %v3474_v55 = vpop.f32.mrb[102].mxu0  ;;  %v3538_v8 = vadd.f32 0.0001, %v3524_v34 }
 0x42b   : > { %v3510_v19 = vsub.f32 %v3496_v35, %v3393_v9  ;;  %v3230_v20 = vpop.f32.mrb[52].mxu1  ;;  %v9726_v54 = vmul.f32 %v3565_v63, %v3537_v62  ;;  %v3497_v18 = vmul.f32 1.0016193, %v3474_v55  ;;  %v6025_v46 = vpop.f32.mrb[103].mxu0  ;;  %v3327_v9 = vadd.f32 0.0001, %v9571_v32 }
 0x42c   : > { %v3285_v23 = vmul.f32 1.0016193, %v3230_v20  ;;  %v5962_v47 = vpop.f32.mrb[53].mxu1  ;;  %v10901_v62 = vsub.f32 %v9332_v39, %v9316_v44  ;;  %v3526_v32 = vmul.f32 2.0, %v3395_v4 }
 0x42d   : > { %v3552_v24 = vmul.f32 2.0, %v3510_v19  ;;  %v3511_v12 = vsub.f32 %v3497_v18, %v3394_v42  ;;  %v3233_v51 = vpop.f32.mrb[54].mxu1  ;;  %v3539_v19 = vadd.f32 0.0001, %v3525_v22 }
 0x42e   : > { %v3299_v14 = vsub.f32 %v3285_v23, %v9562_v31  ;;  %v3286_v16 = vmul.f32 1.0016193, %v3233_v51  ;;  %v5963_v43 = vpop.f32.mrb[55].mxu1 }
 0x42f   : > { %v3566_v48 = vadd.f32 0.0009, %v3552_v24  ;;  %v3553_v35 = vmul.f32 2.0, %v3511_v12  ;;  %v10902_v24 = vsub.f32 %v9341_v25, %v9328_v49 }
 0x430   : > { %v3341_v63 = vadd.f32 %v3299_v14, %v10901_v62  ;;  %v3479_v55 = vpop.f32.mrb[104].mxu0  ;;  %6237 = vmatmul.mubr.msk.bf16.gmra.mrb[160].mxu1 %vm407_vm1, %v9573_v0  ;;  %v3300_v31 = vsub.f32 %v3286_v16, %v9583_v15  ;;  %v3328_v0 = vadd.f32 0.0001, %v9592_v21  ;;  %v3527_v14 = vmul.f32 2.0, %v3396_v50 }
 0x431   : > { %v9735_v34 = vmul.f32 %v3566_v48, %v3538_v8  ;;  %v3498_v42 = vmul.f32 1.0016193, %v3479_v55  ;;  %v6028_v20 = vpop.f32.mrb[105].mxu0  ;;  %v3567_v18 = vadd.f32 0.0009, %v3553_v35  ;;  %v10903_v21 = vsub.f32 %v9378_v29, %v9362_v13  ;;  %v10908_v13 = vld [vmem:[#allocation65_spill] sm:$0xff] }
 0x432   : > { %v3355_v43 = vadd.f32 0.0009, %v3341_v63  ;;  %v3482_v23 = vpop.f32.mrb[106].mxu0  ;;  %v3342_v44 = vadd.f32 %v3300_v31, %v10902_v24  ;;  %v3540_v63 = vadd.f32 0.0001, %v3526_v32 }
 0x433   : > { %v3512_v39 = vsub.f32 %v3498_v42, %v3395_v4  ;;  %v3499_v47 = vmul.f32 1.0016193, %v3482_v23  ;;  %v3238_v46 = vpop.f32.mrb[56].mxu1  ;;  %v6029_v12 = vpop.f32.mrb[107].mxu0  ;;  %v9742_v22 = vmul.f32 %v3567_v18, %v3539_v19  ;;  %v3541_v18 = vadd.f32 0.0001, %v3527_v14 }
 0x434   : > { %v3369_v8 = vmul.f32 %v3355_v43, %v3327_v9  ;;  %v3287_v15 = vmul.f32 1.0016193, %v3238_v46  ;;  %v5966_v16 = vpop.f32.mrb[57].mxu1  ;;  %v3356_v51 = vadd.f32 0.0009, %v3342_v44  ;;  %v10904_v23 = vld [vmem:[#allocation80_spill] sm:$0xff] }
 0x435   : > { %v3554_v48 = vmul.f32 2.0, %v3512_v39  ;;  %v3513_v35 = vsub.f32 %v3499_v47, %v3396_v50  ;;  %v3241_v62 = vpop.f32.mrb[58].mxu1  ;;  %v3329_v24 = vadd.f32 0.0001, %v10904_v23  ;;  %v10905_v44 = vld [vmem:[#allocation24_spill] sm:$0xff]  ;;  %v10906_v39 = vld [vmem:[#allocation26_spill] sm:$0xff] }
 0x436   : > { %6345 = vrcp.f32 %v3369_v8  ;;  %v3301_v49 = vsub.f32 %v3287_v15, %v9600_v38  ;;  %v3288_v25 = vmul.f32 1.0016193, %v3241_v62  ;;  %v5967_v4 = vpop.f32.mrb[59].mxu1  ;;  %v3370_v55 = vmul.f32 %v3356_v51, %v3328_v0 }
 0x437   : > { %v3568_v31 = vadd.f32 0.0009, %v3554_v48  ;;  %v3555_v42 = vmul.f32 2.0, %v3513_v35  ;;  %v10907_v47 = vsub.f32 %v10905_v44, %v10906_v39  ;;  %v3330_v29 = vadd.f32 0.0001, %v10908_v13  ;;  %v10913_v44 = vld [vmem:[#allocation82_spill] sm:$0xff] }
 0x438   : > { %v3343_v9 = vadd.f32 %v3301_v49, %v10903_v21  ;;  %v3302_v19 = vsub.f32 %v3288_v25, %v9607_v59  ;;  %v9749_v20 = vpop.f32.mrb[108].mxu0  ;;  %6347 = vrcp.f32 %v3370_v55 }
 0x439   : > { %v9751_v50 = vmul.f32 %v3568_v31, %v3540_v63  ;;  %v3569_v43 = vadd.f32 0.0009, %v3555_v42  ;;  %v6088_v38 = vpop.f32.mrb[109].mxu0  ;;  %v10909_v63 = vld [vmem:[#allocation34_spill] sm:$0xff] }
 0x43a   : > { %v3357_v32 = vadd.f32 0.0009, %v3343_v9  ;;  %v3344_v46 = vadd.f32 %v3302_v19, %v10907_v47  ;;  %v9757_v12 = vpop.f32.mrb[110].mxu0  ;;  %v10910_v55 = vsub.f32 %v10909_v63, %v9406_v52  ;;  %v10911_v38 = vld [vmem:[#allocation32_spill] sm:$0xff]  ;;  %v3332_v52 = vadd.f32 0.0001, %v10913_v44 }
 0x43b   : > { %v9760_v59 = vmul.f32 %v3569_v43, %v3541_v18  ;;  %v3246_v0 = vpop.f32.mrb[60].mxu1  ;;  %v6089_v8 = vpop.f32.mrb[111].mxu0  ;;  %v3331_v18 = vadd.f32 0.0001, %v9623_v56  ;;  %v10916_v56 = vld [vmem:[#allocation63_spill] sm:$0xff]  ;;  %v10925_v44 = vld [vmem:[#allocation69_spill] sm:$0xff] }
 0x43c   : > { %v3371_v15 = vmul.f32 %v3357_v32, %v3329_v24  ;;  %v3358_v16 = vadd.f32 0.0009, %v3344_v46  ;;  %v3289_v14 = vmul.f32 1.0016193, %v3246_v0  ;;  %v5970_v51 = vpop.f32.mrb[61].mxu1 }
 0x43d   : > { %v3249_v48 = vpop.f32.mrb[62].mxu1 }
 0x43e   : > { %6349 = vrcp.f32 %v3371_v15  ;;  %v3372_v35 = vmul.f32 %v3358_v16, %v3330_v29  ;;  %v3303_v62 = vsub.f32 %v3289_v14, %v9618_v40  ;;  %v3290_v49 = vmul.f32 1.0016193, %v3249_v48  ;;  %v5971_v25 = vpop.f32.mrb[63].mxu1  ;;  %v10917_v48 = vld [vmem:[#allocation20_spill] sm:$0xff] }
 0x43f   : > { %v10912_v40 = vsub.f32 %v10911_v38, %v9417_v33  ;;  %v10923_v38 = vld [vmem:[#allocation13_spill] sm:$0xff] }
 0x440   : > { %v6346_v4 = vpop.eup %6345  ;;  %6351 = vrcp.f32 %v3372_v35  ;;  %v3345_v31 = vadd.f32 %v3303_v62, %v10910_v55  ;;  %v3304_v42 = vsub.f32 %v3290_v49, %v9629_v11  ;;  %v9767_v21 = vpop.f32.mrb[112].mxu0  ;;  %v10914_v11 = vld [vmem:[#allocation22_spill] sm:$0xff]  ;;  %v10919_v49 = vld [vmem:[#allocation11_spill] sm:$0xff] }
 0x441   : > { %v6092_v9 = vpop.f32.mrb[113].mxu0  ;;  %v3598_v19 = vmul.f32 %v6346_v4, %v9627_v17  ;;  %v10920_v25 = vsub.f32 %v10919_v49, %v9452_v30  ;;  %v3334_v30 = vadd.f32 0.0001, %v10925_v44 }
 0x442   : > { %v3359_v43 = vadd.f32 0.0009, %v3345_v31  ;;  %v3346_v23 = vadd.f32 %v3304_v42, %v10912_v40  ;;  %v9774_v24 = vpop.f32.mrb[114].mxu0  ;;  %v6348_v32 = vpop.eup %6347 }
 0x443   : > { %v3254_v39 = vpop.f32.mrb[64].mxu1  ;;  %v6093_v47 = vpop.f32.mrb[115].mxu0  ;;  %v9778_v46 = vadd.f32 %v3598_v19, %v10914_v11  ;;  %v3599_v8 = vmul.f32 %v6348_v32, %v10916_v56  ;;  %v10928_v56 = vld [vmem:[#allocation48_spill] sm:$0xff] }
 0x444   : > { %v3373_v13 = vmul.f32 %v3359_v43, %v3331_v18  ;;  %v3360_v29 = vadd.f32 0.0009, %v3346_v23  ;;  %v3291_v17 = vmul.f32 1.0016193, %v3254_v39  ;;  %v5974_v0 = vpop.f32.mrb[65].mxu1  ;;  %v10922_v43 = vld [vmem:[#allocation17_spill] sm:$0xff] }
 0x445   : > { %10915 = vst [vmem:[#allocation92_spill] sm:$0xff] %v9778_v46  ;;  %v3257_v15 = vpop.f32.mrb[66].mxu1  ;;  %v9783_v35 = vadd.f32 %v3599_v8, %v10917_v48  ;;  %v10924_v40 = vsub.f32 %v10922_v43, %v10923_v38  ;;  %v10930_v48 = vld [vmem:[#allocation25_spill] sm:$0xff] }
 0x446   : > { %6353 = vrcp.f32 %v3373_v13  ;;  %v3374_v33 = vmul.f32 %v3360_v29, %v3332_v52  ;;  %v3305_v16 = vsub.f32 %v3291_v17, %v9640_v57  ;;  %v3292_v14 = vmul.f32 1.0016193, %v3257_v15  ;;  %v5975_v51 = vpop.f32.mrb[67].mxu1  ;;  %v10921_v57 = vld [vmem:[#allocation85_spill] sm:$0xff] }
 0x447   : > { %10918 = vst [vmem:[#allocation91_spill] sm:$0xff] %v9783_v35  ;;  %v3333_v19 = vadd.f32 0.0001, %v10921_v57 }
 0x448   : > { %v6350_v62 = vpop.eup %6349  ;;  %6355 = vrcp.f32 %v3374_v33  ;;  %v3347_v4 = vadd.f32 %v3305_v16, %v10920_v25  ;;  %v3306_v63 = vsub.f32 %v3292_v14, %v9649_v61  ;;  %v9789_v55 = vpop.f32.mrb[116].mxu0  ;;  %v10926_v61 = vld [vmem:[#allocation49_spill] sm:$0xff] }
 0x449   : > { %v6096_v31 = vpop.f32.mrb[117].mxu0  ;;  %v3600_v42 = vmul.f32 %v6350_v62, %v9654_v3  ;;  %v10931_v62 = vsub.f32 %v10930_v48, %v9493_v60 }
 0x44a   : > { %v6352_v9 = vpop.eup %6351  ;;  %v3361_v18 = vadd.f32 0.0009, %v3347_v4  ;;  %v3348_v23 = vadd.f32 %v3306_v63, %v10924_v40  ;;  %v9796_v32 = vpop.f32.mrb[118].mxu0  ;;  %v10936_v40 = vld [vmem:[#allocation84_spill] sm:$0xff] }
 0x44b   : > { %v3262_v52 = vpop.f32.mrb[68].mxu1  ;;  %v6097_v39 = vpop.f32.mrb[119].mxu0  ;;  %v9800_v47 = vadd.f32 %v3600_v42, %v10926_v61  ;;  %v3601_v11 = vmul.f32 %v6352_v9, %v9660_v37  ;;  %v10932_v42 = vld [vmem:[#allocation67_spill] sm:$0xff]  ;;  %v3336_v60 = vadd.f32 0.0001, %v10936_v40 }
 0x44c   : > { %v3375_v3 = vmul.f32 %v3361_v18, %v3333_v19  ;;  %v3362_v13 = vadd.f32 0.0009, %v3348_v23  ;;  %v3293_v29 = vmul.f32 1.0016193, %v3262_v52  ;;  %v5978_v17 = vpop.f32.mrb[69].mxu1  ;;  %v10934_v19 = vld [vmem:[#allocation19_spill] sm:$0xff] }
 0x44d   : > { %10927 = vst [vmem:[#allocation18_spill] sm:$0xff] %v9800_v47  ;;  %v3265_v0 = vpop.f32.mrb[70].mxu1  ;;  %v9804_v8 = vadd.f32 %v3601_v11, %v10928_v56  ;;  %v3335_v9 = vadd.f32 0.0001, %v10932_v42  ;;  %v10945_v42 = vld [vmem:[#allocation33_spill] sm:$0xff] }
 0x44e   : > { %6357 = vrcp.f32 %v3375_v3  ;;  %v3376_v15 = vmul.f32 %v3362_v13, %v3334_v30  ;;  %v3307_v33 = vsub.f32 %v3293_v29, %v9662_v10  ;;  %v3294_v16 = vmul.f32 1.0016193, %v3265_v0  ;;  %v5979_v14 = vpop.f32.mrb[71].mxu1  ;;  %v10933_v10 = vld [vmem:[#allocation23_spill] sm:$0xff]  ;;  %v10939_v13 = vld [vmem:[#allocation28_spill] sm:$0xff] }
 0x44f   : > { %10929 = vst [vmem:[#allocation90_spill] sm:$0xff] %v9804_v8  ;;  %v10935_v18 = vsub.f32 %v10933_v10, %v10934_v19  ;;  %v10947_v19 = vld [vmem:[#allocation87_spill] sm:$0xff] }
 0x450   : > { %v6354_v51 = vpop.eup %6353  ;;  %6359 = vrcp.f32 %v3376_v15  ;;  %v3349_v37 = vadd.f32 %v3307_v33, %v10931_v62  ;;  %v3308_v49 = vsub.f32 %v3294_v16, %v9669_v36  ;;  %v9811_v25 = vpop.f32.mrb[120].mxu0  ;;  %v10937_v36 = vld [vmem:[#allocation30_spill] sm:$0xff]  ;;  %v10941_v16 = vld [vmem:[#allocation31_spill] sm:$0xff] }
 0x451   : > { %v6100_v4 = vpop.f32.mrb[121].mxu0  ;;  %v3602_v63 = vmul.f32 %v6354_v51, %v9673_v41  ;;  %v10942_v14 = vsub.f32 %v10941_v16, %v9531_v7  ;;  %v3338_v7 = vadd.f32 0.0001, %v10947_v19 }
 0x452   : > { %v6356_v31 = vpop.eup %6355  ;;  %v3363_v57 = vadd.f32 0.0009, %v3349_v37  ;;  %v3350_v43 = vadd.f32 %v3308_v49, %v10935_v18  ;;  %v9818_v38 = vpop.f32.mrb[122].mxu0  ;;  %v10943_v4 = vld [vmem:[#allocation81_spill] sm:$0xff] }
 0x453   : > { %v3270_v23 = vpop.f32.mrb[72].mxu1  ;;  %v6101_v44 = vpop.f32.mrb[123].mxu0  ;;  %v9822_v30 = vadd.f32 %v3602_v63, %v10937_v36  ;;  %v3603_v52 = vmul.f32 %v6356_v31, %v9682_v28  ;;  %v3337_v63 = vadd.f32 0.0001, %v10943_v4  ;;  %v10956_v4 = vld [vmem:[#allocation59_spill] sm:$0xff] }
 0x454   : > { %v3377_v41 = vmul.f32 %v3363_v57, %v3335_v9  ;;  %v3364_v39 = vadd.f32 0.0009, %v3350_v43  ;;  %v3295_v61 = vmul.f32 1.0016193, %v3270_v23  ;;  %v5982_v11 = vpop.f32.mrb[73].mxu1 }
 0x455   : > { %10938 = vst [vmem:[#allocation94_spill] sm:$0xff] %v9822_v30  ;;  %v3273_v3 = vpop.f32.mrb[74].mxu1  ;;  %v9826_v29 = vadd.f32 %v3603_v52, %v10939_v13 }
 0x456   : > { %6361 = vrcp.f32 %v3377_v41  ;;  %v3378_v17 = vmul.f32 %v3364_v39, %v3336_v60  ;;  %v3309_v0 = vsub.f32 %v3295_v61, %v9684_v26  ;;  %v3296_v56 = vmul.f32 1.0016193, %v3273_v3  ;;  %v5983_v15 = vpop.f32.mrb[75].mxu1  ;;  %v10944_v26 = vld [vmem:[#allocation37_spill] sm:$0xff]  ;;  %v10950_v41 = vld [vmem:[#allocation36_spill] sm:$0xff] }
 0x457   : > { %10940 = vst [vmem:[#allocation97_spill] sm:$0xff] %v9826_v29  ;;  %v10946_v9 = vsub.f32 %v10944_v26, %v10945_v42 }
 0x458   : > { %v6358_v33 = vpop.eup %6357  ;;  %6363 = vrcp.f32 %v3378_v17  ;;  %v3351_v28 = vadd.f32 %v3309_v0, %v10942_v14  ;;  %v3310_v51 = vsub.f32 %v3296_v56, %v9695_v27  ;;  %v9833_v48 = vpop.f32.mrb[124].mxu0  ;;  %v10948_v27 = vld [vmem:[#allocation38_spill] sm:$0xff] }
 0x459   : > { %v6104_v62 = vpop.f32.mrb[125].mxu0  ;;  %v3604_v37 = vmul.f32 %v6358_v33, %v9693_v1  ;;  %v10952_v0 = vld [vmem:[#allocation78_spill] sm:$0xff]  ;;  %v3818_v33 = vmul.f32 1.0016193, %v9749_v20  ;;  %v3819_v20 = vmul.f32 1.0016193, %v9757_v12 }
 0x45a   : > { %v6360_v49 = vpop.eup %6359  ;;  %v3365_v31 = vadd.f32 0.0009, %v3351_v28  ;;  %v3352_v57 = vadd.f32 %v3310_v51, %v10946_v9  ;;  %v9840_v10 = vpop.f32.mrb[126].mxu0  ;;  %v10953_v56 = vsub.f32 %v10952_v0, %v9567_v2  ;;  %v10954_v62 = vld [vmem:[#allocation88_spill] sm:$0xff]  ;;  %v3340_v2 = vadd.f32 0.0001, %v9724_v53 }
 0x45b   : > { %v3278_v18 = vpop.f32.mrb[76].mxu1  ;;  %v6105_v43 = vpop.f32.mrb[127].mxu0  ;;  %v9844_v40 = vadd.f32 %v3604_v37, %v10948_v27  ;;  %v3605_v60 = vmul.f32 %v6360_v49, %v9704_v45  ;;  %v10955_v49 = vld [vmem:[#allocation77_spill] sm:$0xff]  ;;  %v10958_v9 = vld [vmem:[#allocation15_spill] sm:$0xff]  ;;  %v9871_v27 = vmul.f32 %v3818_v33, %v3818_v33  ;;  %v3821_v0 = vmul.f32 1.0016193, %v9774_v24 }
 0x45c   : > { %v3379_v1 = vmul.f32 %v3365_v31, %v3337_v63  ;;  %v3366_v23 = vadd.f32 0.0009, %v3352_v57  ;;  %v3297_v44 = vmul.f32 1.0016193, %v3278_v18  ;;  %v5986_v36 = vpop.f32.mrb[77].mxu1  ;;  %v10957_v63 = vsub.f32 %v10955_v49, %v10956_v4  ;;  %v10964_v49 = vld [vmem:[#allocation29_spill] sm:$0xff] }
 0x45d   : > { %10949 = vst [vmem:[#allocation95_spill] sm:$0xff] %v9844_v40  ;;  %v3281_v52 = vpop.f32.mrb[78].mxu1  ;;  %v9848_v39 = vadd.f32 %v3605_v60, %v10950_v41  ;;  %v9880_v41 = vmul.f32 %v3819_v20, %v3819_v20 }
 0x45e   : > { %6365 = vrcp.f32 %v3379_v1  ;;  %v3380_v61 = vmul.f32 %v3366_v23, %v3338_v7  ;;  %v3311_v11 = vsub.f32 %v3297_v44, %v9706_v6  ;;  %v3298_v3 = vmul.f32 1.0016193, %v3281_v52  ;;  %v5987_v13 = vpop.f32.mrb[79].mxu1  ;;  %v10960_v1 = vld [vmem:[#allocation21_spill] sm:$0xff] }
 0x45f   : > { %10951 = vst [vmem:[#allocation100_spill] sm:$0xff] %v9848_v39  ;;  %v3339_v6 = vadd.f32 0.0001, %v10954_v62 }
 0x460   : > { %v6362_v17 = vpop.eup %6361  ;;  %6367 = vrcp.f32 %v3380_v61  ;;  %v3353_v45 = vadd.f32 %v3311_v11, %v10953_v56  ;;  %v3312_v15 = vsub.f32 %v3298_v3, %v9713_v58  ;;  %v9856_v16 = vpop.f32.mrb[128].mxu0  ;;  %v3820_v11 = vmul.f32 1.0016193, %v9767_v21 }
 0x461   : > { %v6108_v14 = vpop.f32.mrb[129].mxu0  ;;  %v3606_v28 = vmul.f32 %v6362_v17, %v9717_v5 }
 0x462   : > { %v6364_v51 = vpop.eup %6363  ;;  %v3367_v37 = vadd.f32 0.0009, %v3353_v45  ;;  %v3354_v31 = vadd.f32 %v3312_v15, %v10957_v63  ;;  %v9863_v26 = vpop.f32.mrb[130].mxu0 }
 0x463   : > { %v3660_v58 = vpop.f32.mrb[80].mxu1  ;;  %v6109_v42 = vpop.f32.mrb[131].mxu0  ;;  %v9868_v57 = vadd.f32 %v3606_v28, %v10958_v9  ;;  %v3607_v5 = vmul.f32 %v6364_v51, %v9726_v54 }
 0x464   : > { %v3381_v19 = vmul.f32 %v3367_v37, %v3339_v6  ;;  %v3368_v7 = vadd.f32 0.0009, %v3354_v31  ;;  %v3715_v18 = vmul.f32 1.0016193, %v3660_v58  ;;  %v6046_v43 = vpop.f32.mrb[81].mxu1  ;;  %v9901_v6 = vmul.f32 %v3820_v11, %v3820_v11 }
 0x465   : > { %10959 = vst [vmem:[#allocation99_spill] sm:$0xff] %v9868_v57  ;;  %v3663_v60 = vpop.f32.mrb[82].mxu1  ;;  %v9874_v23 = vadd.f32 %v3607_v5, %v10960_v1 }
 0x466   : > { %6369 = vrcp.f32 %v3381_v19  ;;  %v3382_v53 = vmul.f32 %v3368_v7, %v3340_v2  ;;  %v9876_v44 = vmul.f32 %v3715_v18, %v3715_v18  ;;  %v9878_v12 = vmul.f32 %v3818_v33, %v3715_v18  ;;  %v6047_v36 = vpop.f32.mrb[83].mxu1 }
 0x467   : > { %10961 = vst [vmem:[#allocation46_spill] sm:$0xff] %v9874_v23  ;;  %v3716_v52 = vmul.f32 1.0016193, %v3663_v60  ;;  %v3822_v7 = vmul.f32 1.0016193, %v9789_v55 }
 0x468   : > { %10962 = vst [vmem:[#allocation96_spill] sm:$0xff] %v9878_v12  ;;  %v6366_v54 = vpop.eup %6365  ;;  %6371 = vrcp.f32 %v3382_v53  ;;  %v9884_v61 = vadd.f32 %v9871_v27, %v9876_v44  ;;  %v9887_v3 = vpop.f32.mrb[132].mxu0 }
 0x469   : > { %v9889_v13 = vmul.f32 %v3716_v52, %v3716_v52  ;;  %v9891_v17 = vmul.f32 %v3819_v20, %v3716_v52  ;;  %v6112_v56 = vpop.f32.mrb[133].mxu0  ;;  %v3608_v45 = vmul.f32 %v6366_v54, %v9735_v34  ;;  %v9907_v34 = vmul.f32 %v3821_v0, %v3821_v0  ;;  %v10967_v20 = vld [vmem:[#allocation27_spill] sm:$0xff] }
 0x46a   : > { %v6368_v15 = vpop.eup %6367  ;;  %v9895_v33 = vpop.f32.mrb[134].mxu0  ;;  %v3823_v52 = vmul.f32 1.0016193, %v9796_v32 }
 0x46b   : > { %10963 = vst [vmem:[#allocation102_spill] sm:$0xff] %v9891_v17  ;;  %v9899_v14 = vadd.f32 %v9880_v41, %v9889_v13  ;;  %v3668_v28 = vpop.f32.mrb[84].mxu1  ;;  %v6113_v21 = vpop.f32.mrb[135].mxu0  ;;  %v3609_v37 = vmul.f32 %v6368_v15, %v9742_v22  ;;  %v9905_v24 = vadd.f32 %v3608_v45, %v10964_v49  ;;  %v10970_v15 = vld [vmem:[#allocation35_spill] sm:$0xff] }
 0x46c   : > { %v3717_v51 = vmul.f32 1.0016193, %v3668_v28  ;;  %v6050_v62 = vpop.f32.mrb[85].mxu1  ;;  %v9941_v21 = vmul.f32 %v3822_v7, %v3822_v7 }
 0x46d   : > { %10965 = vst [vmem:[#allocation51_spill] sm:$0xff] %v9905_v24  ;;  %v3671_v4 = vpop.f32.mrb[86].mxu1  ;;  %v9914_v42 = vadd.f32 %v3609_v37, %v10967_v20  ;;  %v10972_v62 = vld [vmem:[#allocation61_spill] sm:$0xff]  ;;  %v9952_v20 = vmul.f32 %v3823_v52, %v3823_v52 }
 0x46e   : > { %v9909_v63 = vmul.f32 %v3717_v51, %v3717_v51  ;;  %v9911_v31 = vmul.f32 %v3820_v11, %v3717_v51  ;;  %v3718_v2 = vmul.f32 1.0016193, %v3671_v4  ;;  %v6051_v58 = vpop.f32.mrb[87].mxu1 }
 0x46f   : > { %10968 = vst [vmem:[#allocation53_spill] sm:$0xff] %v9914_v42 }
 0x470   : > { %10966 = vst [vmem:[#allocation50_spill] sm:$0xff] %v9911_v31  ;;  %v6370_v9 = vpop.eup %6369  ;;  %v9918_v5 = vadd.f32 %v9901_v6, %v9909_v63  ;;  %v9920_v22 = vmul.f32 %v3718_v2, %v3718_v2  ;;  %v9922_v19 = vmul.f32 %v3821_v0, %v3718_v2  ;;  %v4011_v18 = vpop.f32.mrb[136].mxu0 }
 0x471   : > { %v9925_v43 = vmul.f32 1.0016193, %v4011_v18  ;;  %v6172_v60 = vpop.f32.mrb[137].mxu0  ;;  %v3610_v1 = vmul.f32 %v6370_v9, %v9751_v50  ;;  %v3824_v18 = vmul.f32 1.0016193, %v9811_v25 }
 0x472   : > { %10969 = vst [vmem:[#allocation52_spill] sm:$0xff] %v9922_v19  ;;  %v6372_v53 = vpop.eup %6371  ;;  %v9930_v36 = vadd.f32 %v9907_v34, %v9920_v22  ;;  %v4014_v54 = vpop.f32.mrb[138].mxu0 }
 0x473   : > { %v3676_v11 = vpop.f32.mrb[88].mxu1  ;;  %v9935_v56 = vmul.f32 1.0016193, %v4014_v54  ;;  %v6173_v55 = vpop.f32.mrb[139].mxu0  ;;  %v3611_v45 = vmul.f32 %v6372_v53, %v9760_v59  ;;  %v9939_v28 = vadd.f32 %v3610_v1, %v10970_v15 }
 0x474   : > { %v3719_v50 = vmul.f32 1.0016193, %v3676_v11  ;;  %v6054_v51 = vpop.f32.mrb[89].mxu1  ;;  %v3825_v11 = vmul.f32 1.0016193, %v9818_v38 }
 0x475   : > { %10971 = vst [vmem:[#allocation55_spill] sm:$0xff] %v9939_v28  ;;  %v9946_v37 = vadd.f32 %v3611_v45, %v10972_v62  ;;  %v3679_v2 = vpop.f32.mrb[90].mxu1 }
 0x476   : > { %v9948_v49 = vmul.f32 %v3719_v50, %v3719_v50  ;;  %v9950_v4 = vmul.f32 %v3822_v7, %v3719_v50  ;;  %v3720_v58 = vmul.f32 1.0016193, %v3679_v2  ;;  %v6055_v59 = vpop.f32.mrb[91].mxu1  ;;  %v9974_v2 = vmul.f32 %v3824_v18, %v3824_v18 }
 0x477   : > { %10973 = vst [vmem:[#allocation54_spill] sm:$0xff] %v9946_v37  ;;  %v9982_v0 = vmul.f32 %v3825_v11, %v3825_v11 }
 0x478   : > { %10974 = vst [vmem:[#allocation57_spill] sm:$0xff] %v9950_v4  ;;  %v9956_v9 = vadd.f32 %v9941_v21, %v9948_v49  ;;  %v4019_v60 = vpop.f32.mrb[140].mxu0  ;;  %v9959_v1 = vmul.f32 %v3720_v58, %v3720_v58  ;;  %v9961_v53 = vmul.f32 %v3823_v52, %v3720_v58 }
 0x479   : > { %v9963_v54 = vmul.f32 1.0016193, %v4019_v60  ;;  %v6176_v7 = vpop.f32.mrb[141].mxu0 }
 0x47a   : > { %10975 = vst [vmem:[#allocation56_spill] sm:$0xff] %v9961_v53  ;;  %v4022_v55 = vpop.f32.mrb[142].mxu0  ;;  %v9968_v45 = vadd.f32 %v9952_v20, %v9959_v1 }
 0x47b   : > { %v3684_v15 = vpop.f32.mrb[92].mxu1  ;;  %v9972_v25 = vmul.f32 1.0016193, %v4022_v55  ;;  %v6177_v51 = vpop.f32.mrb[143].mxu0 }
 0x47c   : > { %v3721_v62 = vmul.f32 1.0016193, %v3684_v15  ;;  %v6058_v52 = vpop.f32.mrb[93].mxu1 }
 0x47d   : > { %v3687_v58 = vpop.f32.mrb[94].mxu1  ;;  %v3826_v52 = vmul.f32 1.0016193, %v9833_v48 }
 0x47e   : > { %v9978_v59 = vmul.f32 %v3721_v62, %v3721_v62  ;;  %v9980_v60 = vmul.f32 %v3824_v18, %v3721_v62  ;;  %v3722_v7 = vmul.f32 1.0016193, %v3687_v58  ;;  %v6059_v32 = vpop.f32.mrb[95].mxu1  ;;  %v3827_v58 = vmul.f32 1.0016193, %v9840_v10 }
 0x47f   : > { %v10004_v48 = vmul.f32 %v3826_v52, %v3826_v52 }
 0x480   : > { %10976 = vst [vmem:[#allocation60_spill] sm:$0xff] %v9980_v60  ;;  %v9986_v55 = vadd.f32 %v9974_v2, %v9978_v59  ;;  %v9988_v15 = vmul.f32 %v3722_v7, %v3722_v7  ;;  %v9990_v51 = vmul.f32 %v3825_v11, %v3722_v7  ;;  %v4027_v50 = vpop.f32.mrb[144].mxu0  ;;  %v10012_v40 = vmul.f32 %v3827_v58, %v3827_v58 }
 0x481   : > { %v9993_v38 = vmul.f32 1.0016193, %v4027_v50  ;;  %v6180_v37 = vpop.f32.mrb[145].mxu0 }
 0x482   : > { %10977 = vst [vmem:[#allocation58_spill] sm:$0xff] %v9990_v51  ;;  %v9997_v18 = vadd.f32 %v9982_v0, %v9988_v15  ;;  %v4030_v32 = vpop.f32.mrb[146].mxu0 }
 0x483   : > { %v3692_v62 = vpop.f32.mrb[96].mxu1  ;;  %v10002_v42 = vmul.f32 1.0016193, %v4030_v32  ;;  %v6181_v11 = vpop.f32.mrb[147].mxu0 }
 0x484   : > { %v3723_v7 = vmul.f32 1.0016193, %v3692_v62  ;;  %v6062_v50 = vpop.f32.mrb[97].mxu1  ;;  %v3828_v62 = vmul.f32 1.0016193, %v9856_v16 }
 0x485   : > { %v3695_v57 = vpop.f32.mrb[98].mxu1 }
 0x486   : > { %v10008_v24 = vmul.f32 %v3723_v7, %v3723_v7  ;;  %v10010_v23 = vmul.f32 %v3826_v52, %v3723_v7  ;;  %v3724_v39 = vmul.f32 1.0016193, %v3695_v57  ;;  %v6063_v10 = vpop.f32.mrb[99].mxu1  ;;  %v3829_v7 = vmul.f32 1.0016193, %v9863_v26 }
 0x488   : > { %10978 = vst [vmem:[#allocation64_spill] sm:$0xff] %v10010_v23  ;;  %v10016_v32 = vadd.f32 %v10004_v48, %v10008_v24  ;;  %v4035_v11 = vpop.f32.mrb[148].mxu0  ;;  %v10019_v50 = vmul.f32 %v3724_v39, %v3724_v39  ;;  %v10021_v28 = vmul.f32 %v3827_v58, %v3724_v39  ;;  %v10034_v39 = vmul.f32 %v3828_v62, %v3828_v62 }
 0x489   : > { %v10023_v37 = vmul.f32 1.0016193, %v4035_v11  ;;  %v6184_v52 = vpop.f32.mrb[149].mxu0  ;;  %v10042_v8 = vmul.f32 %v3829_v7, %v3829_v7 }
 0x48a   : > { %10979 = vst [vmem:[#allocation62_spill] sm:$0xff] %v10021_v28  ;;  %v4038_v57 = vpop.f32.mrb[150].mxu0  ;;  %v10028_v10 = vadd.f32 %v10012_v40, %v10019_v50 }
 0x48b   : > { %v3700_v23 = vpop.f32.mrb[100].mxu1  ;;  %v10032_v16 = vmul.f32 1.0016193, %v4038_v57  ;;  %v6185_v30 = vpop.f32.mrb[151].mxu0 }
 0x48c   : > { %v3725_v51 = vmul.f32 1.0016193, %v3700_v23  ;;  %v6066_v58 = vpop.f32.mrb[101].mxu1 }
 0x48d   : > { %v3703_v11 = vpop.f32.mrb[102].mxu1  ;;  %v3830_v58 = vmul.f32 1.0016193, %v9887_v3 }
 0x48e   : > { %v10038_v52 = vmul.f32 %v3725_v51, %v3725_v51  ;;  %v10040_v28 = vmul.f32 %v3828_v62, %v3725_v51  ;;  %v3726_v60 = vmul.f32 1.0016193, %v3703_v11  ;;  %v6067_v47 = vpop.f32.mrb[103].mxu1 }
 0x48f   : > { %v3831_v47 = vmul.f32 1.0016193, %v9895_v33 }
 0x490   : > { %10980 = vst [vmem:[#allocation68_spill] sm:$0xff] %v10040_v28  ;;  %v10046_v57 = vadd.f32 %v10034_v39, %v10038_v52  ;;  %v10048_v30 = vmul.f32 %v3726_v60, %v3726_v60  ;;  %v10050_v23 = vmul.f32 %v3829_v7, %v3726_v60  ;;  %v4043_v29 = vpop.f32.mrb[152].mxu0  ;;  %v10064_v7 = vmul.f32 %v3830_v58, %v3830_v58 }
 0x491   : > { %v10053_v26 = vmul.f32 1.0016193, %v4043_v29  ;;  %v6188_v53 = vpop.f32.mrb[153].mxu0  ;;  %v10072_v33 = vmul.f32 %v3831_v47, %v3831_v47 }
 0x492   : > { %10981 = vst [vmem:[#allocation66_spill] sm:$0xff] %v10050_v23  ;;  %v10057_v51 = vadd.f32 %v10042_v8, %v10048_v30  ;;  %v4046_v62 = vpop.f32.mrb[154].mxu0 }
 0x493   : > { %v3708_v11 = vpop.f32.mrb[104].mxu1  ;;  %v10062_v4 = vmul.f32 1.0016193, %v4046_v62  ;;  %v6189_v60 = vpop.f32.mrb[155].mxu0 }
 0x494   : > { %10982 = vst [vmem:[#allocation70_spill] sm:$0xff] %v10057_v51  ;;  %v3727_v3 = vmul.f32 1.0016193, %v3708_v11  ;;  %v6070_v29 = vpop.f32.mrb[105].mxu1 }
 0x495   : > { %v3711_v46 = vpop.f32.mrb[106].mxu1 }
 0x496   : > { %v10068_v23 = vmul.f32 %v3727_v3, %v3727_v3  ;;  %v10070_v35 = vmul.f32 %v3830_v58, %v3727_v3  ;;  %v3728_v19 = vmul.f32 1.0016193, %v3711_v46  ;;  %v6071_v31 = vpop.f32.mrb[107].mxu1 }
 0x498   : > { %10983 = vst [vmem:[#allocation71_spill] sm:$0xff] %v10068_v23  ;;  %10984 = vst [vmem:[#allocation72_spill] sm:$0xff] %v10070_v35  ;;  %v10076_v62 = vadd.f32 %v10064_v7, %v10068_v23  ;;  %v4051_v60 = vpop.f32.mrb[156].mxu0  ;;  %v10078_v28 = vmul.f32 %v3728_v19, %v3728_v19  ;;  %v10080_v11 = vmul.f32 %v3831_v47, %v3728_v19 }
 0x499   : > { %v10082_v29 = vmul.f32 1.0016193, %v4051_v60  ;;  %v6192_v53 = vpop.f32.mrb[157].mxu0  ;;  %v10990_v19 = vsub.f32 %v9935_v56, %v9880_v41 }
 0x49a   : > { %10985 = vst [vmem:[#allocation73_spill] sm:$0xff] %v10076_v62  ;;  %10986 = vst [vmem:[#allocation39_spill] sm:$0xff] %v10078_v28  ;;  %v4054_v17 = vpop.f32.mrb[158].mxu0  ;;  %v10086_v58 = vadd.f32 %v10072_v33, %v10078_v28 }
 0x49b   : > { %10987 = vst [vmem:[#allocation103_spill] sm:$0xff] %v10080_v11  ;;  %v3894_v3 = vpop.f32.mrb[108].mxu1  ;;  %v10090_v31 = vmul.f32 1.0016193, %v4054_v17  ;;  %v6193_v35 = vpop.f32.mrb[159].mxu0  ;;  %v10989_v11 = vsub.f32 %v9925_v43, %v9871_v27 }
 0x49c   : > { %10988 = vst [vmem:[#allocation74_spill] sm:$0xff] %v10086_v58  ;;  %v3949_v12 = vmul.f32 1.0016193, %v3894_v3  ;;  %v6130_v62 = vpop.f32.mrb[109].mxu1 }
 0x49d   : > { %v3897_v23 = vpop.f32.mrb[110].mxu1  ;;  %v4108_v62 = vadd.f32 0.0001, %v9884_v61 }
 0x49e   : > { %v3963_v47 = vsub.f32 %v3949_v12, %v9876_v44  ;;  %v3950_v53 = vmul.f32 1.0016193, %v3897_v23  ;;  %v6131_v60 = vpop.f32.mrb[111].mxu1  ;;  %v4109_v12 = vadd.f32 0.0001, %v9899_v14 }
 0x4a0   : > { %v4122_v58 = vadd.f32 %v10989_v11, %v3963_v47  ;;  %v3964_v28 = vsub.f32 %v3950_v53, %v9889_v13  ;;  %v4059_v46 = vpop.f32.mrb[160].mxu0  ;;  %v10991_v53 = vsub.f32 %v9963_v54, %v9901_v6 }
 0x4a1   : > { %v10099_v17 = vmul.f32 1.0016193, %v4059_v46  ;;  %v6196_v35 = vpop.f32.mrb[161].mxu0 }
 0x4a2   : > { %v4136_v3 = vadd.f32 0.0009, %v4122_v58  ;;  %v4123_v51 = vadd.f32 %v10990_v19, %v3964_v28  ;;  %v4062_v44 = vpop.f32.mrb[162].mxu0 }
 0x4a3   : > { %v3902_v23 = vpop.f32.mrb[112].mxu1  ;;  %v4092_v27 = vsub.f32 %v10099_v17, %v10064_v7  ;;  %v10108_v43 = vmul.f32 1.0016193, %v4062_v44  ;;  %v6197_v13 = vpop.f32.mrb[163].mxu0 }
 0x4a4   : > { %v10110_v11 = vmul.f32 %v4136_v3, %v4108_v62  ;;  %v4137_v46 = vadd.f32 0.0009, %v4123_v51  ;;  %v3951_v47 = vmul.f32 1.0016193, %v3902_v23  ;;  %v6134_v61 = vpop.f32.mrb[113].mxu1  ;;  %v10992_v3 = vsub.f32 %v9972_v25, %v9907_v34 }
 0x4a5   : > { %v3905_v58 = vpop.f32.mrb[114].mxu1  ;;  %v4093_v41 = vsub.f32 %v10108_v43, %v10072_v33  ;;  %v4110_v51 = vadd.f32 0.0001, %v9918_v5 }
 0x4a6   : > { %v10114_v56 = vmul.f32 %v4137_v46, %v4109_v12  ;;  %v3965_v14 = vsub.f32 %v3951_v47, %v9909_v63  ;;  %v3952_v28 = vmul.f32 1.0016193, %v3905_v58  ;;  %v6135_v19 = vpop.f32.mrb[115].mxu1  ;;  %v4111_v12 = vadd.f32 0.0001, %v9930_v36 }
 0x4a7   : > { %v10993_v58 = vsub.f32 %v9993_v38, %v9941_v21  ;;  %v4112_v36 = vadd.f32 0.0001, %v9956_v9  ;;  %6373 = vrcp.f32 %v10110_v11 }
 0x4a8   : > { %v4124_v60 = vadd.f32 %v10991_v53, %v3965_v14  ;;  %v3966_v35 = vsub.f32 %v3952_v28, %v9920_v22  ;;  %v10994_v28 = vsub.f32 %v10002_v42, %v9952_v20  ;;  %v4113_v53 = vadd.f32 0.0001, %v9968_v45 }
 0x4a9   : > { %v4114_v45 = vadd.f32 0.0001, %v9986_v55  ;;  %6375 = vrcp.f32 %v10114_v56 }
 0x4aa   : > { %v4138_v62 = vadd.f32 0.0009, %v4124_v60  ;;  %v4125_v44 = vadd.f32 %v10992_v3, %v3966_v35 }
 0x4ab   : > { %v3910_v23 = vpop.f32.mrb[116].mxu1 }
 0x4ac   : > { %v10126_v13 = vmul.f32 %v4138_v62, %v4110_v51  ;;  %v4139_v63 = vadd.f32 0.0009, %v4125_v44  ;;  %v3953_v46 = vmul.f32 1.0016193, %v3910_v23  ;;  %v6138_v47 = vpop.f32.mrb[117].mxu1  ;;  %v10995_v44 = vsub.f32 %v10023_v37, %v9974_v2 }
 0x4ad   : > { %v3913_v61 = vpop.f32.mrb[118].mxu1  ;;  %v10996_v23 = vsub.f32 %v10032_v16, %v9982_v0 }
 0x4ae   : > { %v10128_v6 = vmul.f32 %v4139_v63, %v4111_v12  ;;  %v3967_v22 = vsub.f32 %v3953_v46, %v9948_v49  ;;  %v3954_v54 = vmul.f32 1.0016193, %v3913_v61  ;;  %v6139_v5 = vpop.f32.mrb[119].mxu1  ;;  %v4115_v46 = vadd.f32 0.0001, %v9997_v18 }
 0x4af   : > { %v4116_v18 = vadd.f32 0.0001, %v10016_v32  ;;  %6377 = vrcp.f32 %v10126_v13 }
 0x4b0   : > { %v4126_v34 = vadd.f32 %v10993_v58, %v3967_v22  ;;  %v3968_v25 = vsub.f32 %v3954_v54, %v9959_v1  ;;  %v10997_v58 = vsub.f32 %v10053_v26, %v10004_v48  ;;  %6379 = vrcp.f32 %v10128_v6 }
 0x4b2   : > { %v4140_v14 = vadd.f32 0.0009, %v4126_v34  ;;  %v4127_v19 = vadd.f32 %v10994_v28, %v3968_v25  ;;  %v10998_v25 = vsub.f32 %v10062_v4, %v10012_v40 }
 0x4b3   : > { %v3918_v60 = vpop.f32.mrb[120].mxu1 }
 0x4b4   : > { %v10140_v35 = vmul.f32 %v4140_v14, %v4112_v36  ;;  %v4141_v49 = vadd.f32 0.0009, %v4127_v19  ;;  %v3955_v51 = vmul.f32 1.0016193, %v3918_v60  ;;  %v6142_v62 = vpop.f32.mrb[121].mxu1 }
 0x4b5   : > { %v3921_v3 = vpop.f32.mrb[122].mxu1  ;;  %v4117_v14 = vadd.f32 0.0001, %v10028_v10  ;;  %v4118_v10 = vadd.f32 0.0001, %v10046_v57 }
 0x4b6   : > { %v10142_v21 = vmul.f32 %v4141_v49, %v4113_v53  ;;  %v3969_v1 = vsub.f32 %v3955_v51, %v9978_v59  ;;  %v3956_v38 = vmul.f32 1.0016193, %v3921_v3  ;;  %v6143_v9 = vpop.f32.mrb[123].mxu1  ;;  %v10999_v51 = vsub.f32 %v10082_v29, %v10034_v39  ;;  %v11002_v29 = vld [vmem:[#allocation71_spill] sm:$0xff] }
 0x4b7   : > { %v11000_v3 = vsub.f32 %v10090_v31, %v10042_v8  ;;  %v11003_v31 = vld [vmem:[#allocation39_spill] sm:$0xff]  ;;  %6381 = vrcp.f32 %v10140_v35 }
 0x4b8   : > { %v4128_v42 = vadd.f32 %v10995_v44, %v3969_v1  ;;  %v3970_v20 = vsub.f32 %v3956_v38, %v9988_v15  ;;  %v11001_v38 = vld [vmem:[#allocation70_spill] sm:$0xff]  ;;  %6383 = vrcp.f32 %v10142_v21 }
 0x4b9   : > { %v4119_v9 = vadd.f32 0.0001, %v11001_v38 }
 0x4ba   : > { %v4142_v12 = vadd.f32 0.0009, %v4128_v42  ;;  %v4129_v63 = vadd.f32 %v10996_v23, %v3970_v20 }
 0x4bb   : > { %v3926_v47 = vpop.f32.mrb[124].mxu1 }
 0x4bc   : > { %v10154_v61 = vmul.f32 %v4142_v12, %v4114_v45  ;;  %v4143_v59 = vadd.f32 0.0009, %v4129_v63  ;;  %v3957_v22 = vmul.f32 1.0016193, %v3926_v47  ;;  %v6146_v54 = vpop.f32.mrb[125].mxu1 }
 0x4bd   : > { %v3929_v5 = vpop.f32.mrb[126].mxu1  ;;  %v11005_v54 = vld [vmem:[#allocation74_spill] sm:$0xff] }
 0x4be   : > { %v10156_v2 = vmul.f32 %v4143_v59, %v4115_v46  ;;  %v3971_v15 = vsub.f32 %v3957_v22, %v10008_v24  ;;  %v3958_v37 = vmul.f32 1.0016193, %v3929_v5  ;;  %v6147_v55 = vpop.f32.mrb[127].mxu1  ;;  %v11004_v46 = vld [vmem:[#allocation73_spill] sm:$0xff]  ;;  %v4121_v5 = vadd.f32 0.0001, %v11005_v54 }
 0x4bf   : > { %v4120_v47 = vadd.f32 0.0001, %v11004_v46  ;;  %6385 = vrcp.f32 %v10154_v61 }
 0x4c0   : > { %v4130_v0 = vadd.f32 %v10997_v58, %v3971_v15  ;;  %v3972_v16 = vsub.f32 %v3958_v37, %v10019_v50  ;;  %6387 = vrcp.f32 %v10156_v2 }
 0x4c2   : > { %v4144_v34 = vadd.f32 0.0009, %v4130_v0  ;;  %v4131_v36 = vadd.f32 %v10998_v25, %v3972_v16 }
 0x4c3   : > { %v3934_v28 = vpop.f32.mrb[128].mxu1 }
 0x4c4   : > { %v10168_v19 = vmul.f32 %v4144_v34, %v4116_v18  ;;  %v4145_v24 = vadd.f32 0.0009, %v4131_v36  ;;  %v3959_v53 = vmul.f32 1.0016193, %v3934_v28  ;;  %v6150_v60 = vpop.f32.mrb[129].mxu1  ;;  %v11007_v18 = vld [vmem:[#allocation102_spill] sm:$0xff] }
 0x4c5   : > { %v3937_v49 = vpop.f32.mrb[130].mxu1  ;;  %v4296_v34 = vmul.f32 2.0, %v11007_v18 }
 0x4c6   : > { %v10170_v48 = vmul.f32 %v4145_v24, %v4117_v14  ;;  %v3973_v50 = vsub.f32 %v3959_v53, %v10038_v52  ;;  %v3960_v26 = vmul.f32 1.0016193, %v3937_v49  ;;  %v6151_v32 = vpop.f32.mrb[131].mxu1  ;;  %6389 = vrcp.f32 %v10168_v19 }
 0x4c7   : > { %v4310_v24 = vadd.f32 0.0001, %v4296_v34  ;;  %v11008_v32 = vld [vmem:[#allocation50_spill] sm:$0xff] }
 0x4c8   : > { %v4132_v40 = vadd.f32 %v10999_v51, %v3973_v50  ;;  %v3974_v4 = vsub.f32 %v3960_v26, %v10048_v30  ;;  %v6374_v26 = vpop.eup %6373  ;;  %v4297_v51 = vmul.f32 2.0, %v11008_v32  ;;  %v11014_v34 = vld [vmem:[#allocation18_spill] sm:$0xff]  ;;  %6391 = vrcp.f32 %v10170_v48 }
 0x4c9   : > { %v6376_v38 = vpop.eup %6375 }
 0x4ca   : > { %v4146_v62 = vadd.f32 0.0009, %v4132_v40  ;;  %v4133_v1 = vadd.f32 %v11000_v3, %v3974_v4 }
 0x4cb   : > { %v3942_v44 = vpop.f32.mrb[132].mxu1 }
 0x4cc   : > { %v10182_v42 = vmul.f32 %v4146_v62, %v4118_v10  ;;  %v4147_v52 = vadd.f32 0.0009, %v4133_v1  ;;  %v3961_v20 = vmul.f32 1.0016193, %v3942_v44  ;;  %v6154_v45 = vpop.f32.mrb[133].mxu1  ;;  %v11010_v44 = vld [vmem:[#allocation92_spill] sm:$0xff] }
 0x4cd   : > { %v3945_v12 = vpop.f32.mrb[134].mxu1 }
 0x4ce   : > { %v10184_v39 = vmul.f32 %v4147_v52, %v4119_v9  ;;  %v3975_v30 = vsub.f32 %v3961_v20, %v11002_v29  ;;  %v3962_v23 = vmul.f32 1.0016193, %v3945_v12  ;;  %v6155_v57 = vpop.f32.mrb[135].mxu1  ;;  %v11009_v9 = vld [vmem:[#allocation52_spill] sm:$0xff]  ;;  %v4311_v29 = vadd.f32 0.0001, %v4297_v51 }
 0x4cf   : > { %v4298_v13 = vmul.f32 2.0, %v11009_v9  ;;  %6393 = vrcp.f32 %v10182_v42 }
 0x4d0   : > { %v4134_v8 = vadd.f32 %v4092_v27, %v3975_v30  ;;  %v3976_v63 = vsub.f32 %v3962_v23, %v11003_v31  ;;  %v11006_v27 = vld [vmem:[#allocation96_spill] sm:$0xff]  ;;  %v11011_v30 = vld [vmem:[#allocation91_spill] sm:$0xff]  ;;  %6395 = vrcp.f32 %v10184_v39 }
 0x4d1   : > { %v4295_v0 = vmul.f32 2.0, %v11006_v27 }
 0x4d2   : > { %v4148_v59 = vadd.f32 0.0009, %v4134_v8  ;;  %v4135_v22 = vadd.f32 %v4093_v41, %v3976_v63  ;;  %v4312_v8 = vadd.f32 0.0001, %v4298_v13 }
 0x4d3   : > { %v4212_v15 = vpop.f32.mrb[136].mxu1  ;;  %v4309_v36 = vadd.f32 0.0001, %v4295_v0 }
 0x4d4   : > { %v10197_v37 = vmul.f32 %v4148_v59, %v4120_v47  ;;  %v4149_v55 = vadd.f32 0.0009, %v4135_v22  ;;  %v4267_v58 = vmul.f32 1.0016193, %v4212_v15  ;;  %v6214_v7 = vpop.f32.mrb[137].mxu1  ;;  %v11012_v15 = vld [vmem:[#allocation57_spill] sm:$0xff] }
 0x4d5   : > { %v4215_v17 = vpop.f32.mrb[138].mxu1 }
 0x4d6   : > { %v10201_v16 = vmul.f32 %v4149_v55, %v4121_v5  ;;  %v4281_v33 = vsub.f32 %v4267_v58, %v11006_v27  ;;  %v4268_v43 = vmul.f32 1.0016193, %v4215_v17  ;;  %v6215_v41 = vpop.f32.mrb[139].mxu1  ;;  %v6378_v5 = vpop.eup %6377  ;;  %v4299_v55 = vmul.f32 2.0, %v11012_v15 }
 0x4d7   : > { %v11013_v41 = vld [vmem:[#allocation56_spill] sm:$0xff]  ;;  %6397 = vrcp.f32 %v10197_v37 }
 0x4d8   : > { %v4323_v11 = vmul.f32 2.0, %v4281_v33  ;;  %v4282_v25 = vsub.f32 %v4268_v43, %v11007_v18  ;;  %v6380_v43 = vpop.eup %6379  ;;  %v4300_v18 = vmul.f32 2.0, %v11013_v41  ;;  %6399 = vrcp.f32 %v10201_v16 }
 0x4da   : > { %v4337_v14 = vadd.f32 0.0009, %v4323_v11  ;;  %v4324_v28 = vmul.f32 2.0, %v4282_v25 }
 0x4db   : > { %v4220_v56 = vpop.f32.mrb[140].mxu1 }
 0x4dc   : > { %v4351_v53 = vmul.f32 %v4337_v14, %v4309_v36  ;;  %v4338_v60 = vadd.f32 0.0009, %v4324_v28  ;;  %v4269_v49 = vmul.f32 1.0016193, %v4220_v56  ;;  %v6218_v50 = vpop.f32.mrb[141].mxu1 }
 0x4dd   : > { %v4223_v40 = vpop.f32.mrb[142].mxu1  ;;  %v4313_v28 = vadd.f32 0.0001, %v4299_v55 }
 0x4de   : > { %v4379_v4 = vmul.f32 %v6374_v26, %v4351_v53  ;;  %v4352_v10 = vmul.f32 %v4338_v60, %v4310_v24  ;;  %v4283_v62 = vsub.f32 %v4269_v49, %v11008_v32  ;;  %v4270_v3 = vmul.f32 1.0016193, %v4223_v40  ;;  %v6219_v1 = vpop.f32.mrb[143].mxu1  ;;  %v11015_v24 = vld [vmem:[#allocation90_spill] sm:$0xff] }
 0x4df   : > { %v4314_v49 = vadd.f32 0.0001, %v4300_v18 }
 0x4e0   : > { %v4393_v52 = vadd.f32 %v4379_v4, %v11010_v44  ;;  %v4380_v20 = vmul.f32 %v6376_v38, %v4352_v10  ;;  %v4325_v45 = vmul.f32 2.0, %v4283_v62  ;;  %v4284_v12 = vsub.f32 %v4270_v3, %v11009_v9  ;;  %v6382_v62 = vpop.eup %6381  ;;  %v11016_v3 = vld [vmem:[#allocation60_spill] sm:$0xff] }
 0x4e1   : > { %v4301_v1 = vmul.f32 2.0, %v11016_v3 }
 0x4e2   : > { %v4394_v23 = vadd.f32 %v4380_v20, %v11011_v30  ;;  %v4339_v6 = vadd.f32 0.0009, %v4325_v45  ;;  %v4326_v57 = vmul.f32 2.0, %v4284_v12  ;;  %v4407_v31 = vsel %vm407_vm1, %v4393_v52, 0.0  ;;  %v6384_v45 = vpop.eup %6383  ;;  %v11017_v12 = vld [vmem:[#allocation58_spill] sm:$0xff] }
 0x4e3   : > { %v4228_v63 = vpop.f32.mrb[144].mxu1  ;;  %v11018_v30 = vld [vmem:[#allocation94_spill] sm:$0xff] }
 0x4e4   : > { %v4408_v46 = vsel %vm407_vm1, %v4394_v23, 0.0  ;;  %v4353_v47 = vmul.f32 %v4339_v6, %v4311_v29  ;;  %v4340_v59 = vadd.f32 0.0009, %v4326_v57  ;;  %v4271_v22 = vmul.f32 1.0016193, %v4228_v63  ;;  %v6222_v54 = vpop.f32.mrb[145].mxu1 }
 0x4e5   : > { %v4409_v58 = vadd.f32 %v4408_v46, %v4407_v31  ;;  %v4231_v7 = vpop.f32.mrb[146].mxu1  ;;  %v4302_v29 = vmul.f32 2.0, %v11017_v12  ;;  %v4315_v31 = vadd.f32 0.0001, %v4301_v1  ;;  %v11019_v63 = vld [vmem:[#allocation97_spill] sm:$0xff] }
 0x4e6   : > { %v4381_v17 = vmul.f32 %v6378_v5, %v4353_v47  ;;  %v4354_v27 = vmul.f32 %v4340_v59, %v4312_v8  ;;  %v4285_v35 = vsub.f32 %v4271_v22, %v11012_v15  ;;  %v4272_v0 = vmul.f32 1.0016193, %v4231_v7  ;;  %v6223_v33 = vpop.f32.mrb[147].mxu1 }
 0x4e7   : > { %v4316_v22 = vadd.f32 0.0001, %v4302_v29 }
 0x4e8   : > { %v4395_v11 = vadd.f32 %v4381_v17, %v11014_v34  ;;  %v4382_v25 = vmul.f32 %v6380_v43, %v4354_v27  ;;  %v4327_v36 = vmul.f32 2.0, %v4285_v35  ;;  %v4286_v14 = vsub.f32 %v4272_v0, %v11013_v41  ;;  %v6386_v27 = vpop.eup %6385  ;;  %v11020_v35 = vld [vmem:[#allocation64_spill] sm:$0xff] }
 0x4e9   : > { %v4303_v0 = vmul.f32 2.0, %v11020_v35 }
 0x4ea   : > { %v4410_v21 = vsel %vm407_vm1, %v4395_v11, 0.0  ;;  %v4396_v56 = vadd.f32 %v4382_v25, %v11015_v24  ;;  %v4341_v53 = vadd.f32 0.0009, %v4327_v36  ;;  %v4328_v60 = vmul.f32 2.0, %v4286_v14  ;;  %v6388_v25 = vpop.eup %6387  ;;  %v11021_v36 = vld [vmem:[#allocation62_spill] sm:$0xff] }
 0x4eb   : > { %v4411_v50 = vadd.f32 %v4410_v21, %v4409_v58  ;;  %v4236_v26 = vpop.f32.mrb[148].mxu1  ;;  %v4304_v14 = vmul.f32 2.0, %v11021_v36 }
 0x4ec   : > { %v4412_v32 = vsel %vm407_vm1, %v4396_v56, 0.0  ;;  %v4355_v51 = vmul.f32 %v4341_v53, %v4313_v28  ;;  %v4342_v40 = vadd.f32 0.0009, %v4328_v60  ;;  %v4273_v4 = vmul.f32 1.0016193, %v4236_v26  ;;  %v6226_v10 = vpop.f32.mrb[149].mxu1 }
 0x4ed   : > { %v4413_v38 = vadd.f32 %v4412_v32, %v4411_v50  ;;  %v4239_v9 = vpop.f32.mrb[150].mxu1  ;;  %v11022_v28 = vld [vmem:[#allocation95_spill] sm:$0xff]  ;;  %v4317_v60 = vadd.f32 0.0001, %v4303_v0 }
 0x4ee   : > { %v4383_v13 = vmul.f32 %v6382_v62, %v4355_v51  ;;  %v4356_v44 = vmul.f32 %v4342_v40, %v4314_v49  ;;  %v4287_v52 = vsub.f32 %v4273_v4, %v11016_v3  ;;  %v4274_v61 = vmul.f32 1.0016193, %v4239_v9  ;;  %v6227_v20 = vpop.f32.mrb[151].mxu1  ;;  %v11023_v49 = vld [vmem:[#allocation100_spill] sm:$0xff]  ;;  %v6390_v9 = vpop.eup %6389 }
 0x4ef   : > { %v4318_v51 = vadd.f32 0.0001, %v4304_v14  ;;  %v11029_v14 = vld [vmem:[#allocation103_spill] sm:$0xff] }
 0x4f0   : > { %v4397_v23 = vadd.f32 %v4383_v13, %v11018_v30  ;;  %v4384_v6 = vmul.f32 %v6384_v45, %v4356_v44  ;;  %v4329_v57 = vmul.f32 2.0, %v4287_v52  ;;  %v4288_v8 = vsub.f32 %v4274_v61, %v11017_v12  ;;  %v11024_v13 = vld [vmem:[#allocation68_spill] sm:$0xff]  ;;  %v6392_v30 = vpop.eup %6391 }
 0x4f1   : > { %v4305_v44 = vmul.f32 2.0, %v11024_v13  ;;  %v6394_v0 = vpop.eup %6393 }
 0x4f2   : > { %v4414_v2 = vsel %vm407_vm1, %v4397_v23, 0.0  ;;  %v4398_v46 = vadd.f32 %v4384_v6, %v11019_v63  ;;  %v4343_v47 = vadd.f32 0.0009, %v4329_v57  ;;  %v4330_v59 = vmul.f32 2.0, %v4288_v8  ;;  %v11025_v23 = vld [vmem:[#allocation66_spill] sm:$0xff]  ;;  %v11026_v57 = vld [vmem:[#allocation99_spill] sm:$0xff] }
 0x4f3   : > { %v4415_v54 = vadd.f32 %v4414_v2, %v4413_v38  ;;  %v4244_v5 = vpop.f32.mrb[152].mxu1  ;;  %v4306_v6 = vmul.f32 2.0, %v11025_v23 }
 0x4f4   : > { %v4416_v15 = vsel %vm407_vm1, %v4398_v46, 0.0  ;;  %v4357_v55 = vmul.f32 %v4343_v47, %v4315_v31  ;;  %v4344_v58 = vadd.f32 0.0009, %v4330_v59  ;;  %v4275_v7 = vmul.f32 1.0016193, %v4244_v5  ;;  %v6230_v17 = vpop.f32.mrb[153].mxu1 }
 0x4f5   : > { %v4417_v33 = vadd.f32 %v4416_v15, %v4415_v54  ;;  %v4247_v43 = vpop.f32.mrb[154].mxu1  ;;  %v4319_v46 = vadd.f32 0.0001, %v4305_v44  ;;  %v11027_v47 = vld [vmem:[#allocation46_spill] sm:$0xff]  ;;  %v4320_v5 = vadd.f32 0.0001, %v4306_v6 }
 0x4f6   : > { %v4385_v41 = vmul.f32 %v6386_v27, %v4357_v55  ;;  %v4358_v18 = vmul.f32 %v4344_v58, %v4316_v22  ;;  %v4289_v34 = vsub.f32 %v4275_v7, %v11020_v35  ;;  %v4276_v19 = vmul.f32 1.0016193, %v4247_v43  ;;  %v6231_v11 = vpop.f32.mrb[155].mxu1 }
 0x4f8   : > { %v4399_v21 = vadd.f32 %v4385_v41, %v11022_v28  ;;  %v4386_v24 = vmul.f32 %v6388_v25, %v4358_v18  ;;  %v4331_v56 = vmul.f32 2.0, %v4289_v34  ;;  %v4290_v53 = vsub.f32 %v4276_v19, %v11021_v36  ;;  %v6396_v36 = vpop.eup %6395 }
 0x4f9   : > { %v4308_v28 = vmul.f32 2.0, %v11029_v14 }
 0x4fa   : > { %v4418_v48 = vsel %vm407_vm1, %v4399_v21, 0.0  ;;  %v4400_v50 = vadd.f32 %v4386_v24, %v11023_v49  ;;  %v4345_v26 = vadd.f32 0.0009, %v4331_v56  ;;  %v4332_v32 = vmul.f32 2.0, %v4290_v53  ;;  %v11030_v53 = vld [vmem:[#allocation51_spill] sm:$0xff] }
 0x4fb   : > { %v4419_v40 = vadd.f32 %v4418_v48, %v4417_v33  ;;  %v4252_v4 = vpop.f32.mrb[156].mxu1  ;;  %v11028_v33 = vld [vmem:[#allocation72_spill] sm:$0xff] }
 0x4fc   : > { %v4420_v10 = vsel %vm407_vm1, %v4400_v50, 0.0  ;;  %v4359_v62 = vmul.f32 %v4345_v26, %v4317_v60  ;;  %v4346_v3 = vadd.f32 0.0009, %v4332_v32  ;;  %v4277_v1 = vmul.f32 1.0016193, %v4252_v4  ;;  %v6234_v38 = vpop.f32.mrb[157].mxu1 }
 0x4fd   : > { %v4255_v52 = vpop.f32.mrb[158].mxu1  ;;  %v4421_v61 = vadd.f32 %v4420_v10, %v4419_v40  ;;  %v4307_v43 = vmul.f32 2.0, %v11028_v33  ;;  %v11031_v50 = vld [vmem:[#allocation53_spill] sm:$0xff]  ;;  %v4322_v40 = vadd.f32 0.0001, %v4308_v28 }
 0x4fe   : > { %v4387_v20 = vmul.f32 %v6390_v9, %v4359_v62  ;;  %v4360_v45 = vmul.f32 %v4346_v3, %v4318_v51  ;;  %v4291_v12 = vsub.f32 %v4277_v1, %v11024_v13  ;;  %v4278_v42 = vmul.f32 1.0016193, %v4255_v52  ;;  %v6235_v29 = vpop.f32.mrb[159].mxu1  ;;  %v6398_v3 = vpop.eup %6397  ;;  %v11032_v52 = vld [vmem:[#allocation55_spill] sm:$0xff] }
 0x4ff   : > { %v4321_v48 = vadd.f32 0.0001, %v4307_v43  ;;  %v6400_v13 = vpop.eup %6399 }
 0x500   : > { %v4401_v8 = vadd.f32 %v4387_v20, %v11026_v57  ;;  %v4388_v31 = vmul.f32 %v6392_v30, %v4360_v45  ;;  %v4333_v2 = vmul.f32 2.0, %v4291_v12  ;;  %v4292_v63 = vsub.f32 %v4278_v42, %v11025_v23  ;;  %v11033_v20 = vld [vmem:[#allocation54_spill] sm:$0xff] }
 0x502   : > { %v4402_v39 = vadd.f32 %v4388_v31, %v11027_v47  ;;  %v4347_v59 = vadd.f32 0.0009, %v4333_v2  ;;  %v4334_v22 = vmul.f32 2.0, %v4292_v63  ;;  %v4422_v54 = vsel %vm407_vm1, %v4401_v8, 0.0 }
 0x503   : > { %v4260_v15 = vpop.f32.mrb[160].mxu1  ;;  %v4423_v55 = vadd.f32 %v4422_v54, %v4421_v61 }
 0x504   : > { %v4361_v58 = vmul.f32 %v4347_v59, %v4319_v46  ;;  %v4348_v7 = vadd.f32 0.0009, %v4334_v22  ;;  %v4279_v17 = vmul.f32 1.0016193, %v4260_v15  ;;  %v6238_v27 = vpop.f32.mrb[161].mxu1  ;;  %v4424_v35 = vsel %vm407_vm1, %v4402_v39, 0.0 }
 0x505   : > { %v4263_v41 = vpop.f32.mrb[162].mxu1  ;;  %v4425_v18 = vadd.f32 %v4424_v35, %v4423_v55 }
 0x506   : > { %v4389_v34 = vmul.f32 %v6394_v0, %v4361_v58  ;;  %v4362_v19 = vmul.f32 %v4348_v7, %v4320_v5  ;;  %v4293_v11 = vsub.f32 %v4279_v17, %v11028_v33  ;;  %v4280_v37 = vmul.f32 1.0016193, %v4263_v41  ;;  %v6239_v25 = vpop.f32.mrb[163].mxu1 }
 0x508   : > { %v4390_v21 = vmul.f32 %v6396_v36, %v4362_v19  ;;  %v4335_v24 = vmul.f32 2.0, %v4293_v11  ;;  %v4294_v56 = vsub.f32 %v4280_v37, %v11029_v14  ;;  %v4403_v60 = vadd.f32 %v4389_v34, %v11030_v53 }
 0x50a   : > { %v4349_v49 = vadd.f32 0.0009, %v4335_v24  ;;  %v4336_v16 = vmul.f32 2.0, %v4294_v56  ;;  %v4404_v26 = vadd.f32 %v4390_v21, %v11031_v50  ;;  %v4426_v32 = vsel %vm407_vm1, %v4403_v60, 0.0 }
 0x50b   : > { %v4427_v51 = vadd.f32 %v4426_v32, %v4425_v18 }
 0x50c   : > { %v4363_v4 = vmul.f32 %v4349_v49, %v4321_v48  ;;  %v4350_v10 = vadd.f32 0.0009, %v4336_v16  ;;  %v4428_v62 = vsel %vm407_vm1, %v4404_v26, 0.0 }
 0x50d   : > { %v4429_v1 = vadd.f32 %v4428_v62, %v4427_v51 }
 0x50e   : > { %v4364_v38 = vmul.f32 %v4350_v10, %v4322_v40  ;;  %v4391_v9 = vmul.f32 %v6398_v3, %v4363_v4 }
 0x510   : > { %v4392_v44 = vmul.f32 %v6400_v13, %v4364_v38  ;;  %v4405_v61 = vadd.f32 %v4391_v9, %v11032_v52 }
 0x512   : > { %v4406_v45 = vadd.f32 %v4392_v44, %v11033_v20  ;;  %v4430_v12 = vsel %vm407_vm1, %v4405_v61, 0.0 }
 0x513   : > { %v4431_v42 = vadd.f32 %v4430_v12, %v4429_v1 }
 0x514   : > { %v4432_v29 = vsel %vm407_vm1, %v4406_v45, 0.0 }
 0x515   : > { %v4433_v30 = vadd.f32 %v4432_v29, %v4431_v42 }
 0x517   : > { %4434 = vadd.xlane.f32.xlu0 %v4433_v30 }
 0x5a4   : > { %v4435_v23 = vpop.xlane.xlu0 %4434 }
 0x5a5   : > { %v4436_v6 = vrot.slane %v4435_v23, 4 }
 0x5a7   : > { %v4437_v57 = vadd.f32 %v4436_v6, %v4435_v23 }
 0x5a9   : > { %v4438_v8 = vrot.slane %v4437_v57, 2 }
 0x5ab   : > { %v4439_v31 = vadd.f32 %v4438_v8, %v4437_v57 }
 0x5ad   : > { %v4440_v2 = vrot.slane %v4439_v31, 1 }
 0x5af   : > { %v4441_v63 = vadd.f32 %v4440_v2, %v4439_v31 }
 0x5b1   : > { %6245 = vpush %v4441_v63 }
 0x5e2   : > { %s6246_s6 = spop %6245 }
 0x5e3   : > { %v4443_v46 = vstv %s6246_s6 }
 0x5e4   : > { %4444 = vst [vmem:[%s244_s28] sm:$0xff] %v4443_v46 }
 0x5e5 PF: > { %p14_p13 = scmp.ge.s32.totalorder %s6680_s16, 4   ;;  %s11034_s12 = smov %s6620_s13 }
 0x5e6   : > { %s11035_s13 = smov %s6624_s14  ;;  %s11036_s14 = smov %s6690_s19 }
 0x5e7   : > { %s11037_s15 = smov %s6680_s16  ;;  %16 = sbr.rel (!%p14_p13) target bundleno = 4 (0x4), region = 88 }
 0x5ee   :  { %4464 = vsyncpa [#allocation3], 1 }
 0x5ef   :  { %4466 = vsyncpa [#allocation3 + $0x1], 1 }
 0x5f0   :  { %4467 = vsyncpa [#allocation5], 1 }
 0x5f1   :  { %4469 = vsyncpa [#allocation5 + $0x1], 1 }

</bundles_post_ra>
